<compile_context>
chip_gen: v7x
topology: tpu7x:2x2x1
jax: 0.10.0
libtpu: 0.0.40
codegen_flags: <defaults>
</compile_context>

<pallas_src>
import math
from functools import partial

import jax
import jax.numpy as jnp
from jax import lax
from jax.experimental import pallas as pl
from jax.experimental.pallas import tpu as pltpu

# ----- small synthetic DINOv2 config --------------------------------------------
PATCH = 14                      # real DINOv2 patch size
IN_CH = 3
EMBED_DIM = 32                  # small synthetic embed dim (real vitb14: 768)
NUM_HEADS = 2
HEAD_DIM = EMBED_DIM // NUM_HEADS           # 16
DEPTH = 4                       # small synthetic depth (real vitb14: 12)
MLP_HIDDEN = 4 * EMBED_DIM                  # 128 (already a full lane width)
LN_EPS = 1e-6
UNFREEZE_N_BLOCKS = 2           # gradient-flow detail only; forward math identical

# ----- lane-dense padded kernel layout -------------------------------------------
D_PAD = 128                     # embed dim padded to one 128-lane vreg width
PP_REAL = IN_CH * PATCH * PATCH             # 588 (patch pixels, used in wrapper only)

BLK_KEYS = ("n1w", "n1b", "wqkv", "bqkv", "wproj", "bproj", "ls1",
            "n2w", "n2b", "wfc1", "bfc1", "wfc2", "bfc2", "ls2")


# ----------------------------- kernel helpers ------------------------------------
def _mm(a, b):
    # bf16 MXU inputs, f32 accumulation.
    return jnp.dot(a.astype(jnp.bfloat16), b.astype(jnp.bfloat16),
                   preferred_element_type=jnp.float32)


def _mm_tt(a, b):
    # contract the last dim of both operands (q @ k^T without explicit transpose)
    return lax.dot_general(a.astype(jnp.bfloat16), b.astype(jnp.bfloat16),
                           dimension_numbers=(((1,), (1,)), ((), ())),
                           preferred_element_type=jnp.float32)


def _layernorm(x, w, b, ch_mask):
    # Statistics over the *real* EMBED_DIM channels only.  Padded channels of x
    # are exactly zero by construction (weights/biases zero-padded), so the mean
    # needs no masking; the variance masks the (0 - mu) padded contributions.
    inv_d = 1.0 / EMBED_DIM
    mu = jnp.sum(x, axis=-1, keepdims=True) * inv_d
    diff = jnp.where(ch_mask, x - mu, 0.0)
    var = jnp.sum(diff * diff, axis=-1, keepdims=True) * inv_d
    return diff * lax.rsqrt(var + LN_EPS) * w + b


def _gelu_tanh(x):
    # TODO(synk): PyTorch nn.GELU() default is the exact erf form; using the
    # tanh approximation here for guaranteed Mosaic lowering.
    c = math.sqrt(2.0 / math.pi)
    return 0.5 * x * (1.0 + jnp.tanh(c * (x + 0.044715 * x * x * x)))


# ----------------------------- fused kernel --------------------------------------
def dinov2_fused_kernel(
    tok_ref,
    n1w_ref, n1b_ref, wqkv_ref, bqkv_ref, wproj_ref, bproj_ref, ls1_ref,
    n2w_ref, n2b_ref, wfc1_ref, bfc1_ref, wfc2_ref, bfc2_ref, ls2_ref,
    o_ref, *, n_real, n_pad, bpc,
):
    # Token state for bpc images folded into the M dimension; carried in values
    # across the (unrolled) depth loop, written back exactly once at the end.
    x = tok_ref[...]                                        # (bpc*n_pad, D_PAD) f32

    ch_mask = lax.broadcasted_iota(jnp.int32, (1, D_PAD), 1) < EMBED_DIM
    key_mask = lax.broadcasted_iota(jnp.int32, (1, n_pad), 1) < n_real
    lane = lax.broadcasted_iota(jnp.int32, (1, D_PAD), 1)
    # per-head lane masks: select head h's HEAD_DIM lanes inside the packed
    # 128-lane q/k/v blocks (hoisted once, reused across all layers).
    head_masks = [
        jnp.where((lane >= h * HEAD_DIM) & (lane < (h + 1) * HEAD_DIM), 1.0, 0.0)
        for h in range(NUM_HEADS)
    ]

    def attn_one_image(q, k, v):
        # q/k/v: (n_pad, D_PAD), all heads packed in the first EMBED_DIM lanes.
        out = None
        for hm in head_masks:
            s = _mm_tt(q, k * hm)                           # (n_pad, n_pad) head scores
            s = jnp.where(key_mask, s, -1e30)               # mask padded key tokens
            s = s - jnp.max(s, axis=-1, keepdims=True)
            p = jnp.exp(s)
            p = p * pl.reciprocal(jnp.sum(p, axis=-1, keepdims=True), approx=True)
            o = _mm(p, v * hm)                              # nonzero only on head lanes
            out = o if out is None else out + o             # heads land in disjoint lanes
        return out                                          # (n_pad, D_PAD)

    for layer in range(DEPTH):          # static unroll; all weights VMEM-resident
        # ---- attention residual branch: x + ls1 * proj(attn(norm1(x))) ----------
        xn = _layernorm(x, n1w_ref[layer], n1b_ref[layer], ch_mask)
        qkv = _mm(xn, wqkv_ref[layer]) + bqkv_ref[layer]    # (M, 3*D_PAD)
        q = qkv[:, 0:D_PAD]
        k = qkv[:, D_PAD:2 * D_PAD]
        v = qkv[:, 2 * D_PAD:3 * D_PAD]

        if bpc == 1:
            attn_slab = attn_one_image(q, k, v)
        else:
            blocks = [attn_one_image(q[i * n_pad:(i + 1) * n_pad],
                                     k[i * n_pad:(i + 1) * n_pad],
                                     v[i * n_pad:(i + 1) * n_pad])
                      for i in range(bpc)]
            attn_slab = jnp.concatenate(blocks, axis=0)

        attn = _mm(attn_slab, wproj_ref[layer]) + bproj_ref[layer]
        x = x + ls1_ref[layer] * attn

        # ---- MLP residual branch: x + ls2 * fc2(gelu(fc1(norm2(x)))) ------------
        xn2 = _layernorm(x, n2w_ref[layer], n2b_ref[layer], ch_mask)
        h1 = _gelu_tanh(_mm(xn2, wfc1_ref[layer]) + bfc1_ref[layer])
        x = x + ls2_ref[layer] * (_mm(h1, wfc2_ref[layer]) + bfc2_ref[layer])

    o_ref[...] = x


# ----------------------------- wrappers -------------------------------------------
def extract_patches(x, patch):
    # NCHW input -> (B, Hp*Wp, C*patch*patch), flattened per-patch as (c, u, v)
    # to match the PyTorch Conv2d(kernel=stride=patch) weight layout.
    b, c, h, w = x.shape
    hp, wp = h // patch, w // patch
    x = x.reshape(b, c, hp, patch, wp, patch)
    x = x.transpose(0, 2, 4, 1, 3, 5)          # (B, Hp, Wp, C, p, p)
    return x.reshape(b, hp * wp, c * patch * patch)


def dinov2_forward(x, params, reshape_output=True):
    b, _, h, w = x.shape
    hp, wp = h // PATCH, w // PATCH
    n_real = 1 + hp * wp
    n_pad = ((n_real + 15) // 16) * 16          # bf16-tile friendly (16 sublanes)

    # ---- prepare_tokens_with_masks in XLA (plain dense matmul, done once) ------
    patches = extract_patches(x, PATCH)                                   # (B, Hp*Wp, 588)
    emb = jnp.einsum("bnp,pd->bnd", patches, params["patch_w"]) + params["patch_b"]
    cls = jnp.broadcast_to(params["cls"][None, None, :], (b, 1, EMBED_DIM))
    tok = jnp.concatenate([cls, emb], axis=1) + params["pos"][None]       # (B, n_real, D)
    tok = jnp.pad(tok, ((0, 0), (0, n_pad - n_real), (0, D_PAD - EMBED_DIM)))
    tok = tok.reshape(b * n_pad, D_PAD)                                   # lane-dense slab

    # grid: NC parallel steps splitting the batch (keeps both v7x TCs busy);
    # each step folds B/NC images into the matmul M dimension.
    nc = 2 if (b % 2 == 0 and b >= 2) else 1
    bpc = b // nc
    m = bpc * n_pad

    blk_ws = [params[k] for k in BLK_KEYS]

    def resident_spec(a):
        # full array, constant block index -> DMA'd once, stays VMEM-resident
        zero_idx = (0,) * a.ndim
        return pl.BlockSpec(a.shape, lambda c: zero_idx)

    out = pl.pallas_call(
        partial(dinov2_fused_kernel, n_real=n_real, n_pad=n_pad, bpc=bpc),
        out_shape=jax.ShapeDtypeStruct((b * n_pad, D_PAD), jnp.float32),
        grid_spec=pltpu.PrefetchScalarGridSpec(
            num_scalar_prefetch=0,
            grid=(nc,),
            in_specs=[pl.BlockSpec((m, D_PAD), lambda c: (c, 0))]
                     + [resident_spec(a) for a in blk_ws],
            out_specs=pl.BlockSpec((m, D_PAD), lambda c: (c, 0)),
        ),
        compiler_params=pltpu.CompilerParams(
            dimension_semantics=("parallel",)),
    )(tok, *blk_ws)

    # drop cls token, strip padding, reshape to a feature map
    out = out.reshape(b, n_pad, D_PAD)
    tok_out = out[:, 1:n_real, :EMBED_DIM]
    if reshape_output:
        tok_out = jnp.transpose(tok_out, (0, 2, 1)).reshape(b, EMBED_DIM, hp, wp)
    return tok_out


# ----------------------------- parameter init -------------------------------------
def init_params(key, num_patches):
    n_real = 1 + num_patches
    scale = HEAD_DIM ** -0.5

    def nrm(k, shape, s=0.02):
        return s * jax.random.normal(k, shape, jnp.float32)

    keys = jax.random.split(key, 4 + DEPTH)

    # real-sized synthetic weights (wrapper-side patch embed stays f32 / unpadded)
    patch_w = nrm(keys[0], (PP_REAL, EMBED_DIM))   # torch conv (D,C,p,p).reshape(D,-1).T
    patch_b = nrm(keys[1], (EMBED_DIM,))
    cls_tok = nrm(keys[2], (EMBED_DIM,))
    pos = nrm(keys[3], (n_real, EMBED_DIM))

    def vec(v, width=D_PAD):
        out = jnp.zeros((1, width), jnp.float32)
        return out.at[0, :v.shape[0]].set(v)

    stacks = {k: [] for k in BLK_KEYS}
    for i in range(DEPTH):
        bk = jax.random.split(keys[4 + i], 12)
        wq = nrm(bk[0], (EMBED_DIM, EMBED_DIM))    # torch (out,in) transposed -> (in,out)
        wk = nrm(bk[1], (EMBED_DIM, EMBED_DIM))
        wv = nrm(bk[2], (EMBED_DIM, EMBED_DIM))
        bq = nrm(bk[3], (EMBED_DIM,))
        bk_ = nrm(bk[4], (EMBED_DIM,))
        bv = nrm(bk[5], (EMBED_DIM,))
        wpr = nrm(bk[6], (EMBED_DIM, EMBED_DIM))
        bpr = nrm(bk[7], (EMBED_DIM,))
        wf1 = nrm(bk[8], (EMBED_DIM, MLP_HIDDEN))
        bf1 = nrm(bk[9], (MLP_HIDDEN,))
        wf2 = nrm(bk[10], (MLP_HIDDEN, EMBED_DIM))
        bf2 = nrm(bk[11], (EMBED_DIM,))

        # natural packed q/k/v layout (no per-head lane padding); attention scale
        # 1/sqrt(head_dim) folded into the q weights/bias.
        wqkv = jnp.zeros((D_PAD, 3 * D_PAD), jnp.float32)
        wqkv = wqkv.at[:EMBED_DIM, 0:EMBED_DIM].set(wq * scale)
        wqkv = wqkv.at[:EMBED_DIM, D_PAD:D_PAD + EMBED_DIM].set(wk)
        wqkv = wqkv.at[:EMBED_DIM, 2 * D_PAD:2 * D_PAD + EMBED_DIM].set(wv)
        bqkv = jnp.zeros((1, 3 * D_PAD), jnp.float32)
        bqkv = bqkv.at[0, 0:EMBED_DIM].set(bq * scale)
        bqkv = bqkv.at[0, D_PAD:D_PAD + EMBED_DIM].set(bk_)
        bqkv = bqkv.at[0, 2 * D_PAD:2 * D_PAD + EMBED_DIM].set(bv)

        wproj = jnp.zeros((D_PAD, D_PAD), jnp.float32).at[:EMBED_DIM, :EMBED_DIM].set(wpr)
        wf1p = jnp.zeros((D_PAD, MLP_HIDDEN), jnp.float32).at[:EMBED_DIM, :].set(wf1)
        wf2p = jnp.zeros((MLP_HIDDEN, D_PAD), jnp.float32).at[:, :EMBED_DIM].set(wf2)

        stacks["n1w"].append(vec(jnp.ones((EMBED_DIM,), jnp.float32)))
        stacks["n1b"].append(vec(jnp.zeros((EMBED_DIM,), jnp.float32)))
        stacks["wqkv"].append(wqkv)
        stacks["bqkv"].append(bqkv)
        stacks["wproj"].append(wproj)
        stacks["bproj"].append(vec(bpr))
        stacks["ls1"].append(vec(1e-2 * jnp.ones((EMBED_DIM,), jnp.float32)))  # LayerScale
        stacks["n2w"].append(vec(jnp.ones((EMBED_DIM,), jnp.float32)))
        stacks["n2b"].append(vec(jnp.zeros((EMBED_DIM,), jnp.float32)))
        stacks["wfc1"].append(wf1p)
        stacks["bfc1"].append(vec(bf1, MLP_HIDDEN))
        stacks["wfc2"].append(wf2p)
        stacks["bfc2"].append(vec(bf2))
        stacks["ls2"].append(vec(1e-2 * jnp.ones((EMBED_DIM,), jnp.float32)))

    params = {
        "patch_w": patch_w,     # wrapper-side (XLA) patch embed, f32
        "patch_b": patch_b,
        "cls": cls_tok,
        "pos": pos,
    }
    matmul_keys = {"wqkv", "wproj", "wfc1", "wfc2"}
    for k, lst in stacks.items():
        arr = jnp.stack(lst, axis=0)                   # leading DEPTH axis
        params[k] = arr.astype(jnp.bfloat16) if k in matmul_keys else arr
    return params


# ----------------------------- main -------------------------------------------------
if __name__ == "__main__":
    key = jax.random.PRNGKey(0)
    kx, kp = jax.random.split(key)

    B, H, W = 2, 56, 56                       # 56/14 = 4 -> 16 patches + cls = 17 tokens
    x = jax.random.normal(kx, (B, IN_CH, H, W), jnp.float32)
    params = init_params(kp, num_patches=(H // PATCH) * (W // PATCH))

    fwd = jax.jit(lambda inp: dinov2_forward(inp, params))
    out = fwd(x)
    jax.block_until_ready(out)

    assert out.shape == (B, EMBED_DIM, H // PATCH, W // PATCH), out.shape
    assert out.dtype == jnp.float32
    assert bool(jnp.all(jnp.isfinite(out)))
    print("KERNEL_OK")
</pallas_src>

<mosaic_0001>
module attributes {stable_mosaic.version = 11 : i64} {
  func.func @dinov2_fused_kernel(%arg0: i32, %arg1: memref<32x128xf32, #tpu.memory_space<vmem>>, %arg2: memref<4x1x128xf32, #tpu.memory_space<vmem>>, %arg3: memref<4x1x128xf32, #tpu.memory_space<vmem>>, %arg4: memref<4x128x384xbf16, #tpu.memory_space<vmem>>, %arg5: memref<4x1x384xf32, #tpu.memory_space<vmem>>, %arg6: memref<4x128x128xbf16, #tpu.memory_space<vmem>>, %arg7: memref<4x1x128xf32, #tpu.memory_space<vmem>>, %arg8: memref<4x1x128xf32, #tpu.memory_space<vmem>>, %arg9: memref<4x1x128xf32, #tpu.memory_space<vmem>>, %arg10: memref<4x1x128xf32, #tpu.memory_space<vmem>>, %arg11: memref<4x128x128xbf16, #tpu.memory_space<vmem>>, %arg12: memref<4x1x128xf32, #tpu.memory_space<vmem>>, %arg13: memref<4x128x128xbf16, #tpu.memory_space<vmem>>, %arg14: memref<4x1x128xf32, #tpu.memory_space<vmem>>, %arg15: memref<4x1x128xf32, #tpu.memory_space<vmem>>, %arg16: memref<32x128xf32, #tpu.memory_space<vmem>>) attributes {dimension_semantics = [#tpu.dimension_semantics<parallel>], iteration_bounds = array<i64: 2>, scalar_prefetch = 0 : i64, scratch_operands = 0 : i64, tpu.core_type = #tpu.core_type<tc>, window_params = [{transform_indices = @transform_0, window_bounds = array<i64: 32, 128>}, {pipeline_mode = #tpu.pipeline_mode<synchronous>, transform_indices = @transform_1, window_bounds = array<i64: 4, 1, 128>}, {pipeline_mode = #tpu.pipeline_mode<synchronous>, transform_indices = @transform_2, window_bounds = array<i64: 4, 1, 128>}, {pipeline_mode = #tpu.pipeline_mode<synchronous>, transform_indices = @transform_3, window_bounds = array<i64: 4, 128, 384>}, {pipeline_mode = #tpu.pipeline_mode<synchronous>, transform_indices = @transform_4, window_bounds = array<i64: 4, 1, 384>}, {pipeline_mode = #tpu.pipeline_mode<synchronous>, transform_indices = @transform_5, window_bounds = array<i64: 4, 128, 128>}, {pipeline_mode = #tpu.pipeline_mode<synchronous>, transform_indices = @transform_6, window_bounds = array<i64: 4, 1, 128>}, {pipeline_mode = #tpu.pipeline_mode<synchronous>, transform_indices = @transform_7, window_bounds = array<i64: 4, 1, 128>}, {pipeline_mode = #tpu.pipeline_mode<synchronous>, transform_indices = @transform_8, window_bounds = array<i64: 4, 1, 128>}, {pipeline_mode = #tpu.pipeline_mode<synchronous>, transform_indices = @transform_9, window_bounds = array<i64: 4, 1, 128>}, {pipeline_mode = #tpu.pipeline_mode<synchronous>, transform_indices = @transform_10, window_bounds = array<i64: 4, 128, 128>}, {pipeline_mode = #tpu.pipeline_mode<synchronous>, transform_indices = @transform_11, window_bounds = array<i64: 4, 1, 128>}, {pipeline_mode = #tpu.pipeline_mode<synchronous>, transform_indices = @transform_12, window_bounds = array<i64: 4, 128, 128>}, {pipeline_mode = #tpu.pipeline_mode<synchronous>, transform_indices = @transform_13, window_bounds = array<i64: 4, 1, 128>}, {pipeline_mode = #tpu.pipeline_mode<synchronous>, transform_indices = @transform_14, window_bounds = array<i64: 4, 1, 128>}, {transform_indices = @transform_15, window_bounds = array<i64: 32, 128>}]} {
    %c0 = arith.constant 0 : index
    %c0_0 = arith.constant 0 : index
    %0 = vector.load %arg1[%c0, %c0_0] : memref<32x128xf32, #tpu.memory_space<vmem>>, vector<32x128xf32>
    %1 = tpu.iota {dimensions = array<i32: 1>} : vector<1x128xi32>
    %c32_i32 = arith.constant 32 : i32
    %2 = vector.broadcast %c32_i32 : i32 to vector<1x128xi32>
    %3 = arith.cmpi slt, %1, %2 : vector<1x128xi32>
    %4 = tpu.iota {dimensions = array<i32: 1>} : vector<1x32xi32>
    %c17_i32 = arith.constant 17 : i32
    %5 = vector.broadcast %c17_i32 : i32 to vector<1x32xi32>
    %6 = arith.cmpi slt, %4, %5 : vector<1x32xi32>
    %7 = tpu.iota {dimensions = array<i32: 1>} : vector<1x128xi32>
    %c0_i32 = arith.constant 0 : i32
    %8 = vector.broadcast %c0_i32 : i32 to vector<1x128xi32>
    %9 = arith.cmpi sge, %7, %8 : vector<1x128xi32>
    %c16_i32 = arith.constant 16 : i32
    %10 = vector.broadcast %c16_i32 : i32 to vector<1x128xi32>
    %11 = arith.cmpi slt, %7, %10 : vector<1x128xi32>
    %12 = arith.andi %9, %11 : vector<1x128xi1>
    %cst = arith.constant 1.000000e+00 : f32
    %cst_1 = arith.constant 0.000000e+00 : f32
    %13 = vector.broadcast %cst : f32 to vector<1x128xf32>
    %14 = vector.broadcast %cst_1 : f32 to vector<1x128xf32>
    %15 = arith.select %12, %13, %14 : vector<1x128xi1>, vector<1x128xf32>
    %c16_i32_2 = arith.constant 16 : i32
    %16 = vector.broadcast %c16_i32_2 : i32 to vector<1x128xi32>
    %17 = arith.cmpi sge, %7, %16 : vector<1x128xi32>
    %c32_i32_3 = arith.constant 32 : i32
    %18 = vector.broadcast %c32_i32_3 : i32 to vector<1x128xi32>
    %19 = arith.cmpi slt, %7, %18 : vector<1x128xi32>
    %20 = arith.andi %17, %19 : vector<1x128xi1>
    %cst_4 = arith.constant 1.000000e+00 : f32
    %cst_5 = arith.constant 0.000000e+00 : f32
    %21 = vector.broadcast %cst_4 : f32 to vector<1x128xf32>
    %22 = vector.broadcast %cst_5 : f32 to vector<1x128xf32>
    %23 = arith.select %20, %21, %22 : vector<1x128xi1>, vector<1x128xf32>
    %c0_6 = arith.constant 0 : index
    %c0_7 = arith.constant 0 : index
    %c0_8 = arith.constant 0 : index
    %24 = vector.load %arg2[%c0_6, %c0_7, %c0_8] : memref<4x1x128xf32, #tpu.memory_space<vmem>>, vector<1x1x128xf32>
    %25 = vector.shape_cast %24 : vector<1x1x128xf32> to vector<1x128xf32>
    %c0_9 = arith.constant 0 : index
    %c0_10 = arith.constant 0 : index
    %c0_11 = arith.constant 0 : index
    %26 = vector.load %arg3[%c0_9, %c0_10, %c0_11] : memref<4x1x128xf32, #tpu.memory_space<vmem>>, vector<1x1x128xf32>
    %27 = vector.shape_cast %26 : vector<1x1x128xf32> to vector<1x128xf32>
    %cst_12 = arith.constant dense<0.000000e+00> : vector<32xf32>
    %28 = vector.multi_reduction <add>, %0, %cst_12 [1] : vector<32x128xf32> to vector<32xf32>
    %29 = vector.shape_cast %28 : vector<32xf32> to vector<32x1xf32>
    %cst_13 = arith.constant 3.125000e-02 : f32
    %30 = vector.broadcast %cst_13 : f32 to vector<32x1xf32>
    %31 = arith.mulf %29, %30 : vector<32x1xf32>
    %32 = vector.broadcast %31 : vector<32x1xf32> to vector<32x128xf32>
    %33 = arith.subf %0, %32 : vector<32x128xf32>
    %cst_14 = arith.constant 0.000000e+00 : f32
    %34 = vector.shape_cast %3 : vector<1x128xi1> to vector<1x128xi1>
    %35 = vector.broadcast %34 : vector<1x128xi1> to vector<32x128xi1>
    %36 = vector.broadcast %cst_14 : f32 to vector<32x128xf32>
    %37 = arith.select %35, %33, %36 : vector<32x128xi1>, vector<32x128xf32>
    %38 = arith.mulf %37, %37 : vector<32x128xf32>
    %cst_15 = arith.constant dense<0.000000e+00> : vector<32xf32>
    %39 = vector.multi_reduction <add>, %38, %cst_15 [1] : vector<32x128xf32> to vector<32xf32>
    %40 = vector.shape_cast %39 : vector<32xf32> to vector<32x1xf32>
    %cst_16 = arith.constant 3.125000e-02 : f32
    %41 = vector.broadcast %cst_16 : f32 to vector<32x1xf32>
    %42 = arith.mulf %40, %41 : vector<32x1xf32>
    %cst_17 = arith.constant 9.99999997E-7 : f32
    %43 = vector.broadcast %cst_17 : f32 to vector<32x1xf32>
    %44 = arith.addf %42, %43 : vector<32x1xf32>
    %45 = math.rsqrt %44 : vector<32x1xf32>
    %46 = vector.broadcast %45 : vector<32x1xf32> to vector<32x128xf32>
    %47 = arith.mulf %37, %46 : vector<32x128xf32>
    %48 = vector.broadcast %25 : vector<1x128xf32> to vector<32x128xf32>
    %49 = arith.mulf %47, %48 : vector<32x128xf32>
    %50 = vector.broadcast %27 : vector<1x128xf32> to vector<32x128xf32>
    %51 = arith.addf %49, %50 : vector<32x128xf32>
    %c0_18 = arith.constant 0 : index
    %c0_19 = arith.constant 0 : index
    %c0_20 = arith.constant 0 : index
    %52 = vector.load %arg4[%c0_18, %c0_19, %c0_20] : memref<4x128x384xbf16, #tpu.memory_space<vmem>>, vector<1x128x384xbf16>
    %53 = vector.shape_cast %52 : vector<1x128x384xbf16> to vector<128x384xbf16>
    %54 = arith.truncf %51 : vector<32x128xf32> to vector<32x128xbf16>
    %cst_21 = arith.constant dense<0.000000e+00> : vector<32x384xf32>
    %55 = tpu.matmul %54, %53, %cst_21 {dimension_numbers = #tpu.dot_dimension_numbers<[1], [0], [0], [1], [0, 0, 1, 1], [], []>} : vector<32x128xbf16>, vector<128x384xbf16>, vector<32x384xf32> -> vector<32x384xf32>
    %c0_22 = arith.constant 0 : index
    %c0_23 = arith.constant 0 : index
    %c0_24 = arith.constant 0 : index
    %56 = vector.load %arg5[%c0_22, %c0_23, %c0_24] : memref<4x1x384xf32, #tpu.memory_space<vmem>>, vector<1x1x384xf32>
    %57 = vector.shape_cast %56 : vector<1x1x384xf32> to vector<1x384xf32>
    %58 = vector.broadcast %57 : vector<1x384xf32> to vector<32x384xf32>
    %59 = arith.addf %55, %58 : vector<32x384xf32>
    %60 = vector.extract_strided_slice %59 {offsets = [0, 0], sizes = [32, 128], strides = [1, 1]} : vector<32x384xf32> to vector<32x128xf32>
    %61 = vector.extract_strided_slice %59 {offsets = [0, 128], sizes = [32, 128], strides = [1, 1]} : vector<32x384xf32> to vector<32x128xf32>
    %62 = vector.extract_strided_slice %59 {offsets = [0, 256], sizes = [32, 128], strides = [1, 1]} : vector<32x384xf32> to vector<32x128xf32>
    %63 = vector.broadcast %15 : vector<1x128xf32> to vector<32x128xf32>
    %64 = arith.mulf %61, %63 : vector<32x128xf32>
    %65 = arith.truncf %60 : vector<32x128xf32> to vector<32x128xbf16>
    %66 = arith.truncf %64 : vector<32x128xf32> to vector<32x128xbf16>
    %cst_25 = arith.constant dense<0.000000e+00> : vector<32x32xf32>
    %67 = tpu.matmul %65, %66, %cst_25 {dimension_numbers = #tpu.dot_dimension_numbers<[1], [1], [0], [0], [0, 0, 1, 0], [], []>} : vector<32x128xbf16>, vector<32x128xbf16>, vector<32x32xf32> -> vector<32x32xf32>
    %cst_26 = arith.constant -1.000000e+30 : f32
    %68 = vector.shape_cast %6 : vector<1x32xi1> to vector<1x32xi1>
    %69 = vector.broadcast %68 : vector<1x32xi1> to vector<32x32xi1>
    %70 = vector.broadcast %cst_26 : f32 to vector<32x32xf32>
    %71 = arith.select %69, %67, %70 : vector<32x32xi1>, vector<32x32xf32>
    %cst_27 = arith.constant dense<0xFF800000> : vector<32xf32>
    %72 = vector.multi_reduction <maximumf>, %71, %cst_27 [1] : vector<32x32xf32> to vector<32xf32>
    %73 = vector.shape_cast %72 : vector<32xf32> to vector<32x1xf32>
    %74 = vector.broadcast %73 : vector<32x1xf32> to vector<32x32xf32>
    %75 = arith.subf %71, %74 : vector<32x32xf32>
    %76 = math.exp %75 : vector<32x32xf32>
    %cst_28 = arith.constant dense<0.000000e+00> : vector<32xf32>
    %77 = vector.multi_reduction <add>, %76, %cst_28 [1] : vector<32x32xf32> to vector<32xf32>
    %78 = vector.shape_cast %77 : vector<32xf32> to vector<32x1xf32>
    %79 = tpu.reciprocal %78 {approx = true} : vector<32x1xf32> -> vector<32x1xf32>
    %80 = vector.broadcast %79 : vector<32x1xf32> to vector<32x32xf32>
    %81 = arith.mulf %76, %80 : vector<32x32xf32>
    %82 = vector.broadcast %15 : vector<1x128xf32> to vector<32x128xf32>
    %83 = arith.mulf %62, %82 : vector<32x128xf32>
    %84 = arith.truncf %81 : vector<32x32xf32> to vector<32x32xbf16>
    %85 = arith.truncf %83 : vector<32x128xf32> to vector<32x128xbf16>
    %cst_29 = arith.constant dense<0.000000e+00> : vector<32x128xf32>
    %86 = tpu.matmul %84, %85, %cst_29 {dimension_numbers = #tpu.dot_dimension_numbers<[1], [0], [0], [1], [0, 0, 1, 1], [], []>} : vector<32x32xbf16>, vector<32x128xbf16>, vector<32x128xf32> -> vector<32x128xf32>
    %87 = vector.broadcast %23 : vector<1x128xf32> to vector<32x128xf32>
    %88 = arith.mulf %61, %87 : vector<32x128xf32>
    %89 = arith.truncf %60 : vector<32x128xf32> to vector<32x128xbf16>
    %90 = arith.truncf %88 : vector<32x128xf32> to vector<32x128xbf16>
    %cst_30 = arith.constant dense<0.000000e+00> : vector<32x32xf32>
    %91 = tpu.matmul %89, %90, %cst_30 {dimension_numbers = #tpu.dot_dimension_numbers<[1], [1], [0], [0], [0, 0, 1, 0], [], []>} : vector<32x128xbf16>, vector<32x128xbf16>, vector<32x32xf32> -> vector<32x32xf32>
    %cst_31 = arith.constant -1.000000e+30 : f32
    %92 = vector.shape_cast %6 : vector<1x32xi1> to vector<1x32xi1>
    %93 = vector.broadcast %92 : vector<1x32xi1> to vector<32x32xi1>
    %94 = vector.broadcast %cst_31 : f32 to vector<32x32xf32>
    %95 = arith.select %93, %91, %94 : vector<32x32xi1>, vector<32x32xf32>
    %cst_32 = arith.constant dense<0xFF800000> : vector<32xf32>
    %96 = vector.multi_reduction <maximumf>, %95, %cst_32 [1] : vector<32x32xf32> to vector<32xf32>
    %97 = vector.shape_cast %96 : vector<32xf32> to vector<32x1xf32>
    %98 = vector.broadcast %97 : vector<32x1xf32> to vector<32x32xf32>
    %99 = arith.subf %95, %98 : vector<32x32xf32>
    %100 = math.exp %99 : vector<32x32xf32>
    %cst_33 = arith.constant dense<0.000000e+00> : vector<32xf32>
    %101 = vector.multi_reduction <add>, %100, %cst_33 [1] : vector<32x32xf32> to vector<32xf32>
    %102 = vector.shape_cast %101 : vector<32xf32> to vector<32x1xf32>
    %103 = tpu.reciprocal %102 {approx = true} : vector<32x1xf32> -> vector<32x1xf32>
    %104 = vector.broadcast %103 : vector<32x1xf32> to vector<32x32xf32>
    %105 = arith.mulf %100, %104 : vector<32x32xf32>
    %106 = vector.broadcast %23 : vector<1x128xf32> to vector<32x128xf32>
    %107 = arith.mulf %62, %106 : vector<32x128xf32>
    %108 = arith.truncf %105 : vector<32x32xf32> to vector<32x32xbf16>
    %109 = arith.truncf %107 : vector<32x128xf32> to vector<32x128xbf16>
    %cst_34 = arith.constant dense<0.000000e+00> : vector<32x128xf32>
    %110 = tpu.matmul %108, %109, %cst_34 {dimension_numbers = #tpu.dot_dimension_numbers<[1], [0], [0], [1], [0, 0, 1, 1], [], []>} : vector<32x32xbf16>, vector<32x128xbf16>, vector<32x128xf32> -> vector<32x128xf32>
    %111 = arith.addf %86, %110 : vector<32x128xf32>
    %c0_35 = arith.constant 0 : index
    %c0_36 = arith.constant 0 : index
    %c0_37 = arith.constant 0 : index
    %112 = vector.load %arg6[%c0_35, %c0_36, %c0_37] : memref<4x128x128xbf16, #tpu.memory_space<vmem>>, vector<1x128x128xbf16>
    %113 = vector.shape_cast %112 : vector<1x128x128xbf16> to vector<128x128xbf16>
    %114 = arith.truncf %111 : vector<32x128xf32> to vector<32x128xbf16>
    %cst_38 = arith.constant dense<0.000000e+00> : vector<32x128xf32>
    %115 = tpu.matmul %114, %113, %cst_38 {dimension_numbers = #tpu.dot_dimension_numbers<[1], [0], [0], [1], [0, 0, 1, 1], [], []>} : vector<32x128xbf16>, vector<128x128xbf16>, vector<32x128xf32> -> vector<32x128xf32>
    %c0_39 = arith.constant 0 : index
    %c0_40 = arith.constant 0 : index
    %c0_41 = arith.constant 0 : index
    %116 = vector.load %arg7[%c0_39, %c0_40, %c0_41] : memref<4x1x128xf32, #tpu.memory_space<vmem>>, vector<1x1x128xf32>
    %117 = vector.shape_cast %116 : vector<1x1x128xf32> to vector<1x128xf32>
    %118 = vector.broadcast %117 : vector<1x128xf32> to vector<32x128xf32>
    %119 = arith.addf %115, %118 : vector<32x128xf32>
    %c0_42 = arith.constant 0 : index
    %c0_43 = arith.constant 0 : index
    %c0_44 = arith.constant 0 : index
    %120 = vector.load %arg8[%c0_42, %c0_43, %c0_44] : memref<4x1x128xf32, #tpu.memory_space<vmem>>, vector<1x1x128xf32>
    %121 = vector.shape_cast %120 : vector<1x1x128xf32> to vector<1x128xf32>
    %122 = vector.broadcast %121 : vector<1x128xf32> to vector<32x128xf32>
    %123 = arith.mulf %122, %119 : vector<32x128xf32>
    %124 = arith.addf %0, %123 : vector<32x128xf32>
    %c0_45 = arith.constant 0 : index
    %c0_46 = arith.constant 0 : index
    %c0_47 = arith.constant 0 : index
    %125 = vector.load %arg9[%c0_45, %c0_46, %c0_47] : memref<4x1x128xf32, #tpu.memory_space<vmem>>, vector<1x1x128xf32>
    %126 = vector.shape_cast %125 : vector<1x1x128xf32> to vector<1x128xf32>
    %c0_48 = arith.constant 0 : index
    %c0_49 = arith.constant 0 : index
    %c0_50 = arith.constant 0 : index
    %127 = vector.load %arg10[%c0_48, %c0_49, %c0_50] : memref<4x1x128xf32, #tpu.memory_space<vmem>>, vector<1x1x128xf32>
    %128 = vector.shape_cast %127 : vector<1x1x128xf32> to vector<1x128xf32>
    %cst_51 = arith.constant dense<0.000000e+00> : vector<32xf32>
    %129 = vector.multi_reduction <add>, %124, %cst_51 [1] : vector<32x128xf32> to vector<32xf32>
    %130 = vector.shape_cast %129 : vector<32xf32> to vector<32x1xf32>
    %cst_52 = arith.constant 3.125000e-02 : f32
    %131 = vector.broadcast %cst_52 : f32 to vector<32x1xf32>
    %132 = arith.mulf %130, %131 : vector<32x1xf32>
    %133 = vector.broadcast %132 : vector<32x1xf32> to vector<32x128xf32>
    %134 = arith.subf %124, %133 : vector<32x128xf32>
    %cst_53 = arith.constant 0.000000e+00 : f32
    %135 = vector.shape_cast %3 : vector<1x128xi1> to vector<1x128xi1>
    %136 = vector.broadcast %135 : vector<1x128xi1> to vector<32x128xi1>
    %137 = vector.broadcast %cst_53 : f32 to vector<32x128xf32>
    %138 = arith.select %136, %134, %137 : vector<32x128xi1>, vector<32x128xf32>
    %139 = arith.mulf %138, %138 : vector<32x128xf32>
    %cst_54 = arith.constant dense<0.000000e+00> : vector<32xf32>
    %140 = vector.multi_reduction <add>, %139, %cst_54 [1] : vector<32x128xf32> to vector<32xf32>
    %141 = vector.shape_cast %140 : vector<32xf32> to vector<32x1xf32>
    %cst_55 = arith.constant 3.125000e-02 : f32
    %142 = vector.broadcast %cst_55 : f32 to vector<32x1xf32>
    %143 = arith.mulf %141, %142 : vector<32x1xf32>
    %cst_56 = arith.constant 9.99999997E-7 : f32
    %144 = vector.broadcast %cst_56 : f32 to vector<32x1xf32>
    %145 = arith.addf %143, %144 : vector<32x1xf32>
    %146 = math.rsqrt %145 : vector<32x1xf32>
    %147 = vector.broadcast %146 : vector<32x1xf32> to vector<32x128xf32>
    %148 = arith.mulf %138, %147 : vector<32x128xf32>
    %149 = vector.broadcast %126 : vector<1x128xf32> to vector<32x128xf32>
    %150 = arith.mulf %148, %149 : vector<32x128xf32>
    %151 = vector.broadcast %128 : vector<1x128xf32> to vector<32x128xf32>
    %152 = arith.addf %150, %151 : vector<32x128xf32>
    %c0_57 = arith.constant 0 : index
    %c0_58 = arith.constant 0 : index
    %c0_59 = arith.constant 0 : index
    %153 = vector.load %arg11[%c0_57, %c0_58, %c0_59] : memref<4x128x128xbf16, #tpu.memory_space<vmem>>, vector<1x128x128xbf16>
    %154 = vector.shape_cast %153 : vector<1x128x128xbf16> to vector<128x128xbf16>
    %155 = arith.truncf %152 : vector<32x128xf32> to vector<32x128xbf16>
    %cst_60 = arith.constant dense<0.000000e+00> : vector<32x128xf32>
    %156 = tpu.matmul %155, %154, %cst_60 {dimension_numbers = #tpu.dot_dimension_numbers<[1], [0], [0], [1], [0, 0, 1, 1], [], []>} : vector<32x128xbf16>, vector<128x128xbf16>, vector<32x128xf32> -> vector<32x128xf32>
    %c0_61 = arith.constant 0 : index
    %c0_62 = arith.constant 0 : index
    %c0_63 = arith.constant 0 : index
    %157 = vector.load %arg12[%c0_61, %c0_62, %c0_63] : memref<4x1x128xf32, #tpu.memory_space<vmem>>, vector<1x1x128xf32>
    %158 = vector.shape_cast %157 : vector<1x1x128xf32> to vector<1x128xf32>
    %159 = vector.broadcast %158 : vector<1x128xf32> to vector<32x128xf32>
    %160 = arith.addf %156, %159 : vector<32x128xf32>
    %cst_64 = arith.constant 5.000000e-01 : f32
    %161 = vector.broadcast %cst_64 : f32 to vector<32x128xf32>
    %162 = arith.mulf %161, %160 : vector<32x128xf32>
    %cst_65 = arith.constant 4.471500e-02 : f32
    %163 = vector.broadcast %cst_65 : f32 to vector<32x128xf32>
    %164 = arith.mulf %163, %160 : vector<32x128xf32>
    %165 = arith.mulf %164, %160 : vector<32x128xf32>
    %166 = arith.mulf %165, %160 : vector<32x128xf32>
    %167 = arith.addf %160, %166 : vector<32x128xf32>
    %cst_66 = arith.constant 0.797884583 : f32
    %168 = vector.broadcast %cst_66 : f32 to vector<32x128xf32>
    %169 = arith.mulf %168, %167 : vector<32x128xf32>
    %170 = math.tanh %169 : vector<32x128xf32>
    %cst_67 = arith.constant 1.000000e+00 : f32
    %171 = vector.broadcast %cst_67 : f32 to vector<32x128xf32>
    %172 = arith.addf %171, %170 : vector<32x128xf32>
    %173 = arith.mulf %162, %172 : vector<32x128xf32>
    %c0_68 = arith.constant 0 : index
    %c0_69 = arith.constant 0 : index
    %c0_70 = arith.constant 0 : index
    %174 = vector.load %arg15[%c0_68, %c0_69, %c0_70] : memref<4x1x128xf32, #tpu.memory_space<vmem>>, vector<1x1x128xf32>
    %175 = vector.shape_cast %174 : vector<1x1x128xf32> to vector<1x128xf32>
    %c0_71 = arith.constant 0 : index
    %c0_72 = arith.constant 0 : index
    %c0_73 = arith.constant 0 : index
    %176 = vector.load %arg13[%c0_71, %c0_72, %c0_73] : memref<4x128x128xbf16, #tpu.memory_space<vmem>>, vector<1x128x128xbf16>
    %177 = vector.shape_cast %176 : vector<1x128x128xbf16> to vector<128x128xbf16>
    %178 = arith.truncf %173 : vector<32x128xf32> to vector<32x128xbf16>
    %cst_74 = arith.constant dense<0.000000e+00> : vector<32x128xf32>
    %179 = tpu.matmul %178, %177, %cst_74 {dimension_numbers = #tpu.dot_dimension_numbers<[1], [0], [0], [1], [0, 0, 1, 1], [], []>} : vector<32x128xbf16>, vector<128x128xbf16>, vector<32x128xf32> -> vector<32x128xf32>
    %c0_75 = arith.constant 0 : index
    %c0_76 = arith.constant 0 : index
    %c0_77 = arith.constant 0 : index
    %180 = vector.load %arg14[%c0_75, %c0_76, %c0_77] : memref<4x1x128xf32, #tpu.memory_space<vmem>>, vector<1x1x128xf32>
    %181 = vector.shape_cast %180 : vector<1x1x128xf32> to vector<1x128xf32>
    %182 = vector.broadcast %181 : vector<1x128xf32> to vector<32x128xf32>
    %183 = arith.addf %179, %182 : vector<32x128xf32>
    %184 = vector.broadcast %175 : vector<1x128xf32> to vector<32x128xf32>
    %185 = arith.mulf %184, %183 : vector<32x128xf32>
    %186 = arith.addf %124, %185 : vector<32x128xf32>
    %c1 = arith.constant 1 : index
    %c0_78 = arith.constant 0 : index
    %c0_79 = arith.constant 0 : index
    %187 = vector.load %arg2[%c1, %c0_78, %c0_79] : memref<4x1x128xf32, #tpu.memory_space<vmem>>, vector<1x1x128xf32>
    %188 = vector.shape_cast %187 : vector<1x1x128xf32> to vector<1x128xf32>
    %c1_80 = arith.constant 1 : index
    %c0_81 = arith.constant 0 : index
    %c0_82 = arith.constant 0 : index
    %189 = vector.load %arg3[%c1_80, %c0_81, %c0_82] : memref<4x1x128xf32, #tpu.memory_space<vmem>>, vector<1x1x128xf32>
    %190 = vector.shape_cast %189 : vector<1x1x128xf32> to vector<1x128xf32>
    %cst_83 = arith.constant dense<0.000000e+00> : vector<32xf32>
    %191 = vector.multi_reduction <add>, %186, %cst_83 [1] : vector<32x128xf32> to vector<32xf32>
    %192 = vector.shape_cast %191 : vector<32xf32> to vector<32x1xf32>
    %cst_84 = arith.constant 3.125000e-02 : f32
    %193 = vector.broadcast %cst_84 : f32 to vector<32x1xf32>
    %194 = arith.mulf %192, %193 : vector<32x1xf32>
    %195 = vector.broadcast %194 : vector<32x1xf32> to vector<32x128xf32>
    %196 = arith.subf %186, %195 : vector<32x128xf32>
    %cst_85 = arith.constant 0.000000e+00 : f32
    %197 = vector.shape_cast %3 : vector<1x128xi1> to vector<1x128xi1>
    %198 = vector.broadcast %197 : vector<1x128xi1> to vector<32x128xi1>
    %199 = vector.broadcast %cst_85 : f32 to vector<32x128xf32>
    %200 = arith.select %198, %196, %199 : vector<32x128xi1>, vector<32x128xf32>
    %201 = arith.mulf %200, %200 : vector<32x128xf32>
    %cst_86 = arith.constant dense<0.000000e+00> : vector<32xf32>
    %202 = vector.multi_reduction <add>, %201, %cst_86 [1] : vector<32x128xf32> to vector<32xf32>
    %203 = vector.shape_cast %202 : vector<32xf32> to vector<32x1xf32>
    %cst_87 = arith.constant 3.125000e-02 : f32
    %204 = vector.broadcast %cst_87 : f32 to vector<32x1xf32>
    %205 = arith.mulf %203, %204 : vector<32x1xf32>
    %cst_88 = arith.constant 9.99999997E-7 : f32
    %206 = vector.broadcast %cst_88 : f32 to vector<32x1xf32>
    %207 = arith.addf %205, %206 : vector<32x1xf32>
    %208 = math.rsqrt %207 : vector<32x1xf32>
    %209 = vector.broadcast %208 : vector<32x1xf32> to vector<32x128xf32>
    %210 = arith.mulf %200, %209 : vector<32x128xf32>
    %211 = vector.broadcast %188 : vector<1x128xf32> to vector<32x128xf32>
    %212 = arith.mulf %210, %211 : vector<32x128xf32>
    %213 = vector.broadcast %190 : vector<1x128xf32> to vector<32x128xf32>
    %214 = arith.addf %212, %213 : vector<32x128xf32>
    %c1_89 = arith.constant 1 : index
    %c0_90 = arith.constant 0 : index
    %c0_91 = arith.constant 0 : index
    %215 = vector.load %arg4[%c1_89, %c0_90, %c0_91] : memref<4x128x384xbf16, #tpu.memory_space<vmem>>, vector<1x128x384xbf16>
    %216 = vector.shape_cast %215 : vector<1x128x384xbf16> to vector<128x384xbf16>
    %217 = arith.truncf %214 : vector<32x128xf32> to vector<32x128xbf16>
    %cst_92 = arith.constant dense<0.000000e+00> : vector<32x384xf32>
    %218 = tpu.matmul %217, %216, %cst_92 {dimension_numbers = #tpu.dot_dimension_numbers<[1], [0], [0], [1], [0, 0, 1, 1], [], []>} : vector<32x128xbf16>, vector<128x384xbf16>, vector<32x384xf32> -> vector<32x384xf32>
    %c1_93 = arith.constant 1 : index
    %c0_94 = arith.constant 0 : index
    %c0_95 = arith.constant 0 : index
    %219 = vector.load %arg5[%c1_93, %c0_94, %c0_95] : memref<4x1x384xf32, #tpu.memory_space<vmem>>, vector<1x1x384xf32>
    %220 = vector.shape_cast %219 : vector<1x1x384xf32> to vector<1x384xf32>
    %221 = vector.broadcast %220 : vector<1x384xf32> to vector<32x384xf32>
    %222 = arith.addf %218, %221 : vector<32x384xf32>
    %223 = vector.extract_strided_slice %222 {offsets = [0, 0], sizes = [32, 128], strides = [1, 1]} : vector<32x384xf32> to vector<32x128xf32>
    %224 = vector.extract_strided_slice %222 {offsets = [0, 128], sizes = [32, 128], strides = [1, 1]} : vector<32x384xf32> to vector<32x128xf32>
    %225 = vector.extract_strided_slice %222 {offsets = [0, 256], sizes = [32, 128], strides = [1, 1]} : vector<32x384xf32> to vector<32x128xf32>
    %226 = vector.broadcast %15 : vector<1x128xf32> to vector<32x128xf32>
    %227 = arith.mulf %224, %226 : vector<32x128xf32>
    %228 = arith.truncf %223 : vector<32x128xf32> to vector<32x128xbf16>
    %229 = arith.truncf %227 : vector<32x128xf32> to vector<32x128xbf16>
    %cst_96 = arith.constant dense<0.000000e+00> : vector<32x32xf32>
    %230 = tpu.matmul %228, %229, %cst_96 {dimension_numbers = #tpu.dot_dimension_numbers<[1], [1], [0], [0], [0, 0, 1, 0], [], []>} : vector<32x128xbf16>, vector<32x128xbf16>, vector<32x32xf32> -> vector<32x32xf32>
    %cst_97 = arith.constant -1.000000e+30 : f32
    %231 = vector.shape_cast %6 : vector<1x32xi1> to vector<1x32xi1>
    %232 = vector.broadcast %231 : vector<1x32xi1> to vector<32x32xi1>
    %233 = vector.broadcast %cst_97 : f32 to vector<32x32xf32>
    %234 = arith.select %232, %230, %233 : vector<32x32xi1>, vector<32x32xf32>
    %cst_98 = arith.constant dense<0xFF800000> : vector<32xf32>
    %235 = vector.multi_reduction <maximumf>, %234, %cst_98 [1] : vector<32x32xf32> to vector<32xf32>
    %236 = vector.shape_cast %235 : vector<32xf32> to vector<32x1xf32>
    %237 = vector.broadcast %236 : vector<32x1xf32> to vector<32x32xf32>
    %238 = arith.subf %234, %237 : vector<32x32xf32>
    %239 = math.exp %238 : vector<32x32xf32>
    %cst_99 = arith.constant dense<0.000000e+00> : vector<32xf32>
    %240 = vector.multi_reduction <add>, %239, %cst_99 [1] : vector<32x32xf32> to vector<32xf32>
    %241 = vector.shape_cast %240 : vector<32xf32> to vector<32x1xf32>
    %242 = tpu.reciprocal %241 {approx = true} : vector<32x1xf32> -> vector<32x1xf32>
    %243 = vector.broadcast %242 : vector<32x1xf32> to vector<32x32xf32>
    %244 = arith.mulf %239, %243 : vector<32x32xf32>
    %245 = vector.broadcast %15 : vector<1x128xf32> to vector<32x128xf32>
    %246 = arith.mulf %225, %245 : vector<32x128xf32>
    %247 = arith.truncf %244 : vector<32x32xf32> to vector<32x32xbf16>
    %248 = arith.truncf %246 : vector<32x128xf32> to vector<32x128xbf16>
    %cst_100 = arith.constant dense<0.000000e+00> : vector<32x128xf32>
    %249 = tpu.matmul %247, %248, %cst_100 {dimension_numbers = #tpu.dot_dimension_numbers<[1], [0], [0], [1], [0, 0, 1, 1], [], []>} : vector<32x32xbf16>, vector<32x128xbf16>, vector<32x128xf32> -> vector<32x128xf32>
    %250 = vector.broadcast %23 : vector<1x128xf32> to vector<32x128xf32>
    %251 = arith.mulf %224, %250 : vector<32x128xf32>
    %252 = arith.truncf %223 : vector<32x128xf32> to vector<32x128xbf16>
    %253 = arith.truncf %251 : vector<32x128xf32> to vector<32x128xbf16>
    %cst_101 = arith.constant dense<0.000000e+00> : vector<32x32xf32>
    %254 = tpu.matmul %252, %253, %cst_101 {dimension_numbers = #tpu.dot_dimension_numbers<[1], [1], [0], [0], [0, 0, 1, 0], [], []>} : vector<32x128xbf16>, vector<32x128xbf16>, vector<32x32xf32> -> vector<32x32xf32>
    %cst_102 = arith.constant -1.000000e+30 : f32
    %255 = vector.shape_cast %6 : vector<1x32xi1> to vector<1x32xi1>
    %256 = vector.broadcast %255 : vector<1x32xi1> to vector<32x32xi1>
    %257 = vector.broadcast %cst_102 : f32 to vector<32x32xf32>
    %258 = arith.select %256, %254, %257 : vector<32x32xi1>, vector<32x32xf32>
    %cst_103 = arith.constant dense<0xFF800000> : vector<32xf32>
    %259 = vector.multi_reduction <maximumf>, %258, %cst_103 [1] : vector<32x32xf32> to vector<32xf32>
    %260 = vector.shape_cast %259 : vector<32xf32> to vector<32x1xf32>
    %261 = vector.broadcast %260 : vector<32x1xf32> to vector<32x32xf32>
    %262 = arith.subf %258, %261 : vector<32x32xf32>
    %263 = math.exp %262 : vector<32x32xf32>
    %cst_104 = arith.constant dense<0.000000e+00> : vector<32xf32>
    %264 = vector.multi_reduction <add>, %263, %cst_104 [1] : vector<32x32xf32> to vector<32xf32>
    %265 = vector.shape_cast %264 : vector<32xf32> to vector<32x1xf32>
    %266 = tpu.reciprocal %265 {approx = true} : vector<32x1xf32> -> vector<32x1xf32>
    %267 = vector.broadcast %266 : vector<32x1xf32> to vector<32x32xf32>
    %268 = arith.mulf %263, %267 : vector<32x32xf32>
    %269 = vector.broadcast %23 : vector<1x128xf32> to vector<32x128xf32>
    %270 = arith.mulf %225, %269 : vector<32x128xf32>
    %271 = arith.truncf %268 : vector<32x32xf32> to vector<32x32xbf16>
    %272 = arith.truncf %270 : vector<32x128xf32> to vector<32x128xbf16>
    %cst_105 = arith.constant dense<0.000000e+00> : vector<32x128xf32>
    %273 = tpu.matmul %271, %272, %cst_105 {dimension_numbers = #tpu.dot_dimension_numbers<[1], [0], [0], [1], [0, 0, 1, 1], [], []>} : vector<32x32xbf16>, vector<32x128xbf16>, vector<32x128xf32> -> vector<32x128xf32>
    %274 = arith.addf %249, %273 : vector<32x128xf32>
    %c1_106 = arith.constant 1 : index
    %c0_107 = arith.constant 0 : index
    %c0_108 = arith.constant 0 : index
    %275 = vector.load %arg6[%c1_106, %c0_107, %c0_108] : memref<4x128x128xbf16, #tpu.memory_space<vmem>>, vector<1x128x128xbf16>
    %276 = vector.shape_cast %275 : vector<1x128x128xbf16> to vector<128x128xbf16>
    %277 = arith.truncf %274 : vector<32x128xf32> to vector<32x128xbf16>
    %cst_109 = arith.constant dense<0.000000e+00> : vector<32x128xf32>
    %278 = tpu.matmul %277, %276, %cst_109 {dimension_numbers = #tpu.dot_dimension_numbers<[1], [0], [0], [1], [0, 0, 1, 1], [], []>} : vector<32x128xbf16>, vector<128x128xbf16>, vector<32x128xf32> -> vector<32x128xf32>
    %c1_110 = arith.constant 1 : index
    %c0_111 = arith.constant 0 : index
    %c0_112 = arith.constant 0 : index
    %279 = vector.load %arg7[%c1_110, %c0_111, %c0_112] : memref<4x1x128xf32, #tpu.memory_space<vmem>>, vector<1x1x128xf32>
    %280 = vector.shape_cast %279 : vector<1x1x128xf32> to vector<1x128xf32>
    %281 = vector.broadcast %280 : vector<1x128xf32> to vector<32x128xf32>
    %282 = arith.addf %278, %281 : vector<32x128xf32>
    %c1_113 = arith.constant 1 : index
    %c0_114 = arith.constant 0 : index
    %c0_115 = arith.constant 0 : index
    %283 = vector.load %arg8[%c1_113, %c0_114, %c0_115] : memref<4x1x128xf32, #tpu.memory_space<vmem>>, vector<1x1x128xf32>
    %284 = vector.shape_cast %283 : vector<1x1x128xf32> to vector<1x128xf32>
    %285 = vector.broadcast %284 : vector<1x128xf32> to vector<32x128xf32>
    %286 = arith.mulf %285, %282 : vector<32x128xf32>
    %287 = arith.addf %186, %286 : vector<32x128xf32>
    %c1_116 = arith.constant 1 : index
    %c0_117 = arith.constant 0 : index
    %c0_118 = arith.constant 0 : index
    %288 = vector.load %arg9[%c1_116, %c0_117, %c0_118] : memref<4x1x128xf32, #tpu.memory_space<vmem>>, vector<1x1x128xf32>
    %289 = vector.shape_cast %288 : vector<1x1x128xf32> to vector<1x128xf32>
    %c1_119 = arith.constant 1 : index
    %c0_120 = arith.constant 0 : index
    %c0_121 = arith.constant 0 : index
    %290 = vector.load %arg10[%c1_119, %c0_120, %c0_121] : memref<4x1x128xf32, #tpu.memory_space<vmem>>, vector<1x1x128xf32>
    %291 = vector.shape_cast %290 : vector<1x1x128xf32> to vector<1x128xf32>
    %cst_122 = arith.constant dense<0.000000e+00> : vector<32xf32>
    %292 = vector.multi_reduction <add>, %287, %cst_122 [1] : vector<32x128xf32> to vector<32xf32>
    %293 = vector.shape_cast %292 : vector<32xf32> to vector<32x1xf32>
    %cst_123 = arith.constant 3.125000e-02 : f32
    %294 = vector.broadcast %cst_123 : f32 to vector<32x1xf32>
    %295 = arith.mulf %293, %294 : vector<32x1xf32>
    %296 = vector.broadcast %295 : vector<32x1xf32> to vector<32x128xf32>
    %297 = arith.subf %287, %296 : vector<32x128xf32>
    %cst_124 = arith.constant 0.000000e+00 : f32
    %298 = vector.shape_cast %3 : vector<1x128xi1> to vector<1x128xi1>
    %299 = vector.broadcast %298 : vector<1x128xi1> to vector<32x128xi1>
    %300 = vector.broadcast %cst_124 : f32 to vector<32x128xf32>
    %301 = arith.select %299, %297, %300 : vector<32x128xi1>, vector<32x128xf32>
    %302 = arith.mulf %301, %301 : vector<32x128xf32>
    %cst_125 = arith.constant dense<0.000000e+00> : vector<32xf32>
    %303 = vector.multi_reduction <add>, %302, %cst_125 [1] : vector<32x128xf32> to vector<32xf32>
    %304 = vector.shape_cast %303 : vector<32xf32> to vector<32x1xf32>
    %cst_126 = arith.constant 3.125000e-02 : f32
    %305 = vector.broadcast %cst_126 : f32 to vector<32x1xf32>
    %306 = arith.mulf %304, %305 : vector<32x1xf32>
    %cst_127 = arith.constant 9.99999997E-7 : f32
    %307 = vector.broadcast %cst_127 : f32 to vector<32x1xf32>
    %308 = arith.addf %306, %307 : vector<32x1xf32>
    %309 = math.rsqrt %308 : vector<32x1xf32>
    %310 = vector.broadcast %309 : vector<32x1xf32> to vector<32x128xf32>
    %311 = arith.mulf %301, %310 : vector<32x128xf32>
    %312 = vector.broadcast %289 : vector<1x128xf32> to vector<32x128xf32>
    %313 = arith.mulf %311, %312 : vector<32x128xf32>
    %314 = vector.broadcast %291 : vector<1x128xf32> to vector<32x128xf32>
    %315 = arith.addf %313, %314 : vector<32x128xf32>
    %c1_128 = arith.constant 1 : index
    %c0_129 = arith.constant 0 : index
    %c0_130 = arith.constant 0 : index
    %316 = vector.load %arg11[%c1_128, %c0_129, %c0_130] : memref<4x128x128xbf16, #tpu.memory_space<vmem>>, vector<1x128x128xbf16>
    %317 = vector.shape_cast %316 : vector<1x128x128xbf16> to vector<128x128xbf16>
    %318 = arith.truncf %315 : vector<32x128xf32> to vector<32x128xbf16>
    %cst_131 = arith.constant dense<0.000000e+00> : vector<32x128xf32>
    %319 = tpu.matmul %318, %317, %cst_131 {dimension_numbers = #tpu.dot_dimension_numbers<[1], [0], [0], [1], [0, 0, 1, 1], [], []>} : vector<32x128xbf16>, vector<128x128xbf16>, vector<32x128xf32> -> vector<32x128xf32>
    %c1_132 = arith.constant 1 : index
    %c0_133 = arith.constant 0 : index
    %c0_134 = arith.constant 0 : index
    %320 = vector.load %arg12[%c1_132, %c0_133, %c0_134] : memref<4x1x128xf32, #tpu.memory_space<vmem>>, vector<1x1x128xf32>
    %321 = vector.shape_cast %320 : vector<1x1x128xf32> to vector<1x128xf32>
    %322 = vector.broadcast %321 : vector<1x128xf32> to vector<32x128xf32>
    %323 = arith.addf %319, %322 : vector<32x128xf32>
    %cst_135 = arith.constant 5.000000e-01 : f32
    %324 = vector.broadcast %cst_135 : f32 to vector<32x128xf32>
    %325 = arith.mulf %324, %323 : vector<32x128xf32>
    %cst_136 = arith.constant 4.471500e-02 : f32
    %326 = vector.broadcast %cst_136 : f32 to vector<32x128xf32>
    %327 = arith.mulf %326, %323 : vector<32x128xf32>
    %328 = arith.mulf %327, %323 : vector<32x128xf32>
    %329 = arith.mulf %328, %323 : vector<32x128xf32>
    %330 = arith.addf %323, %329 : vector<32x128xf32>
    %cst_137 = arith.constant 0.797884583 : f32
    %331 = vector.broadcast %cst_137 : f32 to vector<32x128xf32>
    %332 = arith.mulf %331, %330 : vector<32x128xf32>
    %333 = math.tanh %332 : vector<32x128xf32>
    %cst_138 = arith.constant 1.000000e+00 : f32
    %334 = vector.broadcast %cst_138 : f32 to vector<32x128xf32>
    %335 = arith.addf %334, %333 : vector<32x128xf32>
    %336 = arith.mulf %325, %335 : vector<32x128xf32>
    %c1_139 = arith.constant 1 : index
    %c0_140 = arith.constant 0 : index
    %c0_141 = arith.constant 0 : index
    %337 = vector.load %arg15[%c1_139, %c0_140, %c0_141] : memref<4x1x128xf32, #tpu.memory_space<vmem>>, vector<1x1x128xf32>
    %338 = vector.shape_cast %337 : vector<1x1x128xf32> to vector<1x128xf32>
    %c1_142 = arith.constant 1 : index
    %c0_143 = arith.constant 0 : index
    %c0_144 = arith.constant 0 : index
    %339 = vector.load %arg13[%c1_142, %c0_143, %c0_144] : memref<4x128x128xbf16, #tpu.memory_space<vmem>>, vector<1x128x128xbf16>
    %340 = vector.shape_cast %339 : vector<1x128x128xbf16> to vector<128x128xbf16>
    %341 = arith.truncf %336 : vector<32x128xf32> to vector<32x128xbf16>
    %cst_145 = arith.constant dense<0.000000e+00> : vector<32x128xf32>
    %342 = tpu.matmul %341, %340, %cst_145 {dimension_numbers = #tpu.dot_dimension_numbers<[1], [0], [0], [1], [0, 0, 1, 1], [], []>} : vector<32x128xbf16>, vector<128x128xbf16>, vector<32x128xf32> -> vector<32x128xf32>
    %c1_146 = arith.constant 1 : index
    %c0_147 = arith.constant 0 : index
    %c0_148 = arith.constant 0 : index
    %343 = vector.load %arg14[%c1_146, %c0_147, %c0_148] : memref<4x1x128xf32, #tpu.memory_space<vmem>>, vector<1x1x128xf32>
    %344 = vector.shape_cast %343 : vector<1x1x128xf32> to vector<1x128xf32>
    %345 = vector.broadcast %344 : vector<1x128xf32> to vector<32x128xf32>
    %346 = arith.addf %342, %345 : vector<32x128xf32>
    %347 = vector.broadcast %338 : vector<1x128xf32> to vector<32x128xf32>
    %348 = arith.mulf %347, %346 : vector<32x128xf32>
    %349 = arith.addf %287, %348 : vector<32x128xf32>
    %c2 = arith.constant 2 : index
    %c0_149 = arith.constant 0 : index
    %c0_150 = arith.constant 0 : index
    %350 = vector.load %arg2[%c2, %c0_149, %c0_150] : memref<4x1x128xf32, #tpu.memory_space<vmem>>, vector<1x1x128xf32>
    %351 = vector.shape_cast %350 : vector<1x1x128xf32> to vector<1x128xf32>
    %c2_151 = arith.constant 2 : index
    %c0_152 = arith.constant 0 : index
    %c0_153 = arith.constant 0 : index
    %352 = vector.load %arg3[%c2_151, %c0_152, %c0_153] : memref<4x1x128xf32, #tpu.memory_space<vmem>>, vector<1x1x128xf32>
    %353 = vector.shape_cast %352 : vector<1x1x128xf32> to vector<1x128xf32>
    %cst_154 = arith.constant dense<0.000000e+00> : vector<32xf32>
    %354 = vector.multi_reduction <add>, %349, %cst_154 [1] : vector<32x128xf32> to vector<32xf32>
    %355 = vector.shape_cast %354 : vector<32xf32> to vector<32x1xf32>
    %cst_155 = arith.constant 3.125000e-02 : f32
    %356 = vector.broadcast %cst_155 : f32 to vector<32x1xf32>
    %357 = arith.mulf %355, %356 : vector<32x1xf32>
    %358 = vector.broadcast %357 : vector<32x1xf32> to vector<32x128xf32>
    %359 = arith.subf %349, %358 : vector<32x128xf32>
    %cst_156 = arith.constant 0.000000e+00 : f32
    %360 = vector.shape_cast %3 : vector<1x128xi1> to vector<1x128xi1>
    %361 = vector.broadcast %360 : vector<1x128xi1> to vector<32x128xi1>
    %362 = vector.broadcast %cst_156 : f32 to vector<32x128xf32>
    %363 = arith.select %361, %359, %362 : vector<32x128xi1>, vector<32x128xf32>
    %364 = arith.mulf %363, %363 : vector<32x128xf32>
    %cst_157 = arith.constant dense<0.000000e+00> : vector<32xf32>
    %365 = vector.multi_reduction <add>, %364, %cst_157 [1] : vector<32x128xf32> to vector<32xf32>
    %366 = vector.shape_cast %365 : vector<32xf32> to vector<32x1xf32>
    %cst_158 = arith.constant 3.125000e-02 : f32
    %367 = vector.broadcast %cst_158 : f32 to vector<32x1xf32>
    %368 = arith.mulf %366, %367 : vector<32x1xf32>
    %cst_159 = arith.constant 9.99999997E-7 : f32
    %369 = vector.broadcast %cst_159 : f32 to vector<32x1xf32>
    %370 = arith.addf %368, %369 : vector<32x1xf32>
    %371 = math.rsqrt %370 : vector<32x1xf32>
    %372 = vector.broadcast %371 : vector<32x1xf32> to vector<32x128xf32>
    %373 = arith.mulf %363, %372 : vector<32x128xf32>
    %374 = vector.broadcast %351 : vector<1x128xf32> to vector<32x128xf32>
    %375 = arith.mulf %373, %374 : vector<32x128xf32>
    %376 = vector.broadcast %353 : vector<1x128xf32> to vector<32x128xf32>
    %377 = arith.addf %375, %376 : vector<32x128xf32>
    %c2_160 = arith.constant 2 : index
    %c0_161 = arith.constant 0 : index
    %c0_162 = arith.constant 0 : index
    %378 = vector.load %arg4[%c2_160, %c0_161, %c0_162] : memref<4x128x384xbf16, #tpu.memory_space<vmem>>, vector<1x128x384xbf16>
    %379 = vector.shape_cast %378 : vector<1x128x384xbf16> to vector<128x384xbf16>
    %380 = arith.truncf %377 : vector<32x128xf32> to vector<32x128xbf16>
    %cst_163 = arith.constant dense<0.000000e+00> : vector<32x384xf32>
    %381 = tpu.matmul %380, %379, %cst_163 {dimension_numbers = #tpu.dot_dimension_numbers<[1], [0], [0], [1], [0, 0, 1, 1], [], []>} : vector<32x128xbf16>, vector<128x384xbf16>, vector<32x384xf32> -> vector<32x384xf32>
    %c2_164 = arith.constant 2 : index
    %c0_165 = arith.constant 0 : index
    %c0_166 = arith.constant 0 : index
    %382 = vector.load %arg5[%c2_164, %c0_165, %c0_166] : memref<4x1x384xf32, #tpu.memory_space<vmem>>, vector<1x1x384xf32>
    %383 = vector.shape_cast %382 : vector<1x1x384xf32> to vector<1x384xf32>
    %384 = vector.broadcast %383 : vector<1x384xf32> to vector<32x384xf32>
    %385 = arith.addf %381, %384 : vector<32x384xf32>
    %386 = vector.extract_strided_slice %385 {offsets = [0, 0], sizes = [32, 128], strides = [1, 1]} : vector<32x384xf32> to vector<32x128xf32>
    %387 = vector.extract_strided_slice %385 {offsets = [0, 128], sizes = [32, 128], strides = [1, 1]} : vector<32x384xf32> to vector<32x128xf32>
    %388 = vector.extract_strided_slice %385 {offsets = [0, 256], sizes = [32, 128], strides = [1, 1]} : vector<32x384xf32> to vector<32x128xf32>
    %389 = vector.broadcast %15 : vector<1x128xf32> to vector<32x128xf32>
    %390 = arith.mulf %387, %389 : vector<32x128xf32>
    %391 = arith.truncf %386 : vector<32x128xf32> to vector<32x128xbf16>
    %392 = arith.truncf %390 : vector<32x128xf32> to vector<32x128xbf16>
    %cst_167 = arith.constant dense<0.000000e+00> : vector<32x32xf32>
    %393 = tpu.matmul %391, %392, %cst_167 {dimension_numbers = #tpu.dot_dimension_numbers<[1], [1], [0], [0], [0, 0, 1, 0], [], []>} : vector<32x128xbf16>, vector<32x128xbf16>, vector<32x32xf32> -> vector<32x32xf32>
    %cst_168 = arith.constant -1.000000e+30 : f32
    %394 = vector.shape_cast %6 : vector<1x32xi1> to vector<1x32xi1>
    %395 = vector.broadcast %394 : vector<1x32xi1> to vector<32x32xi1>
    %396 = vector.broadcast %cst_168 : f32 to vector<32x32xf32>
    %397 = arith.select %395, %393, %396 : vector<32x32xi1>, vector<32x32xf32>
    %cst_169 = arith.constant dense<0xFF800000> : vector<32xf32>
    %398 = vector.multi_reduction <maximumf>, %397, %cst_169 [1] : vector<32x32xf32> to vector<32xf32>
    %399 = vector.shape_cast %398 : vector<32xf32> to vector<32x1xf32>
    %400 = vector.broadcast %399 : vector<32x1xf32> to vector<32x32xf32>
    %401 = arith.subf %397, %400 : vector<32x32xf32>
    %402 = math.exp %401 : vector<32x32xf32>
    %cst_170 = arith.constant dense<0.000000e+00> : vector<32xf32>
    %403 = vector.multi_reduction <add>, %402, %cst_170 [1] : vector<32x32xf32> to vector<32xf32>
    %404 = vector.shape_cast %403 : vector<32xf32> to vector<32x1xf32>
    %405 = tpu.reciprocal %404 {approx = true} : vector<32x1xf32> -> vector<32x1xf32>
    %406 = vector.broadcast %405 : vector<32x1xf32> to vector<32x32xf32>
    %407 = arith.mulf %402, %406 : vector<32x32xf32>
    %408 = vector.broadcast %15 : vector<1x128xf32> to vector<32x128xf32>
    %409 = arith.mulf %388, %408 : vector<32x128xf32>
    %410 = arith.truncf %407 : vector<32x32xf32> to vector<32x32xbf16>
    %411 = arith.truncf %409 : vector<32x128xf32> to vector<32x128xbf16>
    %cst_171 = arith.constant dense<0.000000e+00> : vector<32x128xf32>
    %412 = tpu.matmul %410, %411, %cst_171 {dimension_numbers = #tpu.dot_dimension_numbers<[1], [0], [0], [1], [0, 0, 1, 1], [], []>} : vector<32x32xbf16>, vector<32x128xbf16>, vector<32x128xf32> -> vector<32x128xf32>
    %413 = vector.broadcast %23 : vector<1x128xf32> to vector<32x128xf32>
    %414 = arith.mulf %387, %413 : vector<32x128xf32>
    %415 = arith.truncf %386 : vector<32x128xf32> to vector<32x128xbf16>
    %416 = arith.truncf %414 : vector<32x128xf32> to vector<32x128xbf16>
    %cst_172 = arith.constant dense<0.000000e+00> : vector<32x32xf32>
    %417 = tpu.matmul %415, %416, %cst_172 {dimension_numbers = #tpu.dot_dimension_numbers<[1], [1], [0], [0], [0, 0, 1, 0], [], []>} : vector<32x128xbf16>, vector<32x128xbf16>, vector<32x32xf32> -> vector<32x32xf32>
    %cst_173 = arith.constant -1.000000e+30 : f32
    %418 = vector.shape_cast %6 : vector<1x32xi1> to vector<1x32xi1>
    %419 = vector.broadcast %418 : vector<1x32xi1> to vector<32x32xi1>
    %420 = vector.broadcast %cst_173 : f32 to vector<32x32xf32>
    %421 = arith.select %419, %417, %420 : vector<32x32xi1>, vector<32x32xf32>
    %cst_174 = arith.constant dense<0xFF800000> : vector<32xf32>
    %422 = vector.multi_reduction <maximumf>, %421, %cst_174 [1] : vector<32x32xf32> to vector<32xf32>
    %423 = vector.shape_cast %422 : vector<32xf32> to vector<32x1xf32>
    %424 = vector.broadcast %423 : vector<32x1xf32> to vector<32x32xf32>
    %425 = arith.subf %421, %424 : vector<32x32xf32>
    %426 = math.exp %425 : vector<32x32xf32>
    %cst_175 = arith.constant dense<0.000000e+00> : vector<32xf32>
    %427 = vector.multi_reduction <add>, %426, %cst_175 [1] : vector<32x32xf32> to vector<32xf32>
    %428 = vector.shape_cast %427 : vector<32xf32> to vector<32x1xf32>
    %429 = tpu.reciprocal %428 {approx = true} : vector<32x1xf32> -> vector<32x1xf32>
    %430 = vector.broadcast %429 : vector<32x1xf32> to vector<32x32xf32>
    %431 = arith.mulf %426, %430 : vector<32x32xf32>
    %432 = vector.broadcast %23 : vector<1x128xf32> to vector<32x128xf32>
    %433 = arith.mulf %388, %432 : vector<32x128xf32>
    %434 = arith.truncf %431 : vector<32x32xf32> to vector<32x32xbf16>
    %435 = arith.truncf %433 : vector<32x128xf32> to vector<32x128xbf16>
    %cst_176 = arith.constant dense<0.000000e+00> : vector<32x128xf32>
    %436 = tpu.matmul %434, %435, %cst_176 {dimension_numbers = #tpu.dot_dimension_numbers<[1], [0], [0], [1], [0, 0, 1, 1], [], []>} : vector<32x32xbf16>, vector<32x128xbf16>, vector<32x128xf32> -> vector<32x128xf32>
    %437 = arith.addf %412, %436 : vector<32x128xf32>
    %c2_177 = arith.constant 2 : index
    %c0_178 = arith.constant 0 : index
    %c0_179 = arith.constant 0 : index
    %438 = vector.load %arg6[%c2_177, %c0_178, %c0_179] : memref<4x128x128xbf16, #tpu.memory_space<vmem>>, vector<1x128x128xbf16>
    %439 = vector.shape_cast %438 : vector<1x128x128xbf16> to vector<128x128xbf16>
    %440 = arith.truncf %437 : vector<32x128xf32> to vector<32x128xbf16>
    %cst_180 = arith.constant dense<0.000000e+00> : vector<32x128xf32>
    %441 = tpu.matmul %440, %439, %cst_180 {dimension_numbers = #tpu.dot_dimension_numbers<[1], [0], [0], [1], [0, 0, 1, 1], [], []>} : vector<32x128xbf16>, vector<128x128xbf16>, vector<32x128xf32> -> vector<32x128xf32>
    %c2_181 = arith.constant 2 : index
    %c0_182 = arith.constant 0 : index
    %c0_183 = arith.constant 0 : index
    %442 = vector.load %arg7[%c2_181, %c0_182, %c0_183] : memref<4x1x128xf32, #tpu.memory_space<vmem>>, vector<1x1x128xf32>
    %443 = vector.shape_cast %442 : vector<1x1x128xf32> to vector<1x128xf32>
    %444 = vector.broadcast %443 : vector<1x128xf32> to vector<32x128xf32>
    %445 = arith.addf %441, %444 : vector<32x128xf32>
    %c2_184 = arith.constant 2 : index
    %c0_185 = arith.constant 0 : index
    %c0_186 = arith.constant 0 : index
    %446 = vector.load %arg8[%c2_184, %c0_185, %c0_186] : memref<4x1x128xf32, #tpu.memory_space<vmem>>, vector<1x1x128xf32>
    %447 = vector.shape_cast %446 : vector<1x1x128xf32> to vector<1x128xf32>
    %448 = vector.broadcast %447 : vector<1x128xf32> to vector<32x128xf32>
    %449 = arith.mulf %448, %445 : vector<32x128xf32>
    %450 = arith.addf %349, %449 : vector<32x128xf32>
    %c2_187 = arith.constant 2 : index
    %c0_188 = arith.constant 0 : index
    %c0_189 = arith.constant 0 : index
    %451 = vector.load %arg9[%c2_187, %c0_188, %c0_189] : memref<4x1x128xf32, #tpu.memory_space<vmem>>, vector<1x1x128xf32>
    %452 = vector.shape_cast %451 : vector<1x1x128xf32> to vector<1x128xf32>
    %c2_190 = arith.constant 2 : index
    %c0_191 = arith.constant 0 : index
    %c0_192 = arith.constant 0 : index
    %453 = vector.load %arg10[%c2_190, %c0_191, %c0_192] : memref<4x1x128xf32, #tpu.memory_space<vmem>>, vector<1x1x128xf32>
    %454 = vector.shape_cast %453 : vector<1x1x128xf32> to vector<1x128xf32>
    %cst_193 = arith.constant dense<0.000000e+00> : vector<32xf32>
    %455 = vector.multi_reduction <add>, %450, %cst_193 [1] : vector<32x128xf32> to vector<32xf32>
    %456 = vector.shape_cast %455 : vector<32xf32> to vector<32x1xf32>
    %cst_194 = arith.constant 3.125000e-02 : f32
    %457 = vector.broadcast %cst_194 : f32 to vector<32x1xf32>
    %458 = arith.mulf %456, %457 : vector<32x1xf32>
    %459 = vector.broadcast %458 : vector<32x1xf32> to vector<32x128xf32>
    %460 = arith.subf %450, %459 : vector<32x128xf32>
    %cst_195 = arith.constant 0.000000e+00 : f32
    %461 = vector.shape_cast %3 : vector<1x128xi1> to vector<1x128xi1>
    %462 = vector.broadcast %461 : vector<1x128xi1> to vector<32x128xi1>
    %463 = vector.broadcast %cst_195 : f32 to vector<32x128xf32>
    %464 = arith.select %462, %460, %463 : vector<32x128xi1>, vector<32x128xf32>
    %465 = arith.mulf %464, %464 : vector<32x128xf32>
    %cst_196 = arith.constant dense<0.000000e+00> : vector<32xf32>
    %466 = vector.multi_reduction <add>, %465, %cst_196 [1] : vector<32x128xf32> to vector<32xf32>
    %467 = vector.shape_cast %466 : vector<32xf32> to vector<32x1xf32>
    %cst_197 = arith.constant 3.125000e-02 : f32
    %468 = vector.broadcast %cst_197 : f32 to vector<32x1xf32>
    %469 = arith.mulf %467, %468 : vector<32x1xf32>
    %cst_198 = arith.constant 9.99999997E-7 : f32
    %470 = vector.broadcast %cst_198 : f32 to vector<32x1xf32>
    %471 = arith.addf %469, %470 : vector<32x1xf32>
    %472 = math.rsqrt %471 : vector<32x1xf32>
    %473 = vector.broadcast %472 : vector<32x1xf32> to vector<32x128xf32>
    %474 = arith.mulf %464, %473 : vector<32x128xf32>
    %475 = vector.broadcast %452 : vector<1x128xf32> to vector<32x128xf32>
    %476 = arith.mulf %474, %475 : vector<32x128xf32>
    %477 = vector.broadcast %454 : vector<1x128xf32> to vector<32x128xf32>
    %478 = arith.addf %476, %477 : vector<32x128xf32>
    %c2_199 = arith.constant 2 : index
    %c0_200 = arith.constant 0 : index
    %c0_201 = arith.constant 0 : index
    %479 = vector.load %arg11[%c2_199, %c0_200, %c0_201] : memref<4x128x128xbf16, #tpu.memory_space<vmem>>, vector<1x128x128xbf16>
    %480 = vector.shape_cast %479 : vector<1x128x128xbf16> to vector<128x128xbf16>
    %481 = arith.truncf %478 : vector<32x128xf32> to vector<32x128xbf16>
    %cst_202 = arith.constant dense<0.000000e+00> : vector<32x128xf32>
    %482 = tpu.matmul %481, %480, %cst_202 {dimension_numbers = #tpu.dot_dimension_numbers<[1], [0], [0], [1], [0, 0, 1, 1], [], []>} : vector<32x128xbf16>, vector<128x128xbf16>, vector<32x128xf32> -> vector<32x128xf32>
    %c2_203 = arith.constant 2 : index
    %c0_204 = arith.constant 0 : index
    %c0_205 = arith.constant 0 : index
    %483 = vector.load %arg12[%c2_203, %c0_204, %c0_205] : memref<4x1x128xf32, #tpu.memory_space<vmem>>, vector<1x1x128xf32>
    %484 = vector.shape_cast %483 : vector<1x1x128xf32> to vector<1x128xf32>
    %485 = vector.broadcast %484 : vector<1x128xf32> to vector<32x128xf32>
    %486 = arith.addf %482, %485 : vector<32x128xf32>
    %cst_206 = arith.constant 5.000000e-01 : f32
    %487 = vector.broadcast %cst_206 : f32 to vector<32x128xf32>
    %488 = arith.mulf %487, %486 : vector<32x128xf32>
    %cst_207 = arith.constant 4.471500e-02 : f32
    %489 = vector.broadcast %cst_207 : f32 to vector<32x128xf32>
    %490 = arith.mulf %489, %486 : vector<32x128xf32>
    %491 = arith.mulf %490, %486 : vector<32x128xf32>
    %492 = arith.mulf %491, %486 : vector<32x128xf32>
    %493 = arith.addf %486, %492 : vector<32x128xf32>
    %cst_208 = arith.constant 0.797884583 : f32
    %494 = vector.broadcast %cst_208 : f32 to vector<32x128xf32>
    %495 = arith.mulf %494, %493 : vector<32x128xf32>
    %496 = math.tanh %495 : vector<32x128xf32>
    %cst_209 = arith.constant 1.000000e+00 : f32
    %497 = vector.broadcast %cst_209 : f32 to vector<32x128xf32>
    %498 = arith.addf %497, %496 : vector<32x128xf32>
    %499 = arith.mulf %488, %498 : vector<32x128xf32>
    %c2_210 = arith.constant 2 : index
    %c0_211 = arith.constant 0 : index
    %c0_212 = arith.constant 0 : index
    %500 = vector.load %arg15[%c2_210, %c0_211, %c0_212] : memref<4x1x128xf32, #tpu.memory_space<vmem>>, vector<1x1x128xf32>
    %501 = vector.shape_cast %500 : vector<1x1x128xf32> to vector<1x128xf32>
    %c2_213 = arith.constant 2 : index
    %c0_214 = arith.constant 0 : index
    %c0_215 = arith.constant 0 : index
    %502 = vector.load %arg13[%c2_213, %c0_214, %c0_215] : memref<4x128x128xbf16, #tpu.memory_space<vmem>>, vector<1x128x128xbf16>
    %503 = vector.shape_cast %502 : vector<1x128x128xbf16> to vector<128x128xbf16>
    %504 = arith.truncf %499 : vector<32x128xf32> to vector<32x128xbf16>
    %cst_216 = arith.constant dense<0.000000e+00> : vector<32x128xf32>
    %505 = tpu.matmul %504, %503, %cst_216 {dimension_numbers = #tpu.dot_dimension_numbers<[1], [0], [0], [1], [0, 0, 1, 1], [], []>} : vector<32x128xbf16>, vector<128x128xbf16>, vector<32x128xf32> -> vector<32x128xf32>
    %c2_217 = arith.constant 2 : index
    %c0_218 = arith.constant 0 : index
    %c0_219 = arith.constant 0 : index
    %506 = vector.load %arg14[%c2_217, %c0_218, %c0_219] : memref<4x1x128xf32, #tpu.memory_space<vmem>>, vector<1x1x128xf32>
    %507 = vector.shape_cast %506 : vector<1x1x128xf32> to vector<1x128xf32>
    %508 = vector.broadcast %507 : vector<1x128xf32> to vector<32x128xf32>
    %509 = arith.addf %505, %508 : vector<32x128xf32>
    %510 = vector.broadcast %501 : vector<1x128xf32> to vector<32x128xf32>
    %511 = arith.mulf %510, %509 : vector<32x128xf32>
    %512 = arith.addf %450, %511 : vector<32x128xf32>
    %c3 = arith.constant 3 : index
    %c0_220 = arith.constant 0 : index
    %c0_221 = arith.constant 0 : index
    %513 = vector.load %arg2[%c3, %c0_220, %c0_221] : memref<4x1x128xf32, #tpu.memory_space<vmem>>, vector<1x1x128xf32>
    %514 = vector.shape_cast %513 : vector<1x1x128xf32> to vector<1x128xf32>
    %c3_222 = arith.constant 3 : index
    %c0_223 = arith.constant 0 : index
    %c0_224 = arith.constant 0 : index
    %515 = vector.load %arg3[%c3_222, %c0_223, %c0_224] : memref<4x1x128xf32, #tpu.memory_space<vmem>>, vector<1x1x128xf32>
    %516 = vector.shape_cast %515 : vector<1x1x128xf32> to vector<1x128xf32>
    %cst_225 = arith.constant dense<0.000000e+00> : vector<32xf32>
    %517 = vector.multi_reduction <add>, %512, %cst_225 [1] : vector<32x128xf32> to vector<32xf32>
    %518 = vector.shape_cast %517 : vector<32xf32> to vector<32x1xf32>
    %cst_226 = arith.constant 3.125000e-02 : f32
    %519 = vector.broadcast %cst_226 : f32 to vector<32x1xf32>
    %520 = arith.mulf %518, %519 : vector<32x1xf32>
    %521 = vector.broadcast %520 : vector<32x1xf32> to vector<32x128xf32>
    %522 = arith.subf %512, %521 : vector<32x128xf32>
    %cst_227 = arith.constant 0.000000e+00 : f32
    %523 = vector.shape_cast %3 : vector<1x128xi1> to vector<1x128xi1>
    %524 = vector.broadcast %523 : vector<1x128xi1> to vector<32x128xi1>
    %525 = vector.broadcast %cst_227 : f32 to vector<32x128xf32>
    %526 = arith.select %524, %522, %525 : vector<32x128xi1>, vector<32x128xf32>
    %527 = arith.mulf %526, %526 : vector<32x128xf32>
    %cst_228 = arith.constant dense<0.000000e+00> : vector<32xf32>
    %528 = vector.multi_reduction <add>, %527, %cst_228 [1] : vector<32x128xf32> to vector<32xf32>
    %529 = vector.shape_cast %528 : vector<32xf32> to vector<32x1xf32>
    %cst_229 = arith.constant 3.125000e-02 : f32
    %530 = vector.broadcast %cst_229 : f32 to vector<32x1xf32>
    %531 = arith.mulf %529, %530 : vector<32x1xf32>
    %cst_230 = arith.constant 9.99999997E-7 : f32
    %532 = vector.broadcast %cst_230 : f32 to vector<32x1xf32>
    %533 = arith.addf %531, %532 : vector<32x1xf32>
    %534 = math.rsqrt %533 : vector<32x1xf32>
    %535 = vector.broadcast %534 : vector<32x1xf32> to vector<32x128xf32>
    %536 = arith.mulf %526, %535 : vector<32x128xf32>
    %537 = vector.broadcast %514 : vector<1x128xf32> to vector<32x128xf32>
    %538 = arith.mulf %536, %537 : vector<32x128xf32>
    %539 = vector.broadcast %516 : vector<1x128xf32> to vector<32x128xf32>
    %540 = arith.addf %538, %539 : vector<32x128xf32>
    %c3_231 = arith.constant 3 : index
    %c0_232 = arith.constant 0 : index
    %c0_233 = arith.constant 0 : index
    %541 = vector.load %arg4[%c3_231, %c0_232, %c0_233] : memref<4x128x384xbf16, #tpu.memory_space<vmem>>, vector<1x128x384xbf16>
    %542 = vector.shape_cast %541 : vector<1x128x384xbf16> to vector<128x384xbf16>
    %543 = arith.truncf %540 : vector<32x128xf32> to vector<32x128xbf16>
    %cst_234 = arith.constant dense<0.000000e+00> : vector<32x384xf32>
    %544 = tpu.matmul %543, %542, %cst_234 {dimension_numbers = #tpu.dot_dimension_numbers<[1], [0], [0], [1], [0, 0, 1, 1], [], []>} : vector<32x128xbf16>, vector<128x384xbf16>, vector<32x384xf32> -> vector<32x384xf32>
    %c3_235 = arith.constant 3 : index
    %c0_236 = arith.constant 0 : index
    %c0_237 = arith.constant 0 : index
    %545 = vector.load %arg5[%c3_235, %c0_236, %c0_237] : memref<4x1x384xf32, #tpu.memory_space<vmem>>, vector<1x1x384xf32>
    %546 = vector.shape_cast %545 : vector<1x1x384xf32> to vector<1x384xf32>
    %547 = vector.broadcast %546 : vector<1x384xf32> to vector<32x384xf32>
    %548 = arith.addf %544, %547 : vector<32x384xf32>
    %549 = vector.extract_strided_slice %548 {offsets = [0, 0], sizes = [32, 128], strides = [1, 1]} : vector<32x384xf32> to vector<32x128xf32>
    %550 = vector.extract_strided_slice %548 {offsets = [0, 128], sizes = [32, 128], strides = [1, 1]} : vector<32x384xf32> to vector<32x128xf32>
    %551 = vector.extract_strided_slice %548 {offsets = [0, 256], sizes = [32, 128], strides = [1, 1]} : vector<32x384xf32> to vector<32x128xf32>
    %552 = vector.broadcast %15 : vector<1x128xf32> to vector<32x128xf32>
    %553 = arith.mulf %550, %552 : vector<32x128xf32>
    %554 = arith.truncf %549 : vector<32x128xf32> to vector<32x128xbf16>
    %555 = arith.truncf %553 : vector<32x128xf32> to vector<32x128xbf16>
    %cst_238 = arith.constant dense<0.000000e+00> : vector<32x32xf32>
    %556 = tpu.matmul %554, %555, %cst_238 {dimension_numbers = #tpu.dot_dimension_numbers<[1], [1], [0], [0], [0, 0, 1, 0], [], []>} : vector<32x128xbf16>, vector<32x128xbf16>, vector<32x32xf32> -> vector<32x32xf32>
    %cst_239 = arith.constant -1.000000e+30 : f32
    %557 = vector.shape_cast %6 : vector<1x32xi1> to vector<1x32xi1>
    %558 = vector.broadcast %557 : vector<1x32xi1> to vector<32x32xi1>
    %559 = vector.broadcast %cst_239 : f32 to vector<32x32xf32>
    %560 = arith.select %558, %556, %559 : vector<32x32xi1>, vector<32x32xf32>
    %cst_240 = arith.constant dense<0xFF800000> : vector<32xf32>
    %561 = vector.multi_reduction <maximumf>, %560, %cst_240 [1] : vector<32x32xf32> to vector<32xf32>
    %562 = vector.shape_cast %561 : vector<32xf32> to vector<32x1xf32>
    %563 = vector.broadcast %562 : vector<32x1xf32> to vector<32x32xf32>
    %564 = arith.subf %560, %563 : vector<32x32xf32>
    %565 = math.exp %564 : vector<32x32xf32>
    %cst_241 = arith.constant dense<0.000000e+00> : vector<32xf32>
    %566 = vector.multi_reduction <add>, %565, %cst_241 [1] : vector<32x32xf32> to vector<32xf32>
    %567 = vector.shape_cast %566 : vector<32xf32> to vector<32x1xf32>
    %568 = tpu.reciprocal %567 {approx = true} : vector<32x1xf32> -> vector<32x1xf32>
    %569 = vector.broadcast %568 : vector<32x1xf32> to vector<32x32xf32>
    %570 = arith.mulf %565, %569 : vector<32x32xf32>
    %571 = vector.broadcast %15 : vector<1x128xf32> to vector<32x128xf32>
    %572 = arith.mulf %551, %571 : vector<32x128xf32>
    %573 = arith.truncf %570 : vector<32x32xf32> to vector<32x32xbf16>
    %574 = arith.truncf %572 : vector<32x128xf32> to vector<32x128xbf16>
    %cst_242 = arith.constant dense<0.000000e+00> : vector<32x128xf32>
    %575 = tpu.matmul %573, %574, %cst_242 {dimension_numbers = #tpu.dot_dimension_numbers<[1], [0], [0], [1], [0, 0, 1, 1], [], []>} : vector<32x32xbf16>, vector<32x128xbf16>, vector<32x128xf32> -> vector<32x128xf32>
    %576 = vector.broadcast %23 : vector<1x128xf32> to vector<32x128xf32>
    %577 = arith.mulf %550, %576 : vector<32x128xf32>
    %578 = arith.truncf %549 : vector<32x128xf32> to vector<32x128xbf16>
    %579 = arith.truncf %577 : vector<32x128xf32> to vector<32x128xbf16>
    %cst_243 = arith.constant dense<0.000000e+00> : vector<32x32xf32>
    %580 = tpu.matmul %578, %579, %cst_243 {dimension_numbers = #tpu.dot_dimension_numbers<[1], [1], [0], [0], [0, 0, 1, 0], [], []>} : vector<32x128xbf16>, vector<32x128xbf16>, vector<32x32xf32> -> vector<32x32xf32>
    %cst_244 = arith.constant -1.000000e+30 : f32
    %581 = vector.shape_cast %6 : vector<1x32xi1> to vector<1x32xi1>
    %582 = vector.broadcast %581 : vector<1x32xi1> to vector<32x32xi1>
    %583 = vector.broadcast %cst_244 : f32 to vector<32x32xf32>
    %584 = arith.select %582, %580, %583 : vector<32x32xi1>, vector<32x32xf32>
    %cst_245 = arith.constant dense<0xFF800000> : vector<32xf32>
    %585 = vector.multi_reduction <maximumf>, %584, %cst_245 [1] : vector<32x32xf32> to vector<32xf32>
    %586 = vector.shape_cast %585 : vector<32xf32> to vector<32x1xf32>
    %587 = vector.broadcast %586 : vector<32x1xf32> to vector<32x32xf32>
    %588 = arith.subf %584, %587 : vector<32x32xf32>
    %589 = math.exp %588 : vector<32x32xf32>
    %cst_246 = arith.constant dense<0.000000e+00> : vector<32xf32>
    %590 = vector.multi_reduction <add>, %589, %cst_246 [1] : vector<32x32xf32> to vector<32xf32>
    %591 = vector.shape_cast %590 : vector<32xf32> to vector<32x1xf32>
    %592 = tpu.reciprocal %591 {approx = true} : vector<32x1xf32> -> vector<32x1xf32>
    %593 = vector.broadcast %592 : vector<32x1xf32> to vector<32x32xf32>
    %594 = arith.mulf %589, %593 : vector<32x32xf32>
    %595 = vector.broadcast %23 : vector<1x128xf32> to vector<32x128xf32>
    %596 = arith.mulf %551, %595 : vector<32x128xf32>
    %597 = arith.truncf %594 : vector<32x32xf32> to vector<32x32xbf16>
    %598 = arith.truncf %596 : vector<32x128xf32> to vector<32x128xbf16>
    %cst_247 = arith.constant dense<0.000000e+00> : vector<32x128xf32>
    %599 = tpu.matmul %597, %598, %cst_247 {dimension_numbers = #tpu.dot_dimension_numbers<[1], [0], [0], [1], [0, 0, 1, 1], [], []>} : vector<32x32xbf16>, vector<32x128xbf16>, vector<32x128xf32> -> vector<32x128xf32>
    %600 = arith.addf %575, %599 : vector<32x128xf32>
    %c3_248 = arith.constant 3 : index
    %c0_249 = arith.constant 0 : index
    %c0_250 = arith.constant 0 : index
    %601 = vector.load %arg6[%c3_248, %c0_249, %c0_250] : memref<4x128x128xbf16, #tpu.memory_space<vmem>>, vector<1x128x128xbf16>
    %602 = vector.shape_cast %601 : vector<1x128x128xbf16> to vector<128x128xbf16>
    %603 = arith.truncf %600 : vector<32x128xf32> to vector<32x128xbf16>
    %cst_251 = arith.constant dense<0.000000e+00> : vector<32x128xf32>
    %604 = tpu.matmul %603, %602, %cst_251 {dimension_numbers = #tpu.dot_dimension_numbers<[1], [0], [0], [1], [0, 0, 1, 1], [], []>} : vector<32x128xbf16>, vector<128x128xbf16>, vector<32x128xf32> -> vector<32x128xf32>
    %c3_252 = arith.constant 3 : index
    %c0_253 = arith.constant 0 : index
    %c0_254 = arith.constant 0 : index
    %605 = vector.load %arg7[%c3_252, %c0_253, %c0_254] : memref<4x1x128xf32, #tpu.memory_space<vmem>>, vector<1x1x128xf32>
    %606 = vector.shape_cast %605 : vector<1x1x128xf32> to vector<1x128xf32>
    %607 = vector.broadcast %606 : vector<1x128xf32> to vector<32x128xf32>
    %608 = arith.addf %604, %607 : vector<32x128xf32>
    %c3_255 = arith.constant 3 : index
    %c0_256 = arith.constant 0 : index
    %c0_257 = arith.constant 0 : index
    %609 = vector.load %arg8[%c3_255, %c0_256, %c0_257] : memref<4x1x128xf32, #tpu.memory_space<vmem>>, vector<1x1x128xf32>
    %610 = vector.shape_cast %609 : vector<1x1x128xf32> to vector<1x128xf32>
    %611 = vector.broadcast %610 : vector<1x128xf32> to vector<32x128xf32>
    %612 = arith.mulf %611, %608 : vector<32x128xf32>
    %613 = arith.addf %512, %612 : vector<32x128xf32>
    %c3_258 = arith.constant 3 : index
    %c0_259 = arith.constant 0 : index
    %c0_260 = arith.constant 0 : index
    %614 = vector.load %arg9[%c3_258, %c0_259, %c0_260] : memref<4x1x128xf32, #tpu.memory_space<vmem>>, vector<1x1x128xf32>
    %615 = vector.shape_cast %614 : vector<1x1x128xf32> to vector<1x128xf32>
    %c3_261 = arith.constant 3 : index
    %c0_262 = arith.constant 0 : index
    %c0_263 = arith.constant 0 : index
    %616 = vector.load %arg10[%c3_261, %c0_262, %c0_263] : memref<4x1x128xf32, #tpu.memory_space<vmem>>, vector<1x1x128xf32>
    %617 = vector.shape_cast %616 : vector<1x1x128xf32> to vector<1x128xf32>
    %cst_264 = arith.constant dense<0.000000e+00> : vector<32xf32>
    %618 = vector.multi_reduction <add>, %613, %cst_264 [1] : vector<32x128xf32> to vector<32xf32>
    %619 = vector.shape_cast %618 : vector<32xf32> to vector<32x1xf32>
    %cst_265 = arith.constant 3.125000e-02 : f32
    %620 = vector.broadcast %cst_265 : f32 to vector<32x1xf32>
    %621 = arith.mulf %619, %620 : vector<32x1xf32>
    %622 = vector.broadcast %621 : vector<32x1xf32> to vector<32x128xf32>
    %623 = arith.subf %613, %622 : vector<32x128xf32>
    %cst_266 = arith.constant 0.000000e+00 : f32
    %624 = vector.shape_cast %3 : vector<1x128xi1> to vector<1x128xi1>
    %625 = vector.broadcast %624 : vector<1x128xi1> to vector<32x128xi1>
    %626 = vector.broadcast %cst_266 : f32 to vector<32x128xf32>
    %627 = arith.select %625, %623, %626 : vector<32x128xi1>, vector<32x128xf32>
    %628 = arith.mulf %627, %627 : vector<32x128xf32>
    %cst_267 = arith.constant dense<0.000000e+00> : vector<32xf32>
    %629 = vector.multi_reduction <add>, %628, %cst_267 [1] : vector<32x128xf32> to vector<32xf32>
    %630 = vector.shape_cast %629 : vector<32xf32> to vector<32x1xf32>
    %cst_268 = arith.constant 3.125000e-02 : f32
    %631 = vector.broadcast %cst_268 : f32 to vector<32x1xf32>
    %632 = arith.mulf %630, %631 : vector<32x1xf32>
    %cst_269 = arith.constant 9.99999997E-7 : f32
    %633 = vector.broadcast %cst_269 : f32 to vector<32x1xf32>
    %634 = arith.addf %632, %633 : vector<32x1xf32>
    %635 = math.rsqrt %634 : vector<32x1xf32>
    %636 = vector.broadcast %635 : vector<32x1xf32> to vector<32x128xf32>
    %637 = arith.mulf %627, %636 : vector<32x128xf32>
    %638 = vector.broadcast %615 : vector<1x128xf32> to vector<32x128xf32>
    %639 = arith.mulf %637, %638 : vector<32x128xf32>
    %640 = vector.broadcast %617 : vector<1x128xf32> to vector<32x128xf32>
    %641 = arith.addf %639, %640 : vector<32x128xf32>
    %c3_270 = arith.constant 3 : index
    %c0_271 = arith.constant 0 : index
    %c0_272 = arith.constant 0 : index
    %642 = vector.load %arg11[%c3_270, %c0_271, %c0_272] : memref<4x128x128xbf16, #tpu.memory_space<vmem>>, vector<1x128x128xbf16>
    %643 = vector.shape_cast %642 : vector<1x128x128xbf16> to vector<128x128xbf16>
    %644 = arith.truncf %641 : vector<32x128xf32> to vector<32x128xbf16>
    %cst_273 = arith.constant dense<0.000000e+00> : vector<32x128xf32>
    %645 = tpu.matmul %644, %643, %cst_273 {dimension_numbers = #tpu.dot_dimension_numbers<[1], [0], [0], [1], [0, 0, 1, 1], [], []>} : vector<32x128xbf16>, vector<128x128xbf16>, vector<32x128xf32> -> vector<32x128xf32>
    %c3_274 = arith.constant 3 : index
    %c0_275 = arith.constant 0 : index
    %c0_276 = arith.constant 0 : index
    %646 = vector.load %arg12[%c3_274, %c0_275, %c0_276] : memref<4x1x128xf32, #tpu.memory_space<vmem>>, vector<1x1x128xf32>
    %647 = vector.shape_cast %646 : vector<1x1x128xf32> to vector<1x128xf32>
    %648 = vector.broadcast %647 : vector<1x128xf32> to vector<32x128xf32>
    %649 = arith.addf %645, %648 : vector<32x128xf32>
    %cst_277 = arith.constant 5.000000e-01 : f32
    %650 = vector.broadcast %cst_277 : f32 to vector<32x128xf32>
    %651 = arith.mulf %650, %649 : vector<32x128xf32>
    %cst_278 = arith.constant 4.471500e-02 : f32
    %652 = vector.broadcast %cst_278 : f32 to vector<32x128xf32>
    %653 = arith.mulf %652, %649 : vector<32x128xf32>
    %654 = arith.mulf %653, %649 : vector<32x128xf32>
    %655 = arith.mulf %654, %649 : vector<32x128xf32>
    %656 = arith.addf %649, %655 : vector<32x128xf32>
    %cst_279 = arith.constant 0.797884583 : f32
    %657 = vector.broadcast %cst_279 : f32 to vector<32x128xf32>
    %658 = arith.mulf %657, %656 : vector<32x128xf32>
    %659 = math.tanh %658 : vector<32x128xf32>
    %cst_280 = arith.constant 1.000000e+00 : f32
    %660 = vector.broadcast %cst_280 : f32 to vector<32x128xf32>
    %661 = arith.addf %660, %659 : vector<32x128xf32>
    %662 = arith.mulf %651, %661 : vector<32x128xf32>
    %c3_281 = arith.constant 3 : index
    %c0_282 = arith.constant 0 : index
    %c0_283 = arith.constant 0 : index
    %663 = vector.load %arg15[%c3_281, %c0_282, %c0_283] : memref<4x1x128xf32, #tpu.memory_space<vmem>>, vector<1x1x128xf32>
    %664 = vector.shape_cast %663 : vector<1x1x128xf32> to vector<1x128xf32>
    %c3_284 = arith.constant 3 : index
    %c0_285 = arith.constant 0 : index
    %c0_286 = arith.constant 0 : index
    %665 = vector.load %arg13[%c3_284, %c0_285, %c0_286] : memref<4x128x128xbf16, #tpu.memory_space<vmem>>, vector<1x128x128xbf16>
    %666 = vector.shape_cast %665 : vector<1x128x128xbf16> to vector<128x128xbf16>
    %667 = arith.truncf %662 : vector<32x128xf32> to vector<32x128xbf16>
    %cst_287 = arith.constant dense<0.000000e+00> : vector<32x128xf32>
    %668 = tpu.matmul %667, %666, %cst_287 {dimension_numbers = #tpu.dot_dimension_numbers<[1], [0], [0], [1], [0, 0, 1, 1], [], []>} : vector<32x128xbf16>, vector<128x128xbf16>, vector<32x128xf32> -> vector<32x128xf32>
    %c3_288 = arith.constant 3 : index
    %c0_289 = arith.constant 0 : index
    %c0_290 = arith.constant 0 : index
    %669 = vector.load %arg14[%c3_288, %c0_289, %c0_290] : memref<4x1x128xf32, #tpu.memory_space<vmem>>, vector<1x1x128xf32>
    %670 = vector.shape_cast %669 : vector<1x1x128xf32> to vector<1x128xf32>
    %671 = vector.broadcast %670 : vector<1x128xf32> to vector<32x128xf32>
    %672 = arith.addf %668, %671 : vector<32x128xf32>
    %673 = vector.broadcast %664 : vector<1x128xf32> to vector<32x128xf32>
    %674 = arith.mulf %673, %672 : vector<32x128xf32>
    %675 = arith.addf %613, %674 : vector<32x128xf32>
    %c0_291 = arith.constant 0 : index
    %c0_292 = arith.constant 0 : index
    %676 = vector.load %arg16[%c0_291, %c0_292] : memref<32x128xf32, #tpu.memory_space<vmem>>, vector<32x128xf32>
    tpu.vector_store %arg16[%c0_291, %c0_292], %675 {strides = array<i32>} : memref<32x128xf32, #tpu.memory_space<vmem>>, vector<32x128xf32>,
    return
  }
  func.func @transform_0(%arg0: i32) -> (i32, i32) {
    %c0_i32 = arith.constant 0 : i32
    %c0_i32_0 = arith.constant 0 : i32
    return %arg0, %c0_i32 : i32, i32
  }
  func.func @transform_1(%arg0: i32) -> (i32, i32, i32) {
    %c0_i32 = arith.constant 0 : i32
    %c0_i32_0 = arith.constant 0 : i32
    %c0_i32_1 = arith.constant 0 : i32
    %c0_i32_2 = arith.constant 0 : i32
    return %c0_i32, %c0_i32_0, %c0_i32_1 : i32, i32, i32
  }
  func.func @transform_2(%arg0: i32) -> (i32, i32, i32) {
    %c0_i32 = arith.constant 0 : i32
    %c0_i32_0 = arith.constant 0 : i32
    %c0_i32_1 = arith.constant 0 : i32
    %c0_i32_2 = arith.constant 0 : i32
    return %c0_i32, %c0_i32_0, %c0_i32_1 : i32, i32, i32
  }
  func.func @transform_3(%arg0: i32) -> (i32, i32, i32) {
    %c0_i32 = arith.constant 0 : i32
    %c0_i32_0 = arith.constant 0 : i32
    %c0_i32_1 = arith.constant 0 : i32
    %c0_i32_2 = arith.constant 0 : i32
    return %c0_i32, %c0_i32_0, %c0_i32_1 : i32, i32, i32
  }
  func.func @transform_4(%arg0: i32) -> (i32, i32, i32) {
    %c0_i32 = arith.constant 0 : i32
    %c0_i32_0 = arith.constant 0 : i32
    %c0_i32_1 = arith.constant 0 : i32
    %c0_i32_2 = arith.constant 0 : i32
    return %c0_i32, %c0_i32_0, %c0_i32_1 : i32, i32, i32
  }
  func.func @transform_5(%arg0: i32) -> (i32, i32, i32) {
    %c0_i32 = arith.constant 0 : i32
    %c0_i32_0 = arith.constant 0 : i32
    %c0_i32_1 = arith.constant 0 : i32
    %c0_i32_2 = arith.constant 0 : i32
    return %c0_i32, %c0_i32_0, %c0_i32_1 : i32, i32, i32
  }
  func.func @transform_6(%arg0: i32) -> (i32, i32, i32) {
    %c0_i32 = arith.constant 0 : i32
    %c0_i32_0 = arith.constant 0 : i32
    %c0_i32_1 = arith.constant 0 : i32
    %c0_i32_2 = arith.constant 0 : i32
    return %c0_i32, %c0_i32_0, %c0_i32_1 : i32, i32, i32
  }
  func.func @transform_7(%arg0: i32) -> (i32, i32, i32) {
    %c0_i32 = arith.constant 0 : i32
    %c0_i32_0 = arith.constant 0 : i32
    %c0_i32_1 = arith.constant 0 : i32
    %c0_i32_2 = arith.constant 0 : i32
    return %c0_i32, %c0_i32_0, %c0_i32_1 : i32, i32, i32
  }
  func.func @transform_8(%arg0: i32) -> (i32, i32, i32) {
    %c0_i32 = arith.constant 0 : i32
    %c0_i32_0 = arith.constant 0 : i32
    %c0_i32_1 = arith.constant 0 : i32
    %c0_i32_2 = arith.constant 0 : i32
    return %c0_i32, %c0_i32_0, %c0_i32_1 : i32, i32, i32
  }
  func.func @transform_9(%arg0: i32) -> (i32, i32, i32) {
    %c0_i32 = arith.constant 0 : i32
    %c0_i32_0 = arith.constant 0 : i32
    %c0_i32_1 = arith.constant 0 : i32
    %c0_i32_2 = arith.constant 0 : i32
    return %c0_i32, %c0_i32_0, %c0_i32_1 : i32, i32, i32
  }
  func.func @transform_10(%arg0: i32) -> (i32, i32, i32) {
    %c0_i32 = arith.constant 0 : i32
    %c0_i32_0 = arith.constant 0 : i32
    %c0_i32_1 = arith.constant 0 : i32
    %c0_i32_2 = arith.constant 0 : i32
    return %c0_i32, %c0_i32_0, %c0_i32_1 : i32, i32, i32
  }
  func.func @transform_11(%arg0: i32) -> (i32, i32, i32) {
    %c0_i32 = arith.constant 0 : i32
    %c0_i32_0 = arith.constant 0 : i32
    %c0_i32_1 = arith.constant 0 : i32
    %c0_i32_2 = arith.constant 0 : i32
    return %c0_i32, %c0_i32_0, %c0_i32_1 : i32, i32, i32
  }
  func.func @transform_12(%arg0: i32) -> (i32, i32, i32) {
    %c0_i32 = arith.constant 0 : i32
    %c0_i32_0 = arith.constant 0 : i32
    %c0_i32_1 = arith.constant 0 : i32
    %c0_i32_2 = arith.constant 0 : i32
    return %c0_i32, %c0_i32_0, %c0_i32_1 : i32, i32, i32
  }
  func.func @transform_13(%arg0: i32) -> (i32, i32, i32) {
    %c0_i32 = arith.constant 0 : i32
    %c0_i32_0 = arith.constant 0 : i32
    %c0_i32_1 = arith.constant 0 : i32
    %c0_i32_2 = arith.constant 0 : i32
    return %c0_i32, %c0_i32_0, %c0_i32_1 : i32, i32, i32
  }
  func.func @transform_14(%arg0: i32) -> (i32, i32, i32) {
    %c0_i32 = arith.constant 0 : i32
    %c0_i32_0 = arith.constant 0 : i32
    %c0_i32_1 = arith.constant 0 : i32
    %c0_i32_2 = arith.constant 0 : i32
    return %c0_i32, %c0_i32_0, %c0_i32_1 : i32, i32, i32
  }
  func.func @transform_15(%arg0: i32) -> (i32, i32) {
    %c0_i32 = arith.constant 0 : i32
    %c0_i32_0 = arith.constant 0 : i32
    return %arg0, %c0_i32 : i32, i32
  }
}

</mosaic_0001>

<bundles_post_ra>
// kernel: _lambda_.1
= control target key start
LH: loop header
LB: loop body
LE: loop exit
PB: predicated region body
PF: predicated region fallthrough
CT: control target
= control target key end

     0   :  { %s7134_s18 = smov 0   ;;  %s8524_s0 = inlined_call_operand.vmem [shape: f32[64,128], index: 0, kind: input, shape index: {}]   ;;  %s8525_s1 = inlined_call_operand.vmem [shape: f32[4,1,128], index: 1, kind: input, shape index: {}, may-alias: {1,8}]   ;;  %s8526_s2 = inlined_call_operand.vmem [shape: f32[4,1,128], index: 2, kind: input, shape index: {}, may-alias: {2,9}]   ;;  %s8527_s3 = inlined_call_operand.vmem [shape: bf16[4,128,384], index: 3, kind: input, shape index: {}]   ;;  %s8528_s4 = inlined_call_operand.vmem [shape: f32[4,1,384], index: 4, kind: input, shape index: {}]   ;;  %s8529_s5 = inlined_call_operand.vmem [shape: bf16[4,128,128], index: 5, kind: input, shape index: {}]   ;;  %s8530_s6 = inlined_call_operand.vmem [shape: f32[4,1,128], index: 6, kind: input, shape index: {}]   ;;  %s8531_s7 = inlined_call_operand.vmem [shape: f32[4,1,128], index: 7, kind: input, shape index: {}, may-alias: {7,14}]   ;;  %s8532_s8 = inlined_call_operand.vmem [shape: f32[4,1,128], index: 8, kind: input, shape index: {}, may-alias: {1,8}]   ;;  %s8533_s9 = inlined_call_operand.vmem [shape: f32[4,1,128], index: 9, kind: input, shape index: {}, may-alias: {2,9}]   ;;  %s8534_s10 = inlined_call_operand.vmem [shape: bf16[4,128,128], index: 10, kind: input, shape index: {}]   ;;  %s8535_s11 = inlined_call_operand.vmem [shape: f32[4,1,128], index: 11, kind: input, shape index: {}]   ;;  %s8536_s12 = inlined_call_operand.vmem [shape: bf16[4,128,128], index: 12, kind: input, shape index: {}]   ;;  %s8537_s13 = inlined_call_operand.vmem [shape: f32[4,1,128], index: 13, kind: input, shape index: {}]   ;;  %s8538_s14 = inlined_call_operand.vmem [shape: f32[4,1,128], index: 14, kind: input, shape index: {}, may-alias: {7,14}]   ;;  %s8539_s15 = inlined_call_operand.vmem [shape: f32[64,128], index: 15, kind: output, shape index: {}]  }
   0x1 LB: > { %s5369_s19 = sadd.s32 4294967295, %s7050_s18   ;;  %p5373_p0 = scmp.ge.s32.totalorder %s7050_s18, 1  ;;  %s7050_s18 = sphi %s7134_s18, %s25_s18  }
   0x2   : > { %p438_p1 = scmp.lt.s32.totalorder %s7050_s18, 3 }
   0x4   : > { %p439_p2 = pnand %p5373_p0, %p438_p1 }
   0x5   : > { %s5374_s20 = sshll.u32 (!%p439_p2), %s5369_s19, 2  ;;  %v6592_v4 = vld [vmem:[%s8527_s3 + $0x4] ss:$12 sps:$4 sm:$0xff] (!%p439_p2)   ;;  %v6594_v5 = vld [vmem:[%s8527_s3] ss:$12 sps:$4 sm:$0xff] (!%p439_p2)   ;;  %v503_v8 = vlaneseq (!%p439_p2)  ;;  %v7052_v45 = vmov (!%p439_p2), 0  }
   0x6   : > { %442 = sbr.rel (%p439_p2) target bundleno = 9344 (0x2480), region = 80  ;;  %p487_p3 = scmp.lt.s32.totalorder (!%p439_p2), %s5374_s20, 7  ;;  %v6595_v6 = vld [vmem:[%s8527_s3 + $0x1c] ss:$12 sps:$4 sm:$0xff] (!%p439_p2)   ;;  %765 = vmatprep.subr.bf16.mxu0 (!%p439_p2), %v6592_v4  ;;  %v6598_v30 = vld [vmem:[%s8527_s3 + $0x18] ss:$12 sps:$4 sm:$0xff] (!%p439_p2)   ;;  %797 = vmatprep.mubr.bf16.mxu0 (!%p439_p2), %v7052_v45 }
   0x7   : > { %v6597_v7 = vld [vmem:[%s8527_s3 + $0x8] ss:$12 sps:$4 sm:$0xff] (!%p439_p2)   ;;  %766 = vmatpush1.bf16.msra.mxu0 (!%p439_p2), %v6594_v5  ;;  %v7169_v9 = vand.u32 (!%p439_p2), 127, %v503_v8  ;;  %v6601_v32 = vld [vmem:[%s8527_s3 + $0x20] ss:$12 sps:$4 sm:$0xff] (!%p439_p2)   ;;  %vm930_vm5 = vcmask (!%p439_p2), 261120  }
   0x8   : > { %6118 = vmatprep.subr.bf16.mxu1 (!%p439_p2), %v6597_v7  ;;  %767 = vmatprep.subr.bf16.mxu0 (!%p439_p2), %v6595_v6  ;;  %v6599_v31 = vld [vmem:[%s8527_s3 + $0x34] ss:$12 sps:$4 sm:$0xff] (!%p439_p2)   ;;  %v6602_v33 = vld [vmem:[%s8527_s3 + $0x30] ss:$12 sps:$4 sm:$0xff] (!%p439_p2)   ;;  %v6603_v34 = vld [vmem:[%s8527_s3 + $0x4c] ss:$12 sps:$4 sm:$0xff] (!%p439_p2)  }
   0x9   : > { %6119 = vmatpush3.bf16.msra.mxu1 (!%p439_p2), %v6597_v7  ;;  %vm505_vm0 = vcmp.lt.s32.totalorder (!%p439_p2), %v7169_v9, 32  ;;  %v6605_v35 = vld [vmem:[%s8527_s3 + $0x38] ss:$12 sps:$4 sm:$0xff] (!%p439_p2)   ;;  %v6606_v36 = vld [vmem:[%s8527_s3 + $0x48] ss:$12 sps:$4 sm:$0xff] (!%p439_p2)   ;;  %vm511_vm1 = vcmp.ge.s32.totalorder (!%p439_p2), %v7169_v9, 16 }
   0xa   : > { %6120 = vmatprep.subr.bf16.mxu1 (!%p439_p2), %v6601_v32  ;;  %v6607_v37 = vld [vmem:[%s8527_s3 + $0x64] ss:$12 sps:$4 sm:$0xff] (!%p439_p2)   ;;  %v6610_v39 = vld [vmem:[%s8527_s3 + $0x60] ss:$12 sps:$4 sm:$0xff] (!%p439_p2)   ;;  %v6611_v40 = vld [vmem:[%s8527_s3 + $0x7c] ss:$12 sps:$4 sm:$0xff] (!%p439_p2)  }
   0xb   : > { %768 = vmatpush1.bf16.msra.mxu0 (!%p439_p2), %v6598_v30  ;;  %v6609_v38 = vld [vmem:[%s8527_s3 + $0x50] ss:$12 sps:$4 sm:$0xff] (!%p439_p2)   ;;  %v6613_v41 = vld [vmem:[%s8527_s3 + $0x68] ss:$12 sps:$4 sm:$0xff] (!%p439_p2)   ;;  %v6614_v42 = vld [vmem:[%s8527_s3 + $0x78] ss:$12 sps:$4 sm:$0xff] (!%p439_p2)  }
   0xc   : > { %769 = vmatprep.subr.bf16.mxu0 (!%p439_p2), %v6599_v31  ;;  %v6615_v43 = vld [vmem:[%s8527_s3 + $0x94] ss:$12 sps:$4 sm:$0xff] (!%p439_p2)   ;;  %v6618_v46 = vld [vmem:[%s8527_s3 + $0x90] ss:$12 sps:$4 sm:$0xff] (!%p439_p2)   ;;  %v6619_v47 = vld [vmem:[%s8527_s3 + $0xac] ss:$12 sps:$4 sm:$0xff] (!%p439_p2)  }
   0xd   : > { %s8541_s20 = smov (!%p487_p3, %s5374_s20), 7  ;;  %6121 = vmatpush3.bf16.msra.mxu1 %v6601_v32  ;;  %v6617_v44 = vld [vmem:[%s8527_s3 + $0x80] ss:$12 sps:$4 sm:$0xff]   ;;  %v6621_v48 = vld [vmem:[%s8527_s3 + $0x98] ss:$12 sps:$4 sm:$0xff]   ;;  %vm508_vm2 = vcmp.lt.s32.totalorder %v7169_v9, 16  ;;  %vm512_vm3 = vmand %vm511_vm1, %vm505_vm0 }
   0xe   : > { %s5375_s21 = sshll.u32 %s8541_s20, 3  ;;  %6122 = vmatprep.subr.bf16.mxu1 %v6605_v35  ;;  %v6622_v49 = vld [vmem:[%s8527_s3 + $0xa8] ss:$12 sps:$4 sm:$0xff]   ;;  %v6623_v50 = vld [vmem:[%s8527_s3 + $0xb0] ss:$12 sps:$4 sm:$0xff]   ;;  %vm506_vm4 = vcmp.lt.s32.totalorder %v7169_v9, 17 }
   0xf   : > { %s7150_s24 = scalar_lea.vmem %s8524_s0, %s5375_s21  ;;  %770 = vmatpush1.bf16.msra.mxu0 %v6602_v33  ;;  %v5379_v6 = vld [vmem:[%s8526_s2] ss:$0 sm:$0xff]  ;;  %v7053_v33 = vmov 0.0   ;;  %v6803_v9 = vld [vmem:[%s8534_s10 + $0xd8] sm:$0xff]   ;;  %s496_s29 = scalar_lea.vmem %s8539_s15, %s5375_s21 }
  0x10   : > { %v499_v0 = vld [vmem:[%s7150_s24] sm:$0xff]  ;;  %v501_v1 = vld [vmem:[%s7150_s24 + $0x10] sm:$0xff]  ;;  %v500_v2 = vld [vmem:[%s7150_s24 + $0x8] sm:$0xff]  ;;  %771 = vmatprep.subr.bf16.mxu0 %v6603_v34  ;;  %v7285_v34 = vsel %vm508_vm2, 1.0, %v7053_v33 }
  0x11   : > { %516 = vadd.xlane.f32.xlu0 %v499_v0  ;;  %520 = vadd.xlane.f32.xlu1 %v501_v1  ;;  %v502_v3 = vld [vmem:[%s7150_s24 + $0x18] sm:$0xff] }
  0x12   : > { %6123 = vmatpush3.bf16.msra.mxu1 %v6605_v35 }
  0x13   : > { %772 = vmatpush1.bf16.msra.mxu0 %v6606_v36  ;;  %6124 = vmatprep.subr.bf16.mxu1 %v6609_v38 }
  0x14   : > { %773 = vmatprep.subr.bf16.mxu0 %v6607_v37  ;;  %v7287_v37 = vsel %vm512_vm3, 1.0, %v7053_v33 }
  0x15   : > { %518 = vadd.xlane.f32.xlu0 %v500_v2  ;;  %522 = vadd.xlane.f32.xlu1 %v502_v3 }
  0x16   : > { %6125 = vmatpush3.bf16.msra.mxu1 %v6609_v38 }
  0x17   : > { %774 = vmatpush1.bf16.msra.mxu0 %v6610_v39  ;;  %6126 = vmatprep.subr.bf16.mxu1 %v6613_v41 }
  0x18   : > { %775 = vmatprep.subr.bf16.mxu0 %v6611_v40 }
  0x1a   : > { %6127 = vmatpush3.bf16.msra.mxu1 %v6613_v41 }
  0x1b   : > { %776 = vmatpush1.bf16.msra.mxu0 %v6614_v42  ;;  %6128 = vmatprep.subr.bf16.mxu1 %v6617_v44 }
  0x1c   : > { %777 = vmatprep.subr.bf16.mxu0 %v6615_v43 }
  0x1e   : > { %6129 = vmatpush3.bf16.msra.mxu1 %v6617_v44 }
  0x1f   : > { %778 = vmatpush1.bf16.msra.mxu0 %v6618_v46  ;;  %6130 = vmatprep.subr.bf16.mxu1 %v6621_v48 }
  0x20   : > { %779 = vmatprep.subr.bf16.mxu0 %v6619_v47 }
  0x22   : > { %6131 = vmatpush3.bf16.msra.mxu1 %v6621_v48 }
  0x23   : > { %780 = vmatpush1.bf16.msra.mxu0 %v6622_v49  ;;  %6132 = vmatprep.subr.bf16.mxu1 %v6623_v50 }
  0x26   : > { %6133 = vmatpush3.bf16.msra.mxu1 %v6623_v50 }
  0x9e   : > { %v517_v10 = vpop.xlane.xlu0 %516  ;;  %v521_v11 = vpop.xlane.xlu1 %520 }
  0x9f   : > { %v524_v12 = vmul.f32 0.03125, %v517_v10  ;;  %v526_v13 = vmul.f32 0.03125, %v521_v11 }
  0xa1   : > { %v528_v14 = vsub.f32 %v499_v0, %v524_v12  ;;  %v530_v15 = vsub.f32 %v501_v1, %v526_v13  ;;  %v5378_v1 = vld [vmem:[%s8525_s1] ss:$0 sm:$0xff] }
  0xa2   : > { %v519_v16 = vpop.xlane.xlu0 %518  ;;  %v523_v17 = vpop.xlane.xlu1 %522 }
  0xa3   : > { %v525_v18 = vmul.f32 0.03125, %v519_v16  ;;  %v527_v19 = vmul.f32 0.03125, %v523_v17  ;;  %v7174_v20 = vsel %vm505_vm0, %v528_v14, 0.0  ;;  %v7178_v21 = vsel %vm505_vm0, %v530_v15, 0.0 }
  0xa4   : > { %v538_v22 = vmul.f32 %v7174_v20, %v7174_v20  ;;  %v540_v25 = vmul.f32 %v7178_v21, %v7178_v21 }
  0xa5   : > { %v529_v23 = vsub.f32 %v500_v2, %v525_v18  ;;  %v531_v24 = vsub.f32 %v502_v3, %v527_v19 }
  0xa6   : > { %542 = vadd.xlane.f32.xlu0 %v538_v22 }
  0xa7   : > { %v7186_v26 = vsel %vm505_vm0, %v529_v23, 0.0  ;;  %v7190_v27 = vsel %vm505_vm0, %v531_v24, 0.0  ;;  %v620_v23 = vld [vmem:[%s8528_s4] sm:$0x7] }
  0xa8   : > { %v539_v28 = vmul.f32 %v7186_v26, %v7186_v26  ;;  %v541_v29 = vmul.f32 %v7190_v27, %v7190_v27 }
  0xaa   : > { %546 = vadd.xlane.f32.xlu0 %v540_v25  ;;  %544 = vadd.xlane.f32.xlu1 %v539_v28 }
  0xae   : > { %548 = vadd.xlane.f32.xlu1 %v541_v29 }
 0x133   : > { %v543_v51 = vpop.xlane.xlu0 %542 }
 0x134   : > { %v550_v52 = vmul.f32 0.03125, %v543_v51 }
 0x136   : > { %v554_v53 = vadd.f32 1e-06, %v550_v52 }
 0x137   : > { %v545_v54 = vpop.xlane.xlu1 %544  ;;  %v547_v55 = vpop.xlane.xlu0 %546 }
 0x138   : > { %6816 = vrsqrt.f32 %v554_v53  ;;  %v551_v56 = vmul.f32 0.03125, %v545_v54  ;;  %v552_v57 = vmul.f32 0.03125, %v547_v55 }
 0x13a   : > { %v555_v58 = vadd.f32 1e-06, %v551_v56  ;;  %v556_v59 = vadd.f32 1e-06, %v552_v57 }
 0x13b   : > { %v549_v60 = vpop.xlane.xlu1 %548 }
 0x13c   : > { %6818 = vrsqrt.f32 %v555_v58  ;;  %v553_v61 = vmul.f32 0.03125, %v549_v60 }
 0x13d   : > { %6820 = vrsqrt.f32 %v556_v59 }
 0x13e   : > { %v557_v62 = vadd.f32 1e-06, %v553_v61 }
 0x140   : > { %6822 = vrsqrt.f32 %v557_v62 }
 0x142   : > { %v6817_v63 = vpop.eup %6816 }
 0x143   : > { %v562_v0 = vmul.f32 %v6817_v63, %v7174_v20 }
 0x145   : > { %v572_v5 = vmul.f32 %v5378_v1, %v562_v0 }
 0x146   : > { %v6819_v2 = vpop.eup %6818 }
 0x147   : > { %v6821_v3 = vpop.eup %6820  ;;  %v563_v4 = vmul.f32 %v6819_v2, %v7186_v26  ;;  %v582_v12 = vadd.f32 %v5379_v6, %v572_v5 }
 0x148   : > { %v564_v7 = vmul.f32 %v6821_v3, %v7178_v21  ;;  %v623_v21 = vshrl.u32 %v503_v8, 7 }
 0x149   : > { %v573_v10 = vmul.f32 %v5378_v1, %v563_v4 }
 0x14a   : > { %v6823_v11 = vpop.eup %6822  ;;  %v574_v15 = vmul.f32 %v5378_v1, %v564_v7  ;;  %v7269_v22 = vsub.s32 1, %v623_v21  ;;  %v7274_v24 = vsub.s32 0, %v623_v21  ;;  %v7276_v25 = vsub.s32 2, %v623_v21 }
 0x14b   : > { %v583_v13 = vadd.f32 %v5379_v6, %v573_v10  ;;  %v565_v14 = vmul.f32 %v6823_v11, %v7190_v27 }
 0x14c   : > { %v584_v18 = vadd.f32 %v5379_v6, %v574_v15  ;;  %v629_v26 = vrot.slane %v620_v23, %v7269_v22  ;;  %v625_v27 = vrot.slane %v620_v23, %v7274_v24  ;;  %v633_v29 = vrot.slane %v620_v23, %v7276_v25 }
 0x14d   : > { %v618_v16 = vpack.c.bf16 %v583_v13, %v582_v12  ;;  %v575_v17 = vmul.f32 %v5378_v1, %v565_v14 }
 0x14f   : > { %798 = vmatmul.mubr.bf16.vlgmr.msra.gmra.mrb[0].mxu0 %v618_v16  ;;  %6134 = vmatprep.mubr.bf16.mxu1 %v618_v16  ;;  %v585_v19 = vadd.f32 %v5379_v6, %v575_v17 }
 0x150   : > { %807 = vmatprep.mubr.bf16.mxu0 %v7052_v45 }
 0x151   : > { %v619_v20 = vpack.c.bf16 %v585_v19, %v584_v18 }
 0x153   : > { %6135 = vmatmul.mubr.bf16.vlgmr.msra.gmra.mrb[0].mxu1 %v619_v20 }
 0x157   : > { %808 = vmatmul.mubr.bf16.gmra.mrb[4].mxu0 %v619_v20 }
 0x222   : > { %v799_v28 = vpop.f32.mrb[0].mxu0 }
 0x223   : > { %v801_v8 = vpop.f32.mrb[1].mxu0  ;;  %v800_v32 = vadd.f32 %v799_v28, %v625_v27 }
 0x224   : > { %v802_v30 = vadd.f32 %v801_v8, %v629_v26  ;;  %v803_v31 = vpop.f32.mrb[2].mxu0 }
 0x225   : > { %v804_v35 = vadd.f32 %v803_v31, %v625_v27  ;;  %v805_v36 = vpop.f32.mrb[3].mxu0 }
 0x226   : > { %v806_v38 = vadd.f32 %v805_v36, %v629_v26  ;;  %v6136_v39 = vpop.f32.mrb[0].mxu1  ;;  %v867_v43 = vmul.f32 %v802_v30, %v7285_v34  ;;  %v983_v49 = vmul.f32 %v802_v30, %v7287_v37 }
 0x227   : > { %v871_v40 = vpack.c.bf16 %v804_v35, %v800_v32  ;;  %v861_v41 = vadd.f32 %v6136_v39, %v633_v29  ;;  %v852_v42 = vpop.f32.mrb[1].mxu1 }
 0x228   : > { %v868_v44 = vmul.f32 %v806_v38, %v7285_v34  ;;  %v984_v46 = vmul.f32 %v806_v38, %v7287_v37  ;;  %v853_v47 = vadd.f32 %v852_v42, %v633_v29  ;;  %v6137_v48 = vpop.f32.mrb[2].mxu1 }
 0x229   : > { %v977_v50 = vmul.f32 %v861_v41, %v7285_v34  ;;  %v864_v51 = vadd.f32 %v6137_v48, %v633_v29  ;;  %v855_v52 = vpop.f32.mrb[3].mxu1  ;;  %6142 = vmatprep.mubr.bf16.mxu0 %v871_v40  ;;  %6150 = vmatprep.mubr.bf16.mxu1 %v871_v40  ;;  %v1088_v53 = vmul.f32 %v861_v41, %v7287_v37 }
 0x22a   : > { %v975_v54 = vmul.f32 %v853_v47, %v7285_v34  ;;  %v856_v55 = vadd.f32 %v855_v52, %v633_v29  ;;  %v809_v56 = vpop.f32.mrb[4].mxu0  ;;  %v873_v57 = vpack.c.bf16 %v868_v44, %v867_v43  ;;  %v1086_v58 = vmul.f32 %v853_v47, %v7287_v37 }
 0x22b   : > { %v978_v59 = vmul.f32 %v864_v51, %v7285_v34  ;;  %v1089_v60 = vmul.f32 %v864_v51, %v7287_v37  ;;  %v811_v61 = vpop.f32.mrb[5].mxu0  ;;  %v987_v62 = vpack.c.bf16 %v984_v46, %v983_v49  ;;  %v810_v1 = vadd.f32 %v809_v56, %v625_v27 }
 0x22c   : > { %v976_v63 = vmul.f32 %v856_v55, %v7285_v34  ;;  %v1087_v0 = vmul.f32 %v856_v55, %v7287_v37  ;;  %v812_v2 = vadd.f32 %v811_v61, %v629_v26  ;;  %v813_v3 = vpop.f32.mrb[6].mxu0  ;;  %6138 = vmatprep.subr.bf16.mxu0 %v873_v57 }
 0x22d   : > { %v814_v4 = vadd.f32 %v813_v3, %v625_v27  ;;  %6146 = vmatprep.subr.bf16.mxu1 %v987_v62  ;;  %v815_v5 = vpop.f32.mrb[7].mxu0  ;;  %6139 = vmatpush3.bf16.xpose.msra.mxu0 %v873_v57  ;;  %v1093_v6 = vpack.c.bf16 %v1089_v60, %v1088_v53  ;;  %v7301_v7 = vpack.c.bf16 %v978_v59, %v977_v50 }
 0x22e   : > { %v816_v10 = vadd.f32 %v815_v5, %v629_v26  ;;  %6147 = vmatpush3.bf16.xpose.msra.mxu1 %v987_v62  ;;  %v1092_v11 = vpack.c.bf16 %v1087_v0, %v1086_v58  ;;  %v7303_v13 = vpack.c.bf16 %v976_v63, %v975_v54  ;;  %v869_v14 = vmul.f32 %v812_v2, %v7285_v34 }
 0x22f   : > { %v872_v12 = vpack.c.bf16 %v814_v4, %v810_v1  ;;  %v985_v15 = vmul.f32 %v812_v2, %v7287_v37 }
 0x230   : > { %v870_v16 = vmul.f32 %v816_v10, %v7285_v34  ;;  %v986_v17 = vmul.f32 %v816_v10, %v7287_v37 }
 0x232   : > { %v874_v18 = vpack.c.bf16 %v870_v16, %v869_v14  ;;  %v988_v19 = vpack.c.bf16 %v986_v17, %v985_v15 }
 0x234   : > { %6140 = vmatprep.subr.bf16.mxu0 %v874_v18  ;;  %6148 = vmatprep.subr.bf16.mxu1 %v988_v19 }
 0x235   : > { %6141 = vmatpush3.bf16.xpose.msra.mxu0 %v874_v18 }
 0x236   : > { %6149 = vmatpush3.bf16.xpose.msra.mxu1 %v988_v19  ;;  %6154 = vmatprep.subr.bf16.mxu0 %v1092_v11 }
 0x23c   : > { %6143 = vmatmul.mubr.bf16.vlgmr.msra.gmra.mrb[8].mxu0 %v872_v12 }
 0x23d   : > { %6151 = vmatmul.mubr.bf16.vlgmr.msra.gmra.mrb[4].mxu1 %v872_v12  ;;  %6155 = vmatpush3.bf16.msra.mxu0 %v1092_v11 }
 0x23e   : > { %6156 = vmatprep.subr.bf16.mxu0 %v1093_v6 }
 0x241   : > { %6157 = vmatpush3.bf16.msra.mxu0 %v1093_v6 }
 0x242   : > { %6162 = vmatprep.subr.bf16.mxu0 %v7303_v13 }
 0x30f   : > { %v6144_v20 = vpop.f32.mrb[8].mxu0 }
 0x310   : > { %v6152_v21 = vpop.f32.mrb[4].mxu1  ;;  %v909_v23 = vpop.f32.mrb[9].mxu0  ;;  %v928_v43 = vsel %vm506_vm4, %v6144_v20, -1e+30 }
 0x311   : > { %v1023_v26 = vpop.f32.mrb[5].mxu1  ;;  %v6145_v27 = vpop.f32.mrb[10].mxu0  ;;  %v1040_v32 = vsel %vm506_vm4, %v6152_v21, -1e+30  ;;  %v926_v39 = vsel %vm506_vm4, %v909_v23, -1e+30 }
 0x312   : > { %v1038_v28 = vsel %vm506_vm4, %v1023_v26, -1e+30  ;;  %v6153_v8 = vpop.f32.mrb[6].mxu1  ;;  %v912_v29 = vpop.f32.mrb[11].mxu0  ;;  %v1048_v38 = vsel %vm930_vm5, %v1040_v32, -inf  ;;  %v931_v42 = vsel %vm930_vm5, %v926_v39, -inf }
 0x313   : > { %v1026_v30 = vpop.f32.mrb[7].mxu1  ;;  %v1042_v31 = vsel %vm930_vm5, %v1038_v28, -inf  ;;  %v1041_v36 = vsel %vm506_vm4, %v6153_v8, -1e+30  ;;  %v927_v41 = vsel %vm506_vm4, %v912_v29, -1e+30 }
 0x314   : > { %v1039_v33 = vsel %vm506_vm4, %v1026_v30, -1e+30  ;;  %1043 = vmax.xlane.f32.xlu0 %v1042_v31  ;;  %v1051_v40 = vsel %vm930_vm5, %v1041_v36, -inf  ;;  %v934_v44 = vsel %vm930_vm5, %v927_v41, -inf  ;;  %v929_v46 = vsel %vm506_vm4, %v6145_v27, -1e+30 }
 0x315   : > { %v1045_v35 = vsel %vm930_vm5, %v1039_v33, -inf  ;;  %v937_v47 = vsel %vm930_vm5, %v928_v43, -inf  ;;  %v940_v48 = vsel %vm930_vm5, %v929_v46, -inf  ;;  %v6624_v31 = vld [vmem:[%s8529_s5] sm:$0xff]  }
 0x316   : > { %1046 = vmax.xlane.f32.xlu1 %v1045_v35  ;;  %6170 = vmatprep.subr.bf16.mxu1 %v6624_v31  ;;  %v6627_v35 = vld [vmem:[%s8529_s5 + $0x18] sm:$0xff]  }
 0x317   : > { %6171 = vmatpush3.bf16.msra.mxu1 %v6624_v31 }
 0x318   : > { %1049 = vmax.xlane.f32.xlu0 %v1048_v38  ;;  %v6629_v38 = vld [vmem:[%s8529_s5 + $0x28] sm:$0xff]  }
 0x31a   : > { %1052 = vmax.xlane.f32.xlu1 %v1051_v40 }
 0x31c   : > { %932 = vmax.xlane.f32.xlu0 %v931_v42 }
 0x31e   : > { %935 = vmax.xlane.f32.xlu1 %v934_v44 }
 0x320   : > { %938 = vmax.xlane.f32.xlu0 %v937_v47 }
 0x322   : > { %941 = vmax.xlane.f32.xlu1 %v940_v48 }
 0x3a1   : > { %v1044_v49 = vpop.xlane.xlu0 %1043 }
 0x3a2   : > { %v1054_v50 = vsub.f32 %v1038_v28, %v1044_v49 }
 0x3a3   : > { %v1047_v51 = vpop.xlane.xlu1 %1046 }
 0x3a4   : > { %v1058_v52 = vmul.f32 1.442695, %v1054_v50  ;;  %v1055_v53 = vsub.f32 %v1039_v33, %v1047_v51  ;;  %v6626_v33 = vld [vmem:[%s8529_s5 + $0x10] sm:$0xff]  }
 0x3a5   : > { %v1050_v54 = vpop.xlane.xlu0 %1049 }
 0x3a6   : > { %6824 = vpow2.f32 %v1058_v52  ;;  %v1060_v55 = vmul.f32 1.442695, %v1055_v53  ;;  %v1056_v56 = vsub.f32 %v1040_v32, %v1050_v54  ;;  %v6625_v32 = vld [vmem:[%s8529_s5 + $0x8] sm:$0xff]  }
 0x3a7   : > { %v1053_v57 = vpop.xlane.xlu1 %1052  ;;  %6172 = vmatprep.subr.bf16.mxu1 %v6625_v32 }
 0x3a8   : > { %6826 = vpow2.f32 %v1060_v55  ;;  %v1062_v58 = vmul.f32 1.442695, %v1056_v56  ;;  %v1057_v59 = vsub.f32 %v1041_v36, %v1053_v57  ;;  %6173 = vmatpush3.bf16.msra.mxu1 %v6625_v32  ;;  %v6628_v36 = vld [vmem:[%s8529_s5 + $0x20] sm:$0xff]   ;;  %v7041_v32 = vld [vmem:[%s7150_s24 + $0x8] sm:$0xff] }
 0x3a9   : > { %v933_v60 = vpop.xlane.xlu0 %932  ;;  %6174 = vmatprep.subr.bf16.mxu1 %v6626_v33 }
 0x3aa   : > { %6828 = vpow2.f32 %v1062_v58  ;;  %v1064_v61 = vmul.f32 1.442695, %v1057_v59  ;;  %v943_v62 = vsub.f32 %v926_v39, %v933_v60  ;;  %v6630_v39 = vld [vmem:[%s8529_s5 + $0x30] sm:$0xff]  }
 0x3ab   : > { %v936_v63 = vpop.xlane.xlu1 %935 }
 0x3ac   : > { %6830 = vpow2.f32 %v1064_v61  ;;  %v947_v0 = vmul.f32 1.442695, %v943_v62  ;;  %v944_v1 = vsub.f32 %v927_v41, %v936_v63  ;;  %6175 = vmatpush3.bf16.msra.mxu1 %v6626_v33 }
 0x3ad   : > { %v939_v2 = vpop.xlane.xlu0 %938  ;;  %6176 = vmatprep.subr.bf16.mxu1 %v6627_v35 }
 0x3ae   : > { %6832 = vpow2.f32 %v947_v0  ;;  %v949_v3 = vmul.f32 1.442695, %v944_v1  ;;  %v945_v4 = vsub.f32 %v928_v43, %v939_v2 }
 0x3af   : > { %v942_v5 = vpop.xlane.xlu1 %941 }
 0x3b0   : > { %v7335_v6 = vpop.eup %6824  ;;  %6834 = vpow2.f32 %v949_v3  ;;  %v951_v10 = vmul.f32 1.442695, %v945_v4  ;;  %v946_v11 = vsub.f32 %v929_v46, %v942_v5  ;;  %6177 = vmatpush3.bf16.msra.mxu1 %v6627_v35  ;;  %v7042_v35 = vld [vmem:[%s7150_s24 + $0x10] sm:$0xff] }
 0x3b1   : > { %v1066_v12 = vsel %vm930_vm5, %v7335_v6, 0.0  ;;  %6178 = vmatprep.subr.bf16.mxu1 %v6628_v36 }
 0x3b2   : > { %v7339_v14 = vpop.eup %6826  ;;  %6836 = vpow2.f32 %v951_v10  ;;  %v953_v15 = vmul.f32 1.442695, %v946_v11  ;;  %1067 = vadd.xlane.f32.xlu0 %v1066_v12 }
 0x3b3   : > { %v1069_v16 = vsel %vm930_vm5, %v7339_v14, 0.0 }
 0x3b4   : > { %v7343_v17 = vpop.eup %6828  ;;  %6838 = vpow2.f32 %v953_v15  ;;  %1070 = vadd.xlane.f32.xlu1 %v1069_v16  ;;  %6179 = vmatpush3.bf16.msra.mxu1 %v6628_v36  ;;  %v5417_v16 = vld [vmem:[%s8531_s7] ss:$0 sm:$0xff] }
 0x3b5   : > { %v1072_v18 = vsel %vm930_vm5, %v7343_v17, 0.0  ;;  %6180 = vmatprep.subr.bf16.mxu1 %v6629_v38 }
 0x3b6   : > { %v6831_v19 = vpop.eup %6830  ;;  %1073 = vadd.xlane.f32.xlu0 %v1072_v18 }
 0x3b7   : > { %v1075_v20 = vsel %vm930_vm5, %v6831_v19, 0.0 }
 0x3b8   : > { %v7348_v21 = vpop.eup %6832  ;;  %1076 = vadd.xlane.f32.xlu1 %v1075_v20  ;;  %6181 = vmatpush3.bf16.msra.mxu1 %v6629_v38  ;;  %v7043_v38 = vld [vmem:[%s7150_s24 + $0x18] sm:$0xff] }
 0x3b9   : > { %v955_v23 = vsel %vm930_vm5, %v7348_v21, 0.0  ;;  %6182 = vmatprep.subr.bf16.mxu1 %v6630_v39 }
 0x3ba   : > { %v6835_v26 = vpop.eup %6834  ;;  %956 = vadd.xlane.f32.xlu0 %v955_v23 }
 0x3bb   : > { %v958_v27 = vsel %vm930_vm5, %v6835_v26, 0.0 }
 0x3bc   : > { %v7353_v28 = vpop.eup %6836  ;;  %959 = vadd.xlane.f32.xlu1 %v958_v27  ;;  %6183 = vmatpush3.bf16.msra.mxu1 %v6630_v39 }
 0x3bd   : > { %v961_v8 = vsel %vm930_vm5, %v7353_v28, 0.0 }
 0x3be   : > { %v7357_v29 = vpop.eup %6838  ;;  %962 = vadd.xlane.f32.xlu0 %v961_v8 }
 0x3bf   : > { %v964_v30 = vsel %vm930_vm5, %v7357_v29, 0.0 }
 0x3c0   : > { %965 = vadd.xlane.f32.xlu1 %v964_v30 }
 0x43f   : > { %v1068_v40 = vpop.xlane.xlu0 %1067 }
 0x440   : > { %6840 = vrcp.f32 %v1068_v40  ;;  %v6632_v40 = vld [vmem:[%s8534_s10] sm:$0xff]  }
 0x441   : > { %v1071_v41 = vpop.xlane.xlu1 %1070 }
 0x442   : > { %6842 = vrcp.f32 %v1071_v41 }
 0x443   : > { %v1074_v42 = vpop.xlane.xlu0 %1073 }
 0x444   : > { %6844 = vrcp.f32 %v1074_v42 }
 0x445   : > { %v1077_v43 = vpop.xlane.xlu1 %1076 }
 0x446   : > { %6846 = vrcp.f32 %v1077_v43 }
 0x447   : > { %v957_v44 = vpop.xlane.xlu0 %956 }
 0x448   : > { %6848 = vrcp.f32 %v957_v44 }
 0x449   : > { %v960_v46 = vpop.xlane.xlu1 %959 }
 0x44a   : > { %v6841_v47 = vpop.eup %6840  ;;  %6850 = vrcp.f32 %v960_v46 }
 0x44b   : > { %v963_v49 = vpop.xlane.xlu0 %962  ;;  %v1082_v51 = vmul.f32 %v6841_v47, %v7335_v6 }
 0x44c   : > { %v6843_v48 = vpop.eup %6842 }
 0x44d   : > { %v966_v50 = vpop.xlane.xlu1 %965  ;;  %v1083_v52 = vmul.f32 %v6843_v48, %v7339_v14 }
 0x44e   : > { %v6845_v53 = vpop.eup %6844  ;;  %6852 = vrcp.f32 %v966_v50 }
 0x44f   : > { %v1090_v54 = vpack.c.bf16 %v1083_v52, %v1082_v51  ;;  %6854 = vrcp.f32 %v963_v49  ;;  %v1084_v56 = vmul.f32 %v6845_v53, %v7343_v17 }
 0x450   : > { %v6847_v55 = vpop.eup %6846 }
 0x451   : > { %v1085_v57 = vmul.f32 %v6847_v55, %v6831_v19  ;;  %6158 = vmatprep.mubr.msk.bf16.mxu0 %vm930_vm5, %v1090_v54 }
 0x452   : > { %v6849_v58 = vpop.eup %6848 }
 0x453   : > { %v1091_v59 = vpack.c.bf16 %v1085_v57, %v1084_v56  ;;  %v971_v61 = vmul.f32 %v6849_v58, %v7348_v21 }
 0x454   : > { %v6851_v60 = vpop.eup %6850 }
 0x455   : > { %6159 = vmatmul.mubr.msk.bf16.vlgmr.msra.gmra.mrb[12].mxu0 %vm930_vm5, %v1091_v59  ;;  %v972_v62 = vmul.f32 %v6851_v60, %v6835_v26 }
 0x456   : > { %6163 = vmatpush3.bf16.msra.mxu0 %v7303_v13  ;;  %v6631_v13 = vld [vmem:[%s8529_s5 + $0x38] sm:$0xff]  }
 0x457   : > { %6164 = vmatprep.subr.bf16.mxu0 %v7301_v7  ;;  %v979_v63 = vpack.c.bf16 %v972_v62, %v971_v61  ;;  %6184 = vmatprep.subr.bf16.mxu1 %v6631_v13  ;;  %v6633_v62 = vld [vmem:[%s8534_s10 + $0x8] sm:$0xff]  }
 0x458   : > { %v6853_v0 = vpop.eup %6852  ;;  %6185 = vmatpush3.bf16.msra.mxu1 %v6631_v13 }
 0x459   : > { %6166 = vmatprep.mubr.msk.bf16.mxu0 %vm930_vm5, %v979_v63  ;;  %v6855_v1 = vpop.eup %6854  ;;  %v974_v2 = vmul.f32 %v6853_v0, %v7357_v29  ;;  %v7040_v29 = vld [vmem:[%s7150_s24] sm:$0xff]  ;;  %v6634_v63 = vld [vmem:[%s8534_s10 + $0x10] sm:$0xff]   ;;  %v6635_v0 = vld [vmem:[%s8534_s10 + $0x18] sm:$0xff]  }
 0x45a   : > { %6165 = vmatpush3.bf16.msra.mxu0 %v7301_v7  ;;  %v973_v3 = vmul.f32 %v6855_v1, %v7353_v28  ;;  %v5408_v7 = vld [vmem:[%s8530_s6] ss:$0 sm:$0xff] }
 0x45b   : > { %6190 = vmatprep.subr.bf16.mxu0 %v6632_v40  ;;  %v6636_v1 = vld [vmem:[%s8534_s10 + $0x20] sm:$0xff]  }
 0x45c   : > { %v980_v4 = vpack.c.bf16 %v974_v2, %v973_v3  ;;  %v6637_v2 = vld [vmem:[%s8534_s10 + $0x28] sm:$0xff]   ;;  %v6638_v3 = vld [vmem:[%s8534_s10 + $0x30] sm:$0xff]  }
 0x461   : > { %6167 = vmatmul.mubr.msk.bf16.vlgmr.msra.gmra.mrb[12].mxu0 %vm930_vm5, %v980_v4  ;;  %v6639_v4 = vld [vmem:[%s8534_s10 + $0x38] sm:$0xff]  }
 0x462   : > { %6191 = vmatpush3.bf16.msra.mxu0 %v6632_v40 }
 0x463   : > { %6192 = vmatprep.subr.bf16.mxu0 %v6633_v62 }
 0x466   : > { %6193 = vmatpush3.bf16.msra.mxu0 %v6633_v62 }
 0x467   : > { %6194 = vmatprep.subr.bf16.mxu0 %v6634_v63 }
 0x46a   : > { %6195 = vmatpush3.bf16.msra.mxu0 %v6634_v63 }
 0x46b   : > { %6196 = vmatprep.subr.bf16.mxu0 %v6635_v0 }
 0x46e   : > { %6197 = vmatpush3.bf16.msra.mxu0 %v6635_v0 }
 0x46f   : > { %6198 = vmatprep.subr.bf16.mxu0 %v6636_v1 }
 0x472   : > { %6199 = vmatpush3.bf16.msra.mxu0 %v6636_v1 }
 0x473   : > { %6200 = vmatprep.subr.bf16.mxu0 %v6637_v2 }
 0x476   : > { %6201 = vmatpush3.bf16.msra.mxu0 %v6637_v2 }
 0x477   : > { %6202 = vmatprep.subr.bf16.mxu0 %v6638_v3 }
 0x47a   : > { %6203 = vmatpush3.bf16.msra.mxu0 %v6638_v3 }
 0x47b   : > { %6204 = vmatprep.subr.bf16.mxu0 %v6639_v4 }
 0x47e   : > { %6205 = vmatpush3.bf16.msra.mxu0 %v6639_v4 }
 0x534   : > { %v6168_v5 = vpop.f32.mrb[12].mxu0 }
 0x535   : > { %v1189_v6 = vpop.f32.mrb[13].mxu0 }
 0x536   : > { %v6169_v10 = vpop.f32.mrb[14].mxu0 }
 0x537   : > { %v1221_v11 = vpack.c.bf16 %v6169_v10, %v6168_v5  ;;  %v1192_v12 = vpop.f32.mrb[15].mxu0 }
 0x538   : > { %v1220_v14 = vpack.c.bf16 %v1192_v12, %v1189_v6 }
 0x53a   : > { %6186 = vmatprep.mubr.bf16.mxu1 %v1220_v14 }
 0x53b   : > { %6187 = vmatmul.mubr.bf16.vlgmr.msra.gmra.mrb[8].mxu1 %v1221_v11 }
 0x60e   : > { %v6188_v15 = vpop.f32.mrb[8].mxu1 }
 0x60f   : > { %v1311_v17 = vpop.f32.mrb[9].mxu1  ;;  %v1320_v18 = vadd.f32 %v6188_v15, %v5408_v7 }
 0x610   : > { %v1312_v19 = vadd.f32 %v5408_v7, %v1311_v17  ;;  %v6189_v20 = vpop.f32.mrb[10].mxu1 }
 0x611   : > { %v1314_v21 = vpop.f32.mrb[11].mxu1  ;;  %v1323_v26 = vadd.f32 %v6189_v20, %v5408_v7  ;;  %v1335_v28 = vmul.f32 %v5417_v16, %v1320_v18  ;;  %v5418_v20 = vld [vmem:[%s8532_s8] ss:$0 sm:$0xff] }
 0x612   : > { %v1333_v23 = vmul.f32 %v5417_v16, %v1312_v19  ;;  %v1315_v27 = vadd.f32 %v5408_v7, %v1314_v21 }
 0x613   : > { %v1336_v31 = vmul.f32 %v5417_v16, %v1323_v26  ;;  %v7413_v36 = vadd.f32 %v7042_v35, %v1335_v28 }
 0x614   : > { %v1334_v8 = vmul.f32 %v5417_v16, %v1315_v27  ;;  %v7405_v30 = vadd.f32 %v7040_v29, %v1333_v23 }
 0x615   : > { %v7417_v39 = vadd.f32 %v7043_v38, %v1336_v31 }
 0x616   : > { %1343 = vadd.xlane.f32.xlu0 %v7405_v30  ;;  %v7409_v33 = vadd.f32 %v7041_v32, %v1334_v8  ;;  %v5419_v8 = vld [vmem:[%s8533_s9] ss:$0 sm:$0xff] }
 0x618   : > { %1345 = vadd.xlane.f32.xlu1 %v7409_v33 }
 0x61a   : > { %1347 = vadd.xlane.f32.xlu0 %v7413_v36 }
 0x61c   : > { %1349 = vadd.xlane.f32.xlu1 %v7417_v39 }
 0x6a3   : > { %v1344_v41 = vpop.xlane.xlu0 %1343 }
 0x6a4   : > { %v1351_v42 = vmul.f32 0.03125, %v1344_v41 }
 0x6a5   : > { %v1346_v43 = vpop.xlane.xlu1 %1345 }
 0x6a6   : > { %v1355_v44 = vsub.f32 %v7405_v30, %v1351_v42  ;;  %v1352_v46 = vmul.f32 0.03125, %v1346_v43 }
 0x6a7   : > { %v1348_v47 = vpop.xlane.xlu0 %1347 }
 0x6a8   : > { %v1356_v48 = vsub.f32 %v7409_v33, %v1352_v46  ;;  %v1353_v49 = vmul.f32 0.03125, %v1348_v47  ;;  %v1359_v50 = vsel %vm505_vm0, %v1355_v44, 0.0 }
 0x6a9   : > { %v1350_v51 = vpop.xlane.xlu1 %1349  ;;  %v1363_v52 = vmul.f32 %v1359_v50, %v1359_v50 }
 0x6aa   : > { %v1357_v53 = vsub.f32 %v7413_v36, %v1353_v49  ;;  %v1354_v54 = vmul.f32 0.03125, %v1350_v51  ;;  %v1360_v55 = vsel %vm505_vm0, %v1356_v48, 0.0  ;;  %v6640_v48 = vld [vmem:[%s8536_s12] sm:$0xff]   ;;  %v6641_v49 = vld [vmem:[%s8536_s12 + $0x8] sm:$0xff]   ;;  %v6643_v51 = vld [vmem:[%s8536_s12 + $0x18] sm:$0xff]  }
 0x6ab   : > { %1367 = vadd.xlane.f32.xlu0 %v1363_v52  ;;  %v1364_v56 = vmul.f32 %v1360_v55, %v1360_v55  ;;  %6210 = vmatprep.subr.bf16.mxu1 %v6640_v48  ;;  %v6644_v52 = vld [vmem:[%s8536_s12 + $0x20] sm:$0xff]  }
 0x6ac   : > { %v1358_v57 = vsub.f32 %v7417_v39, %v1354_v54  ;;  %v1361_v58 = vsel %vm505_vm0, %v1357_v53, 0.0  ;;  %6211 = vmatpush3.bf16.msra.mxu1 %v6640_v48  ;;  %v6645_v53 = vld [vmem:[%s8536_s12 + $0x28] sm:$0xff]   ;;  %v6646_v54 = vld [vmem:[%s8536_s12 + $0x30] sm:$0xff]  }
 0x6ad   : > { %1369 = vadd.xlane.f32.xlu1 %v1364_v56  ;;  %v1365_v59 = vmul.f32 %v1361_v58, %v1361_v58  ;;  %6212 = vmatprep.subr.bf16.mxu1 %v6641_v49  ;;  %v5420_v56 = vld [vmem:[%s8535_s11] ss:$0 sm:$0xff] }
 0x6ae   : > { %v1362_v60 = vsel %vm505_vm0, %v1358_v57, 0.0 }
 0x6af   : > { %1371 = vadd.xlane.f32.xlu0 %v1365_v59  ;;  %v1366_v61 = vmul.f32 %v1362_v60, %v1362_v60 }
 0x6b0   : > { %6213 = vmatpush3.bf16.msra.mxu1 %v6641_v49 }
 0x6b1   : > { %1373 = vadd.xlane.f32.xlu1 %v1366_v61 }
 0x738   : > { %v1368_v13 = vpop.xlane.xlu0 %1367 }
 0x739   : > { %v1375_v5 = vmul.f32 0.03125, %v1368_v13 }
 0x73a   : > { %v1370_v6 = vpop.xlane.xlu1 %1369 }
 0x73b   : > { %v1379_v10 = vadd.f32 1e-06, %v1375_v5  ;;  %v1376_v11 = vmul.f32 0.03125, %v1370_v6 }
 0x73c   : > { %v1372_v12 = vpop.xlane.xlu0 %1371 }
 0x73d   : > { %6856 = vrsqrt.f32 %v1379_v10  ;;  %v1380_v14 = vadd.f32 1e-06, %v1376_v11  ;;  %v1377_v7 = vmul.f32 0.03125, %v1372_v12 }
 0x73e   : > { %v1374_v15 = vpop.xlane.xlu1 %1373 }
 0x73f   : > { %6858 = vrsqrt.f32 %v1380_v14  ;;  %v1381_v16 = vadd.f32 1e-06, %v1377_v7  ;;  %v1378_v17 = vmul.f32 0.03125, %v1374_v15 }
 0x741   : > { %6860 = vrsqrt.f32 %v1381_v16  ;;  %v1382_v18 = vadd.f32 1e-06, %v1378_v17 }
 0x743   : > { %6862 = vrsqrt.f32 %v1382_v18 }
 0x747   : > { %v6857_v19 = vpop.eup %6856 }
 0x748   : > { %v1387_v21 = vmul.f32 %v6857_v19, %v1359_v50  ;;  %v6642_v50 = vld [vmem:[%s8536_s12 + $0x10] sm:$0xff]  }
 0x749   : > { %v6859_v23 = vpop.eup %6858  ;;  %6214 = vmatprep.subr.bf16.mxu1 %v6642_v50 }
 0x74a   : > { %v1388_v26 = vmul.f32 %v6859_v23, %v1360_v55  ;;  %v1397_v27 = vmul.f32 %v5418_v20, %v1387_v21  ;;  %6215 = vmatpush3.bf16.msra.mxu1 %v6642_v50  ;;  %v6647_v55 = vld [vmem:[%s8536_s12 + $0x38] sm:$0xff]   ;;  %v5429_v50 = vld [vmem:[%s8537_s13] ss:$0 sm:$0xff] }
 0x74b   : > { %v6861_v28 = vpop.eup %6860  ;;  %6216 = vmatprep.subr.bf16.mxu1 %v6643_v51 }
 0x74c   : > { %v1389_v29 = vmul.f32 %v6861_v28, %v1361_v58  ;;  %v1398_v31 = vmul.f32 %v5418_v20, %v1388_v26  ;;  %v1407_v38 = vadd.f32 %v5419_v8, %v1397_v27 }
 0x74d   : > { %v6863_v32 = vpop.eup %6862 }
 0x74e   : > { %v1390_v35 = vmul.f32 %v6863_v32, %v1362_v60  ;;  %v1408_v40 = vadd.f32 %v5419_v8, %v1398_v31  ;;  %v1399_v41 = vmul.f32 %v5418_v20, %v1389_v29  ;;  %6217 = vmatpush3.bf16.msra.mxu1 %v6643_v51 }
 0x74f   : > { %6218 = vmatprep.subr.bf16.mxu1 %v6644_v52 }
 0x750   : > { %v1427_v42 = vpack.c.bf16 %v1408_v40, %v1407_v38  ;;  %v1400_v43 = vmul.f32 %v5418_v20, %v1390_v35  ;;  %v1409_v44 = vadd.f32 %v5419_v8, %v1399_v41 }
 0x752   : > { %6206 = vmatprep.mubr.bf16.mxu0 %v1427_v42  ;;  %v1410_v46 = vadd.f32 %v5419_v8, %v1400_v43  ;;  %6219 = vmatpush3.bf16.msra.mxu1 %v6644_v52  ;;  %v5438_v52 = vld [vmem:[%s8538_s14] ss:$0 sm:$0xff] }
 0x753   : > { %6220 = vmatprep.subr.bf16.mxu1 %v6645_v53 }
 0x754   : > { %v1428_v47 = vpack.c.bf16 %v1410_v46, %v1409_v44 }
 0x756   : > { %6207 = vmatmul.mubr.bf16.vlgmr.msra.gmra.mrb[16].mxu0 %v1428_v47  ;;  %6221 = vmatpush3.bf16.msra.mxu1 %v6645_v53 }
 0x757   : > { %1991 = vmatprep.mubr.bf16.mxu0 %v7052_v45  ;;  %6222 = vmatprep.subr.bf16.mxu1 %v6646_v54 }
 0x75a   : > { %6223 = vmatpush3.bf16.msra.mxu1 %v6646_v54 }
 0x75b   : > { %6224 = vmatprep.subr.bf16.mxu1 %v6647_v55 }
 0x75e   : > { %6225 = vmatpush3.bf16.msra.mxu1 %v6647_v55 }
 0x829   : > { %v6208_v57 = vpop.f32.mrb[16].mxu0 }
 0x82a   : > { %v1527_v58 = vadd.f32 %v6208_v57, %v5420_v56  ;;  %v1518_v59 = vpop.f32.mrb[17].mxu0 }
 0x82b   : > { %v1519_v60 = vadd.f32 %v5420_v56, %v1518_v59  ;;  %v6209_v61 = vpop.f32.mrb[18].mxu0 }
 0x82c   : > { %v1539_v62 = vmul.f32 0.044715, %v1527_v58  ;;  %v1530_v63 = vadd.f32 %v6209_v61, %v5420_v56  ;;  %v1521_v0 = vpop.f32.mrb[19].mxu0  ;;  %v1535_v32 = vmul.f32 0.5, %v1527_v58 }
 0x82d   : > { %v1537_v1 = vmul.f32 0.044715, %v1519_v60  ;;  %v1522_v2 = vadd.f32 %v5420_v56, %v1521_v0  ;;  %v1533_v40 = vmul.f32 0.5, %v1519_v60 }
 0x82e   : > { %v1543_v3 = vmul.f32 %v1539_v62, %v1527_v58  ;;  %v1540_v4 = vmul.f32 0.044715, %v1530_v63  ;;  %v1536_v35 = vmul.f32 0.5, %v1530_v63 }
 0x82f   : > { %v1541_v13 = vmul.f32 %v1537_v1, %v1519_v60  ;;  %v1538_v5 = vmul.f32 0.044715, %v1522_v2  ;;  %v1534_v41 = vmul.f32 0.5, %v1522_v2 }
 0x830   : > { %v1547_v6 = vmul.f32 %v1543_v3, %v1527_v58  ;;  %v1544_v10 = vmul.f32 %v1540_v4, %v1530_v63  ;;  %v6654_v4 = vld [vmem:[%s8527_s3 + $0xc8] ss:$12 sps:$4 sm:$0xff]  }
 0x831   : > { %v1545_v11 = vmul.f32 %v1541_v13, %v1519_v60  ;;  %v1542_v12 = vmul.f32 %v1538_v5, %v1522_v2  ;;  %6230 = vmatprep.subr.bf16.mxu1 %v6654_v4 }
 0x832   : > { %v1551_v14 = vadd.f32 %v1547_v6, %v1527_v58  ;;  %v1548_v7 = vmul.f32 %v1544_v10, %v1530_v63 }
 0x833   : > { %v1546_v15 = vmul.f32 %v1542_v12, %v1522_v2  ;;  %v1549_v16 = vadd.f32 %v1545_v11, %v1519_v60 }
 0x834   : > { %v1555_v17 = vmul.f32 0.7978846, %v1551_v14  ;;  %v1552_v18 = vadd.f32 %v1548_v7, %v1530_v63 }
 0x835   : > { %v1550_v19 = vadd.f32 %v1546_v15, %v1522_v2  ;;  %v1553_v20 = vmul.f32 0.7978846, %v1549_v16 }
 0x836   : > { %6864 = vtanh.f32 %v1555_v17  ;;  %v1556_v21 = vmul.f32 0.7978846, %v1552_v18 }
 0x837   : > { %v1554_v23 = vmul.f32 0.7978846, %v1550_v19  ;;  %6866 = vtanh.f32 %v1553_v20 }
 0x838   : > { %6868 = vtanh.f32 %v1556_v21 }
 0x839   : > { %6870 = vtanh.f32 %v1554_v23 }
 0x840   : > { %v6865_v26 = vpop.eup %6864 }
 0x841   : > { %v6867_v27 = vpop.eup %6866  ;;  %v1563_v28 = vadd.f32 1.0, %v6865_v26 }
 0x842   : > { %v6869_v8 = vpop.eup %6868  ;;  %v1561_v29 = vadd.f32 1.0, %v6867_v27 }
 0x843   : > { %v6871_v31 = vpop.eup %6870  ;;  %v1564_v38 = vadd.f32 1.0, %v6869_v8  ;;  %v1567_v43 = vmul.f32 %v1563_v28, %v1535_v32  ;;  %v6655_v32 = vld [vmem:[%s8527_s3 + $0xf0] ss:$12 sps:$4 sm:$0xff]  }
 0x844   : > { %v1562_v42 = vadd.f32 1.0, %v6871_v31  ;;  %v1565_v46 = vmul.f32 %v1561_v29, %v1533_v40  ;;  %v6657_v29 = vld [vmem:[%s8527_s3 + $0xf4] ss:$12 sps:$4 sm:$0xff]  }
 0x845   : > { %v1568_v44 = vmul.f32 %v1564_v38, %v1536_v35  ;;  %v6658_v31 = vld [vmem:[%s8527_s3 + $0xe0] ss:$12 sps:$4 sm:$0xff]   ;;  %v6662_v38 = vld [vmem:[%s8527_s3 + $0xf8] ss:$12 sps:$4 sm:$0xff]   ;;  %v6659_v40 = vld [vmem:[%s8527_s3 + $0x108] ss:$12 sps:$4 sm:$0xff]  }
 0x846   : > { %v1566_v47 = vmul.f32 %v1562_v42, %v1534_v41  ;;  %v6661_v35 = vld [vmem:[%s8527_s3 + $0x10c] ss:$12 sps:$4 sm:$0xff]   ;;  %v6665_v41 = vld [vmem:[%s8527_s3 + $0x124] ss:$12 sps:$4 sm:$0xff]  }
 0x847   : > { %v1587_v48 = vpack.c.bf16 %v1568_v44, %v1567_v43  ;;  %v6666_v42 = vld [vmem:[%s8527_s3 + $0x110] ss:$12 sps:$4 sm:$0xff]   ;;  %v6663_v43 = vld [vmem:[%s8527_s3 + $0x120] ss:$12 sps:$4 sm:$0xff]  }
 0x848   : > { %v1586_v49 = vpack.c.bf16 %v1566_v47, %v1565_v46  ;;  %v6669_v44 = vld [vmem:[%s8527_s3 + $0x13c] ss:$12 sps:$4 sm:$0xff]   ;;  %v6667_v47 = vld [vmem:[%s8527_s3 + $0x138] ss:$12 sps:$4 sm:$0xff]  }
 0x849   : > { %v6670_v46 = vld [vmem:[%s8527_s3 + $0x128] ss:$12 sps:$4 sm:$0xff]  }
 0x84a   : > { %6226 = vmatprep.mubr.bf16.mxu1 %v1586_v49  ;;  %v6674_v49 = vld [vmem:[%s8527_s3 + $0x140] ss:$12 sps:$4 sm:$0xff]  }
 0x84b   : > { %6227 = vmatmul.mubr.bf16.vlgmr.msra.gmra.mrb[12].mxu1 %v1587_v48  ;;  %v6673_v48 = vld [vmem:[%s8527_s3 + $0x154] ss:$12 sps:$4 sm:$0xff]  }
 0x84c   : > { %6231 = vmatpush3.bf16.msra.mxu1 %v6654_v4 }
 0x84d   : > { %6232 = vmatprep.subr.bf16.mxu1 %v6658_v31 }
 0x850   : > { %6233 = vmatpush3.bf16.msra.mxu1 %v6658_v31 }
 0x851   : > { %6234 = vmatprep.subr.bf16.mxu1 %v6662_v38 }
 0x854   : > { %6235 = vmatpush3.bf16.msra.mxu1 %v6662_v38 }
 0x855   : > { %6236 = vmatprep.subr.bf16.mxu1 %v6666_v42 }
 0x858   : > { %6237 = vmatpush3.bf16.msra.mxu1 %v6666_v42 }
 0x859   : > { %6238 = vmatprep.subr.bf16.mxu1 %v6670_v46 }
 0x85c   : > { %6239 = vmatpush3.bf16.msra.mxu1 %v6670_v46 }
 0x85d   : > { %6240 = vmatprep.subr.bf16.mxu1 %v6674_v49 }
 0x860   : > { %6241 = vmatpush3.bf16.msra.mxu1 %v6674_v49 }
 0x91e   : > { %v6228_v51 = vpop.f32.mrb[12].mxu1 }
 0x91f   : > { %v1677_v53 = vpop.f32.mrb[13].mxu1  ;;  %v1686_v54 = vadd.f32 %v6228_v51, %v5429_v50  ;;  %v6675_v51 = vld [vmem:[%s8527_s3 + $0x168] ss:$12 sps:$4 sm:$0xff]  }
 0x920   : > { %v1678_v55 = vadd.f32 %v5429_v50, %v1677_v53  ;;  %v6229_v56 = vpop.f32.mrb[14].mxu1  ;;  %v6678_v53 = vld [vmem:[%s8527_s3 + $0x158] ss:$12 sps:$4 sm:$0xff]  }
 0x921   : > { %v1680_v57 = vpop.f32.mrb[15].mxu1  ;;  %v1689_v59 = vadd.f32 %v6229_v56, %v5429_v50  ;;  %v1700_v61 = vmul.f32 %v5438_v52, %v1686_v54  ;;  %6242 = vmatprep.subr.bf16.mxu1 %v6678_v53  ;;  %v6679_v54 = vld [vmem:[%s8527_s3 + $0x170] ss:$12 sps:$4 sm:$0xff]  }
 0x922   : > { %v1698_v58 = vmul.f32 %v5438_v52, %v1678_v55  ;;  %v1681_v60 = vadd.f32 %v5429_v50, %v1680_v57  ;;  %v6671_v50 = vld [vmem:[%s8527_s3 + $0x150] ss:$12 sps:$4 sm:$0xff]   ;;  %6243 = vmatpush3.bf16.msra.mxu1 %v6678_v53 }
 0x923   : > { %v1701_v0 = vmul.f32 %v5438_v52, %v1689_v59  ;;  %v7505_v2 = vadd.f32 %v1700_v61, %v7413_v36  ;;  %v6653_v36 = vld [vmem:[%s8527_s3 + $0xdc] ss:$12 sps:$4 sm:$0xff]   ;;  %6244 = vmatprep.subr.bf16.mxu1 %v6679_v54 }
 0x924   : > { %v1699_v62 = vmul.f32 %v5438_v52, %v1681_v60  ;;  %v7497_v63 = vadd.f32 %v1698_v58, %v7405_v30  ;;  %v6648_v30 = vld [vmem:[%s8527_s3 + $0xc0] ss:$12 sps:$4 sm:$0xff]  }
 0x925   : > { %v7509_v3 = vadd.f32 %v1701_v0, %v7417_v39  ;;  %v6651_v39 = vld [vmem:[%s8527_s3 + $0xd8] ss:$12 sps:$4 sm:$0xff]  }
 0x926   : > { %1710 = vadd.xlane.f32.xlu0 %v7497_v63  ;;  %v7501_v1 = vadd.f32 %v1699_v62, %v7409_v33  ;;  %v6650_v33 = vld [vmem:[%s8527_s3 + $0xc4] ss:$12 sps:$4 sm:$0xff]   ;;  %v6677_v52 = vld [vmem:[%s8527_s3 + $0x16c] ss:$12 sps:$4 sm:$0xff]   ;;  %6245 = vmatpush3.bf16.msra.mxu1 %v6679_v54 }
 0x927   : > { %1959 = vmatprep.subr.bf16.mxu0 %v6650_v33 }
 0x928   : > { %1712 = vadd.xlane.f32.xlu1 %v7501_v1  ;;  %1960 = vmatpush1.bf16.msra.mxu0 %v6648_v30 }
 0x929   : > { %1961 = vmatprep.subr.bf16.mxu0 %v6653_v36 }
 0x92a   : > { %1714 = vadd.xlane.f32.xlu0 %v7505_v2 }
 0x92c   : > { %1716 = vadd.xlane.f32.xlu1 %v7509_v3  ;;  %1962 = vmatpush1.bf16.msra.mxu0 %v6651_v39  ;;  %v5441_v39 = vld [vmem:[%s8525_s1 + $0x1] ss:$0 sm:$0xff] }
 0x92d   : > { %1963 = vmatprep.subr.bf16.mxu0 %v6657_v29 }
 0x930   : > { %1964 = vmatpush1.bf16.msra.mxu0 %v6655_v32 }
 0x931   : > { %1965 = vmatprep.subr.bf16.mxu0 %v6661_v35 }
 0x934   : > { %1966 = vmatpush1.bf16.msra.mxu0 %v6659_v40 }
 0x935   : > { %1967 = vmatprep.subr.bf16.mxu0 %v6665_v41 }
 0x938   : > { %1968 = vmatpush1.bf16.msra.mxu0 %v6663_v43 }
 0x939   : > { %1969 = vmatprep.subr.bf16.mxu0 %v6669_v44 }
 0x93c   : > { %1970 = vmatpush1.bf16.msra.mxu0 %v6667_v47 }
 0x93d   : > { %1971 = vmatprep.subr.bf16.mxu0 %v6673_v48 }
 0x940   : > { %1972 = vmatpush1.bf16.msra.mxu0 %v6671_v50 }
 0x941   : > { %1973 = vmatprep.subr.bf16.mxu0 %v6677_v52 }
 0x944   : > { %1974 = vmatpush1.bf16.msra.mxu0 %v6675_v51 }
 0x9b3   : > { %v1711_v13 = vpop.xlane.xlu0 %1710 }
 0x9b4   : > { %v1718_v5 = vmul.f32 0.03125, %v1711_v13 }
 0x9b5   : > { %v1713_v6 = vpop.xlane.xlu1 %1712 }
 0x9b6   : > { %v1722_v10 = vsub.f32 %v7497_v63, %v1718_v5  ;;  %v1719_v11 = vmul.f32 0.03125, %v1713_v6 }
 0x9b7   : > { %v1715_v12 = vpop.xlane.xlu0 %1714 }
 0x9b8   : > { %v1723_v14 = vsub.f32 %v7501_v1, %v1719_v11  ;;  %v1720_v7 = vmul.f32 0.03125, %v1715_v12  ;;  %v7531_v15 = vsel %vm505_vm0, %v1722_v10, 0.0  ;;  %v5442_v12 = vld [vmem:[%s8526_s2 + $0x1] ss:$0 sm:$0xff] }
 0x9b9   : > { %v1717_v16 = vpop.xlane.xlu1 %1716  ;;  %v1730_v17 = vmul.f32 %v7531_v15, %v7531_v15 }
 0x9ba   : > { %v1724_v18 = vsub.f32 %v7505_v2, %v1720_v7  ;;  %v1721_v19 = vmul.f32 0.03125, %v1717_v16  ;;  %v7538_v20 = vsel %vm505_vm0, %v1723_v14, 0.0 }
 0x9bb   : > { %1734 = vadd.xlane.f32.xlu0 %v1730_v17  ;;  %v1731_v21 = vmul.f32 %v7538_v20, %v7538_v20 }
 0x9bc   : > { %v1725_v23 = vsub.f32 %v7509_v3, %v1721_v19  ;;  %v7545_v26 = vsel %vm505_vm0, %v1724_v18, 0.0 }
 0x9bd   : > { %1736 = vadd.xlane.f32.xlu1 %v1731_v21  ;;  %v1732_v27 = vmul.f32 %v7545_v26, %v7545_v26 }
 0x9be   : > { %v7551_v28 = vsel %vm505_vm0, %v1725_v23, 0.0 }
 0x9bf   : > { %1738 = vadd.xlane.f32.xlu0 %v1732_v27  ;;  %v1733_v8 = vmul.f32 %v7551_v28, %v7551_v28 }
 0x9c1   : > { %1740 = vadd.xlane.f32.xlu1 %v1733_v8 }
 0xa48   : > { %v1735_v55 = vpop.xlane.xlu0 %1734 }
 0xa49   : > { %v1742_v56 = vmul.f32 0.03125, %v1735_v55 }
 0xa4a   : > { %v1737_v57 = vpop.xlane.xlu1 %1736 }
 0xa4b   : > { %v1746_v58 = vadd.f32 1e-06, %v1742_v56  ;;  %v1743_v59 = vmul.f32 0.03125, %v1737_v57 }
 0xa4c   : > { %v1739_v60 = vpop.xlane.xlu0 %1738 }
 0xa4d   : > { %6872 = vrsqrt.f32 %v1746_v58  ;;  %v1747_v61 = vadd.f32 1e-06, %v1743_v59  ;;  %v1744_v62 = vmul.f32 0.03125, %v1739_v60 }
 0xa4e   : > { %v1741_v0 = vpop.xlane.xlu1 %1740 }
 0xa4f   : > { %6874 = vrsqrt.f32 %v1747_v61  ;;  %v1748_v30 = vadd.f32 1e-06, %v1744_v62  ;;  %v1745_v33 = vmul.f32 0.03125, %v1741_v0 }
 0xa51   : > { %6876 = vrsqrt.f32 %v1748_v30  ;;  %v1749_v36 = vadd.f32 1e-06, %v1745_v33 }
 0xa53   : > { %6878 = vrsqrt.f32 %v1749_v36 }
 0xa57   : > { %v6873_v4 = vpop.eup %6872 }
 0xa58   : > { %v1754_v13 = vmul.f32 %v6873_v4, %v7531_v15 }
 0xa59   : > { %v6875_v5 = vpop.eup %6874 }
 0xa5a   : > { %v1755_v6 = vmul.f32 %v6875_v5, %v7538_v20  ;;  %v1764_v10 = vmul.f32 %v5441_v39, %v1754_v13 }
 0xa5b   : > { %v6877_v11 = vpop.eup %6876 }
 0xa5c   : > { %v1756_v14 = vmul.f32 %v6877_v11, %v7545_v26  ;;  %v1765_v7 = vmul.f32 %v5441_v39, %v1755_v6  ;;  %v1774_v18 = vadd.f32 %v5442_v12, %v1764_v10  ;;  %v5475_v26 = vld [vmem:[%s8528_s4 + $0x3] sm:$0x7] }
 0xa5d   : > { %v6879_v16 = vpop.eup %6878  ;;  %v1819_v29 = vrot.slane %v5475_v26, %v7274_v24  ;;  %v1827_v35 = vrot.slane %v5475_v26, %v7276_v25 }
 0xa5e   : > { %v1757_v17 = vmul.f32 %v6879_v16, %v7551_v28  ;;  %v1775_v19 = vadd.f32 %v5442_v12, %v1765_v7  ;;  %v1766_v21 = vmul.f32 %v5441_v39, %v1756_v14  ;;  %v1823_v28 = vrot.slane %v5475_v26, %v7269_v22 }
 0xa60   : > { %v1811_v23 = vpack.c.bf16 %v1775_v19, %v1774_v18  ;;  %v1767_v15 = vmul.f32 %v5441_v39, %v1757_v17  ;;  %v1776_v20 = vadd.f32 %v5442_v12, %v1766_v21 }
 0xa62   : > { %1992 = vmatmul.mubr.bf16.vlgmr.msra.gmra.mrb[20].mxu0 %v1811_v23  ;;  %6246 = vmatprep.mubr.bf16.mxu1 %v1811_v23  ;;  %v1777_v27 = vadd.f32 %v5442_v12, %v1767_v15 }
 0xa63   : > { %2001 = vmatprep.mubr.bf16.mxu0 %v7052_v45 }
 0xa64   : > { %v1812_v8 = vpack.c.bf16 %v1777_v27, %v1776_v20 }
 0xa66   : > { %6247 = vmatmul.mubr.bf16.vlgmr.msra.gmra.mrb[16].mxu1 %v1812_v8 }
 0xa6a   : > { %2002 = vmatmul.mubr.bf16.gmra.mrb[24].mxu0 %v1812_v8 }
 0xb35   : > { %v1993_v31 = vpop.f32.mrb[20].mxu0 }
 0xb36   : > { %v1995_v32 = vpop.f32.mrb[21].mxu0  ;;  %v1994_v41 = vadd.f32 %v1993_v31, %v1819_v29 }
 0xb37   : > { %v1996_v38 = vadd.f32 %v1995_v32, %v1823_v28  ;;  %v1997_v40 = vpop.f32.mrb[22].mxu0 }
 0xb38   : > { %v1998_v42 = vadd.f32 %v1997_v40, %v1819_v29  ;;  %v1999_v43 = vpop.f32.mrb[23].mxu0 }
 0xb39   : > { %v2000_v44 = vadd.f32 %v1999_v43, %v1823_v28  ;;  %v6248_v46 = vpop.f32.mrb[16].mxu1  ;;  %v2061_v50 = vmul.f32 %v1996_v38, %v7285_v34  ;;  %v2174_v55 = vmul.f32 %v1996_v38, %v7287_v37 }
 0xb3a   : > { %v2065_v47 = vpack.c.bf16 %v1998_v42, %v1994_v41  ;;  %v2055_v48 = vadd.f32 %v6248_v46, %v1827_v35  ;;  %v2046_v49 = vpop.f32.mrb[17].mxu1 }
 0xb3b   : > { %v2062_v51 = vmul.f32 %v2000_v44, %v7285_v34  ;;  %v2175_v52 = vmul.f32 %v2000_v44, %v7287_v37  ;;  %v2047_v53 = vadd.f32 %v2046_v49, %v1827_v35  ;;  %v6249_v54 = vpop.f32.mrb[18].mxu1 }
 0xb3c   : > { %v2168_v56 = vmul.f32 %v2055_v48, %v7285_v34  ;;  %v2058_v57 = vadd.f32 %v6249_v54, %v1827_v35  ;;  %v2049_v58 = vpop.f32.mrb[19].mxu1  ;;  %6254 = vmatprep.mubr.bf16.mxu1 %v2065_v47  ;;  %6262 = vmatprep.mubr.bf16.mxu0 %v2065_v47  ;;  %v2279_v59 = vmul.f32 %v2055_v48, %v7287_v37 }
 0xb3d   : > { %v2166_v60 = vmul.f32 %v2047_v53, %v7285_v34  ;;  %v2050_v61 = vadd.f32 %v2049_v58, %v1827_v35  ;;  %v2003_v62 = vpop.f32.mrb[24].mxu0  ;;  %v2067_v0 = vpack.c.bf16 %v2062_v51, %v2061_v50  ;;  %v2277_v30 = vmul.f32 %v2047_v53, %v7287_v37 }
 0xb3e   : > { %v2169_v33 = vmul.f32 %v2058_v57, %v7285_v34  ;;  %v2280_v36 = vmul.f32 %v2058_v57, %v7287_v37  ;;  %v2005_v4 = vpop.f32.mrb[25].mxu0  ;;  %v2178_v39 = vpack.c.bf16 %v2175_v52, %v2174_v55  ;;  %v2004_v6 = vadd.f32 %v2003_v62, %v1819_v29 }
 0xb3f   : > { %v2167_v13 = vmul.f32 %v2050_v61, %v7285_v34  ;;  %v2278_v5 = vmul.f32 %v2050_v61, %v7287_v37  ;;  %v2006_v10 = vadd.f32 %v2005_v4, %v1823_v28  ;;  %v2007_v11 = vpop.f32.mrb[26].mxu0  ;;  %6250 = vmatprep.subr.bf16.mxu1 %v2067_v0 }
 0xb40   : > { %v2008_v12 = vadd.f32 %v2007_v11, %v1819_v29  ;;  %6258 = vmatprep.subr.bf16.mxu0 %v2178_v39  ;;  %v2009_v14 = vpop.f32.mrb[27].mxu0  ;;  %6251 = vmatpush3.bf16.xpose.msra.mxu1 %v2067_v0  ;;  %v2284_v7 = vpack.c.bf16 %v2280_v36, %v2279_v59  ;;  %v7641_v16 = vpack.c.bf16 %v2169_v33, %v2168_v56 }
 0xb41   : > { %v2010_v17 = vadd.f32 %v2009_v14, %v1823_v28  ;;  %6259 = vmatpush3.bf16.xpose.msra.mxu0 %v2178_v39  ;;  %v2283_v18 = vpack.c.bf16 %v2278_v5, %v2277_v30  ;;  %v7643_v21 = vpack.c.bf16 %v2167_v13, %v2166_v60  ;;  %v2063_v23 = vmul.f32 %v2006_v10, %v7285_v34 }
 0xb42   : > { %v2066_v19 = vpack.c.bf16 %v2008_v12, %v2004_v6  ;;  %v2176_v15 = vmul.f32 %v2006_v10, %v7287_v37 }
 0xb43   : > { %v2064_v20 = vmul.f32 %v2010_v17, %v7285_v34  ;;  %v2177_v27 = vmul.f32 %v2010_v17, %v7287_v37 }
 0xb45   : > { %v2068_v8 = vpack.c.bf16 %v2064_v20, %v2063_v23  ;;  %v2179_v26 = vpack.c.bf16 %v2177_v27, %v2176_v15 }
 0xb47   : > { %6252 = vmatprep.subr.bf16.mxu1 %v2068_v8  ;;  %6260 = vmatprep.subr.bf16.mxu0 %v2179_v26 }
 0xb48   : > { %6253 = vmatpush3.bf16.xpose.msra.mxu1 %v2068_v8 }
 0xb49   : > { %6261 = vmatpush3.bf16.xpose.msra.mxu0 %v2179_v26  ;;  %6266 = vmatprep.subr.bf16.mxu1 %v2283_v18 }
 0xb4f   : > { %6255 = vmatmul.mubr.bf16.vlgmr.msra.gmra.mrb[20].mxu1 %v2066_v19 }
 0xb50   : > { %6263 = vmatmul.mubr.bf16.vlgmr.msra.gmra.mrb[28].mxu0 %v2066_v19  ;;  %6267 = vmatpush3.bf16.msra.mxu1 %v2283_v18 }
 0xb51   : > { %6268 = vmatprep.subr.bf16.mxu1 %v2284_v7 }
 0xb54   : > { %6269 = vmatpush3.bf16.msra.mxu1 %v2284_v7 }
 0xb55   : > { %6274 = vmatprep.subr.bf16.mxu1 %v7643_v21 }
 0xc22   : > { %v6256_v28 = vpop.f32.mrb[20].mxu1 }
 0xc23   : > { %v6264_v29 = vpop.f32.mrb[28].mxu0  ;;  %v2103_v31 = vpop.f32.mrb[21].mxu1  ;;  %v2120_v54 = vsel %vm506_vm4, %v6256_v28, -1e+30 }
 0xc24   : > { %v2214_v32 = vpop.f32.mrb[29].mxu0  ;;  %v6257_v35 = vpop.f32.mrb[22].mxu1  ;;  %v2231_v44 = vsel %vm506_vm4, %v6264_v29, -1e+30  ;;  %v2118_v50 = vsel %vm506_vm4, %v2103_v31, -1e+30 }
 0xc25   : > { %v2229_v38 = vsel %vm506_vm4, %v2214_v32, -1e+30  ;;  %v6265_v40 = vpop.f32.mrb[30].mxu0  ;;  %v2106_v41 = vpop.f32.mrb[23].mxu1  ;;  %v2239_v49 = vsel %vm930_vm5, %v2231_v44, -inf  ;;  %v2122_v53 = vsel %vm930_vm5, %v2118_v50, -inf }
 0xc26   : > { %v2217_v42 = vpop.f32.mrb[31].mxu0  ;;  %v2233_v43 = vsel %vm930_vm5, %v2229_v38, -inf  ;;  %v2232_v48 = vsel %vm506_vm4, %v6265_v40, -1e+30  ;;  %v2119_v52 = vsel %vm506_vm4, %v2106_v41, -1e+30 }
 0xc27   : > { %v2230_v46 = vsel %vm506_vm4, %v2217_v42, -1e+30  ;;  %2234 = vmax.xlane.f32.xlu0 %v2233_v43  ;;  %v2242_v51 = vsel %vm930_vm5, %v2232_v48, -inf  ;;  %v2125_v55 = vsel %vm930_vm5, %v2119_v52, -inf  ;;  %v2121_v56 = vsel %vm506_vm4, %v6257_v35, -1e+30 }
 0xc28   : > { %v2236_v47 = vsel %vm930_vm5, %v2230_v46, -inf  ;;  %v2128_v57 = vsel %vm930_vm5, %v2120_v54, -inf  ;;  %v2131_v58 = vsel %vm930_vm5, %v2121_v56, -inf }
 0xc29   : > { %2237 = vmax.xlane.f32.xlu1 %v2236_v47 }
 0xc2b   : > { %2240 = vmax.xlane.f32.xlu0 %v2239_v49  ;;  %v6681_v49 = vld [vmem:[%s8529_s5 + $0x48] sm:$0xff]  }
 0xc2d   : > { %2243 = vmax.xlane.f32.xlu1 %v2242_v51  ;;  %v6683_v51 = vld [vmem:[%s8529_s5 + $0x58] sm:$0xff]  }
 0xc2f   : > { %2123 = vmax.xlane.f32.xlu0 %v2122_v53  ;;  %v6685_v53 = vld [vmem:[%s8529_s5 + $0x68] sm:$0xff]  }
 0xc31   : > { %2126 = vmax.xlane.f32.xlu1 %v2125_v55 }
 0xc33   : > { %2129 = vmax.xlane.f32.xlu0 %v2128_v57 }
 0xc35   : > { %2132 = vmax.xlane.f32.xlu1 %v2131_v58 }
 0xcb4   : > { %v2235_v59 = vpop.xlane.xlu0 %2234 }
 0xcb5   : > { %v2245_v60 = vsub.f32 %v2229_v38, %v2235_v59 }
 0xcb6   : > { %v2238_v61 = vpop.xlane.xlu1 %2237 }
 0xcb7   : > { %v2249_v62 = vmul.f32 1.442695, %v2245_v60  ;;  %v2246_v0 = vsub.f32 %v2230_v46, %v2238_v61 }
 0xcb8   : > { %v2241_v30 = vpop.xlane.xlu0 %2240 }
 0xcb9   : > { %6880 = vpow2.f32 %v2249_v62  ;;  %v2251_v33 = vmul.f32 1.442695, %v2246_v0  ;;  %v2247_v36 = vsub.f32 %v2231_v44, %v2241_v30 }
 0xcba   : > { %v2244_v4 = vpop.xlane.xlu1 %2243 }
 0xcbb   : > { %6882 = vpow2.f32 %v2251_v33  ;;  %v2253_v39 = vmul.f32 1.442695, %v2247_v36  ;;  %v2248_v13 = vsub.f32 %v2232_v48, %v2244_v4  ;;  %v6680_v48 = vld [vmem:[%s8529_s5 + $0x40] sm:$0xff]  }
 0xcbc   : > { %v2124_v5 = vpop.xlane.xlu0 %2123  ;;  %6282 = vmatprep.subr.bf16.mxu0 %v6680_v48 }
 0xcbd   : > { %6884 = vpow2.f32 %v2253_v39  ;;  %v2255_v6 = vmul.f32 1.442695, %v2248_v13  ;;  %v2134_v10 = vsub.f32 %v2118_v50, %v2124_v5  ;;  %6283 = vmatpush3.bf16.msra.mxu0 %v6680_v48  ;;  %v6682_v50 = vld [vmem:[%s8529_s5 + $0x50] sm:$0xff]  }
 0xcbe   : > { %v2127_v11 = vpop.xlane.xlu1 %2126  ;;  %6284 = vmatprep.subr.bf16.mxu0 %v6681_v49 }
 0xcbf   : > { %6886 = vpow2.f32 %v2255_v6  ;;  %v2138_v12 = vmul.f32 1.442695, %v2134_v10  ;;  %v2135_v14 = vsub.f32 %v2119_v52, %v2127_v11  ;;  %v6684_v52 = vld [vmem:[%s8529_s5 + $0x60] sm:$0xff]  }
 0xcc0   : > { %v2130_v7 = vpop.xlane.xlu0 %2129 }
 0xcc1   : > { %6888 = vpow2.f32 %v2138_v12  ;;  %v2140_v17 = vmul.f32 1.442695, %v2135_v14  ;;  %v2136_v18 = vsub.f32 %v2120_v54, %v2130_v7  ;;  %6285 = vmatpush3.bf16.msra.mxu0 %v6681_v49  ;;  %v6686_v54 = vld [vmem:[%s8529_s5 + $0x70] sm:$0xff]  }
 0xcc2   : > { %v2133_v19 = vpop.xlane.xlu1 %2132  ;;  %6286 = vmatprep.subr.bf16.mxu0 %v6682_v50 }
 0xcc3   : > { %v7674_v23 = vpop.eup %6880  ;;  %6890 = vpow2.f32 %v2140_v17  ;;  %v2142_v15 = vmul.f32 1.442695, %v2136_v18  ;;  %v2137_v20 = vsub.f32 %v2121_v56, %v2133_v19 }
 0xcc4   : > { %v2257_v27 = vsel %vm930_vm5, %v7674_v23, 0.0 }
 0xcc5   : > { %v7678_v8 = vpop.eup %6882  ;;  %6892 = vpow2.f32 %v2142_v15  ;;  %v2144_v26 = vmul.f32 1.442695, %v2137_v20  ;;  %2258 = vadd.xlane.f32.xlu0 %v2257_v27  ;;  %6287 = vmatpush3.bf16.msra.mxu0 %v6682_v50 }
 0xcc6   : > { %v2260_v28 = vsel %vm930_vm5, %v7678_v8, 0.0  ;;  %6288 = vmatprep.subr.bf16.mxu0 %v6683_v51 }
 0xcc7   : > { %v7682_v29 = vpop.eup %6884  ;;  %6894 = vpow2.f32 %v2144_v26  ;;  %2261 = vadd.xlane.f32.xlu1 %v2260_v28 }
 0xcc8   : > { %v2263_v31 = vsel %vm930_vm5, %v7682_v29, 0.0 }
 0xcc9   : > { %v6887_v32 = vpop.eup %6886  ;;  %2264 = vadd.xlane.f32.xlu0 %v2263_v31  ;;  %6289 = vmatpush3.bf16.msra.mxu0 %v6683_v51 }
 0xcca   : > { %v2266_v35 = vsel %vm930_vm5, %v6887_v32, 0.0  ;;  %6290 = vmatprep.subr.bf16.mxu0 %v6684_v52 }
 0xccb   : > { %v7687_v38 = vpop.eup %6888  ;;  %2267 = vadd.xlane.f32.xlu1 %v2266_v35  ;;  %v5531_v35 = vld [vmem:[%s8531_s7 + $0x1] ss:$0 sm:$0xff] }
 0xccc   : > { %v2146_v40 = vsel %vm930_vm5, %v7687_v38, 0.0 }
 0xccd   : > { %v6891_v41 = vpop.eup %6890  ;;  %2147 = vadd.xlane.f32.xlu0 %v2146_v40  ;;  %6291 = vmatpush3.bf16.msra.mxu0 %v6684_v52 }
 0xcce   : > { %v2149_v42 = vsel %vm930_vm5, %v6891_v41, 0.0  ;;  %6292 = vmatprep.subr.bf16.mxu0 %v6685_v53 }
 0xccf   : > { %v7692_v43 = vpop.eup %6892  ;;  %2150 = vadd.xlane.f32.xlu1 %v2149_v42 }
 0xcd0   : > { %v2152_v44 = vsel %vm930_vm5, %v7692_v43, 0.0 }
 0xcd1   : > { %v7696_v46 = vpop.eup %6894  ;;  %2153 = vadd.xlane.f32.xlu0 %v2152_v44  ;;  %6293 = vmatpush3.bf16.msra.mxu0 %v6685_v53 }
 0xcd2   : > { %v2155_v47 = vsel %vm930_vm5, %v7696_v46, 0.0  ;;  %6294 = vmatprep.subr.bf16.mxu0 %v6686_v54 }
 0xcd3   : > { %2156 = vadd.xlane.f32.xlu1 %v2155_v47 }
 0xcd5   : > { %6295 = vmatpush3.bf16.msra.mxu0 %v6686_v54 }
 0xd52   : > { %v2259_v55 = vpop.xlane.xlu0 %2258 }
 0xd53   : > { %6896 = vrcp.f32 %v2259_v55 }
 0xd54   : > { %v2262_v56 = vpop.xlane.xlu1 %2261 }
 0xd55   : > { %6898 = vrcp.f32 %v2262_v56 }
 0xd56   : > { %v2265_v57 = vpop.xlane.xlu0 %2264 }
 0xd57   : > { %6900 = vrcp.f32 %v2265_v57 }
 0xd58   : > { %v2268_v58 = vpop.xlane.xlu1 %2267 }
 0xd59   : > { %6902 = vrcp.f32 %v2268_v58 }
 0xd5a   : > { %v2148_v59 = vpop.xlane.xlu0 %2147 }
 0xd5b   : > { %6904 = vrcp.f32 %v2148_v59 }
 0xd5c   : > { %v2151_v60 = vpop.xlane.xlu1 %2150 }
 0xd5d   : > { %v6897_v61 = vpop.eup %6896  ;;  %6906 = vrcp.f32 %v2151_v60 }
 0xd5e   : > { %v2154_v0 = vpop.xlane.xlu0 %2153  ;;  %v2273_v33 = vmul.f32 %v6897_v61, %v7674_v23 }
 0xd5f   : > { %v6899_v62 = vpop.eup %6898 }
 0xd60   : > { %v2157_v30 = vpop.xlane.xlu1 %2156  ;;  %v2274_v36 = vmul.f32 %v6899_v62, %v7678_v8 }
 0xd61   : > { %v6901_v4 = vpop.eup %6900  ;;  %6908 = vrcp.f32 %v2157_v30 }
 0xd62   : > { %v2281_v39 = vpack.c.bf16 %v2274_v36, %v2273_v33  ;;  %6910 = vrcp.f32 %v2154_v0  ;;  %v2275_v5 = vmul.f32 %v6901_v4, %v7682_v29 }
 0xd63   : > { %v6903_v13 = vpop.eup %6902 }
 0xd64   : > { %v2276_v6 = vmul.f32 %v6903_v13, %v6887_v32  ;;  %6270 = vmatprep.mubr.msk.bf16.mxu1 %vm930_vm5, %v2281_v39 }
 0xd65   : > { %v6905_v10 = vpop.eup %6904 }
 0xd66   : > { %v2282_v11 = vpack.c.bf16 %v2276_v6, %v2275_v5  ;;  %v2162_v14 = vmul.f32 %v6905_v10, %v7687_v38  ;;  %v6689_v10 = vld [vmem:[%s8534_s10 + $0x48] sm:$0xff]  }
 0xd67   : > { %v6907_v12 = vpop.eup %6906 }
 0xd68   : > { %6271 = vmatmul.mubr.msk.bf16.vlgmr.msra.gmra.mrb[24].mxu1 %vm930_vm5, %v2282_v11  ;;  %v2163_v7 = vmul.f32 %v6907_v12, %v6891_v41  ;;  %v6690_v11 = vld [vmem:[%s8534_s10 + $0x50] sm:$0xff]   ;;  %v6691_v12 = vld [vmem:[%s8534_s10 + $0x58] sm:$0xff]  }
 0xd69   : > { %6275 = vmatpush3.bf16.msra.mxu1 %v7643_v21  ;;  %v6687_v21 = vld [vmem:[%s8529_s5 + $0x78] sm:$0xff]  }
 0xd6a   : > { %6276 = vmatprep.subr.bf16.mxu1 %v7641_v16  ;;  %v2170_v17 = vpack.c.bf16 %v2163_v7, %v2162_v14  ;;  %6296 = vmatprep.subr.bf16.mxu0 %v6687_v21  ;;  %v6692_v14 = vld [vmem:[%s8534_s10 + $0x60] sm:$0xff]   ;;  %v6693_v7 = vld [vmem:[%s8534_s10 + $0x68] sm:$0xff]  }
 0xd6b   : > { %v6909_v18 = vpop.eup %6908  ;;  %6297 = vmatpush3.bf16.msra.mxu0 %v6687_v21 }
 0xd6c   : > { %6278 = vmatprep.mubr.msk.bf16.mxu1 %vm930_vm5, %v2170_v17  ;;  %v6911_v19 = vpop.eup %6910  ;;  %v2165_v23 = vmul.f32 %v6909_v18, %v7696_v46  ;;  %v6694_v17 = vld [vmem:[%s8534_s10 + $0x70] sm:$0xff]   ;;  %v6695_v18 = vld [vmem:[%s8534_s10 + $0x78] sm:$0xff]  }
 0xd6d   : > { %6277 = vmatpush3.bf16.msra.mxu1 %v7641_v16  ;;  %v2164_v15 = vmul.f32 %v6911_v19, %v7692_v43  ;;  %v5521_v16 = vld [vmem:[%s8530_s6 + $0x1] ss:$0 sm:$0xff] }
 0xd6f   : > { %v2171_v20 = vpack.c.bf16 %v2165_v23, %v2164_v15 }
 0xd74   : > { %6279 = vmatmul.mubr.msk.bf16.vlgmr.msra.gmra.mrb[24].mxu1 %vm930_vm5, %v2171_v20 }
 0xe47   : > { %v6280_v27 = vpop.f32.mrb[24].mxu1 }
 0xe48   : > { %v2380_v8 = vpop.f32.mrb[25].mxu1 }
 0xe49   : > { %v6281_v26 = vpop.f32.mrb[26].mxu1 }
 0xe4a   : > { %v2413_v28 = vpack.c.bf16 %v6281_v26, %v6280_v27  ;;  %v2383_v29 = vpop.f32.mrb[27].mxu1 }
 0xe4b   : > { %v2412_v31 = vpack.c.bf16 %v2383_v29, %v2380_v8 }
 0xe4d   : > { %6298 = vmatprep.mubr.bf16.mxu0 %v2412_v31 }
 0xe4e   : > { %6299 = vmatmul.mubr.bf16.vlgmr.msra.gmra.mrb[32].mxu0 %v2413_v28 }
 0xf21   : > { %v6300_v32 = vpop.f32.mrb[32].mxu0 }
 0xf22   : > { %v2504_v38 = vpop.f32.mrb[33].mxu0  ;;  %v2513_v40 = vadd.f32 %v6300_v32, %v5521_v16 }
 0xf23   : > { %v2505_v41 = vadd.f32 %v5521_v16, %v2504_v38  ;;  %v6301_v42 = vpop.f32.mrb[34].mxu0 }
 0xf24   : > { %v2507_v43 = vpop.f32.mrb[35].mxu0  ;;  %v2516_v46 = vadd.f32 %v6301_v42, %v5521_v16  ;;  %v2529_v48 = vmul.f32 %v5531_v35, %v2513_v40 }
 0xf25   : > { %v2527_v44 = vmul.f32 %v5531_v35, %v2505_v41  ;;  %v2508_v47 = vadd.f32 %v5521_v16, %v2507_v43 }
 0xf26   : > { %v2530_v51 = vmul.f32 %v5531_v35, %v2516_v46  ;;  %v7752_v53 = vadd.f32 %v2529_v48, %v7505_v2 }
 0xf27   : > { %v2528_v49 = vmul.f32 %v5531_v35, %v2508_v47  ;;  %v7744_v50 = vadd.f32 %v2527_v44, %v7497_v63  ;;  %v6688_v63 = vld [vmem:[%s8534_s10 + $0x40] sm:$0xff]  }
 0xf28   : > { %v7756_v54 = vadd.f32 %v2530_v51, %v7509_v3  ;;  %6302 = vmatprep.subr.bf16.mxu1 %v6688_v63  ;;  %v5534_v35 = vld [vmem:[%s8532_s8 + $0x1] ss:$0 sm:$0xff] }
 0xf29   : > { %2539 = vadd.xlane.f32.xlu0 %v7744_v50  ;;  %v7748_v52 = vadd.f32 %v2528_v49, %v7501_v1  ;;  %6303 = vmatpush3.bf16.msra.mxu1 %v6688_v63  ;;  %v5535_v44 = vld [vmem:[%s8533_s9 + $0x1] ss:$0 sm:$0xff] }
 0xf2a   : > { %6304 = vmatprep.subr.bf16.mxu1 %v6689_v10 }
 0xf2b   : > { %2541 = vadd.xlane.f32.xlu1 %v7748_v52 }
 0xf2d   : > { %2543 = vadd.xlane.f32.xlu0 %v7752_v53  ;;  %6305 = vmatpush3.bf16.msra.mxu1 %v6689_v10 }
 0xf2e   : > { %6306 = vmatprep.subr.bf16.mxu1 %v6690_v11 }
 0xf2f   : > { %2545 = vadd.xlane.f32.xlu1 %v7756_v54 }
 0xf31   : > { %6307 = vmatpush3.bf16.msra.mxu1 %v6690_v11 }
 0xf32   : > { %6308 = vmatprep.subr.bf16.mxu1 %v6691_v12 }
 0xf35   : > { %6309 = vmatpush3.bf16.msra.mxu1 %v6691_v12 }
 0xf36   : > { %6310 = vmatprep.subr.bf16.mxu1 %v6692_v14 }
 0xf39   : > { %6311 = vmatpush3.bf16.msra.mxu1 %v6692_v14 }
 0xf3a   : > { %6312 = vmatprep.subr.bf16.mxu1 %v6693_v7 }
 0xf3d   : > { %6313 = vmatpush3.bf16.msra.mxu1 %v6693_v7 }
 0xf3e   : > { %6314 = vmatprep.subr.bf16.mxu1 %v6694_v17 }
 0xf41   : > { %6315 = vmatpush3.bf16.msra.mxu1 %v6694_v17 }
 0xf42   : > { %6316 = vmatprep.subr.bf16.mxu1 %v6695_v18 }
 0xf45   : > { %6317 = vmatpush3.bf16.msra.mxu1 %v6695_v18 }
 0xfb6   : > { %v2540_v1 = vpop.xlane.xlu0 %2539 }
 0xfb7   : > { %v2547_v55 = vmul.f32 0.03125, %v2540_v1 }
 0xfb8   : > { %v2542_v56 = vpop.xlane.xlu1 %2541 }
 0xfb9   : > { %v2551_v57 = vsub.f32 %v7744_v50, %v2547_v55  ;;  %v2548_v2 = vmul.f32 0.03125, %v2542_v56 }
 0xfba   : > { %v2544_v58 = vpop.xlane.xlu0 %2543 }
 0xfbb   : > { %v2552_v59 = vsub.f32 %v7748_v52, %v2548_v2  ;;  %v2549_v60 = vmul.f32 0.03125, %v2544_v58  ;;  %v2555_v3 = vsel %vm505_vm0, %v2551_v57, 0.0 }
 0xfbc   : > { %v2546_v61 = vpop.xlane.xlu1 %2545  ;;  %v2559_v62 = vmul.f32 %v2555_v3, %v2555_v3 }
 0xfbd   : > { %v2553_v0 = vsub.f32 %v7752_v53, %v2549_v60  ;;  %v2550_v30 = vmul.f32 0.03125, %v2546_v61  ;;  %v2556_v33 = vsel %vm505_vm0, %v2552_v59, 0.0  ;;  %v6696_v59 = vld [vmem:[%s8536_s12 + $0x40] sm:$0xff]   ;;  %v6697_v60 = vld [vmem:[%s8536_s12 + $0x48] sm:$0xff]   ;;  %v6699_v61 = vld [vmem:[%s8536_s12 + $0x58] sm:$0xff]  }
 0xfbe   : > { %2563 = vadd.xlane.f32.xlu0 %v2559_v62  ;;  %v2560_v36 = vmul.f32 %v2556_v33, %v2556_v33  ;;  %6322 = vmatprep.subr.bf16.mxu0 %v6696_v59  ;;  %v6700_v62 = vld [vmem:[%s8536_s12 + $0x60] sm:$0xff]  }
 0xfbf   : > { %v2554_v4 = vsub.f32 %v7756_v54, %v2550_v30  ;;  %v2557_v39 = vsel %vm505_vm0, %v2553_v0, 0.0  ;;  %6323 = vmatpush3.bf16.msra.mxu0 %v6696_v59  ;;  %v6701_v0 = vld [vmem:[%s8536_s12 + $0x68] sm:$0xff]   ;;  %v6702_v30 = vld [vmem:[%s8536_s12 + $0x70] sm:$0xff]  }
 0xfc0   : > { %2565 = vadd.xlane.f32.xlu1 %v2560_v36  ;;  %v2561_v13 = vmul.f32 %v2557_v39, %v2557_v39  ;;  %6324 = vmatprep.subr.bf16.mxu0 %v6697_v60  ;;  %v5553_v36 = vld [vmem:[%s8535_s11 + $0x1] ss:$0 sm:$0xff] }
 0xfc1   : > { %v2558_v5 = vsel %vm505_vm0, %v2554_v4, 0.0 }
 0xfc2   : > { %2567 = vadd.xlane.f32.xlu0 %v2561_v13  ;;  %v2562_v6 = vmul.f32 %v2558_v5, %v2558_v5 }
 0xfc3   : > { %6325 = vmatpush3.bf16.msra.mxu0 %v6697_v60 }
 0xfc4   : > { %2569 = vadd.xlane.f32.xlu1 %v2562_v6 }
0x104b   : > { %v2564_v19 = vpop.xlane.xlu0 %2563 }
0x104c   : > { %v2571_v23 = vmul.f32 0.03125, %v2564_v19 }
0x104d   : > { %v2566_v15 = vpop.xlane.xlu1 %2565 }
0x104e   : > { %v2575_v20 = vadd.f32 1e-06, %v2571_v23  ;;  %v2572_v21 = vmul.f32 0.03125, %v2566_v15 }
0x104f   : > { %v2568_v27 = vpop.xlane.xlu0 %2567 }
0x1050   : > { %6912 = vrsqrt.f32 %v2575_v20  ;;  %v2576_v8 = vadd.f32 1e-06, %v2572_v21  ;;  %v2573_v26 = vmul.f32 0.03125, %v2568_v27 }
0x1051   : > { %v2570_v28 = vpop.xlane.xlu1 %2569 }
0x1052   : > { %6914 = vrsqrt.f32 %v2576_v8  ;;  %v2577_v29 = vadd.f32 1e-06, %v2573_v26  ;;  %v2574_v31 = vmul.f32 0.03125, %v2570_v28 }
0x1054   : > { %6916 = vrsqrt.f32 %v2577_v29  ;;  %v2578_v16 = vadd.f32 1e-06, %v2574_v31 }
0x1056   : > { %6918 = vrsqrt.f32 %v2578_v16 }
0x105a   : > { %v6913_v32 = vpop.eup %6912 }
0x105b   : > { %v2583_v38 = vmul.f32 %v6913_v32, %v2555_v3  ;;  %v6698_v3 = vld [vmem:[%s8536_s12 + $0x50] sm:$0xff]  }
0x105c   : > { %v6915_v40 = vpop.eup %6914  ;;  %6326 = vmatprep.subr.bf16.mxu0 %v6698_v3 }
0x105d   : > { %v2584_v41 = vmul.f32 %v6915_v40, %v2556_v33  ;;  %v2593_v42 = vmul.f32 %v5534_v35, %v2583_v38  ;;  %6327 = vmatpush3.bf16.msra.mxu0 %v6698_v3  ;;  %v6703_v33 = vld [vmem:[%s8536_s12 + $0x78] sm:$0xff]   ;;  %v5580_v3 = vld [vmem:[%s8537_s13 + $0x1] ss:$0 sm:$0xff] }
0x105e   : > { %v6917_v43 = vpop.eup %6916  ;;  %6328 = vmatprep.subr.bf16.mxu0 %v6699_v61 }
0x105f   : > { %v2585_v46 = vmul.f32 %v6917_v43, %v2557_v39  ;;  %v2594_v47 = vmul.f32 %v5534_v35, %v2584_v41  ;;  %v2603_v51 = vadd.f32 %v5535_v44, %v2593_v42 }
0x1060   : > { %v6919_v48 = vpop.eup %6918 }
0x1061   : > { %v2586_v49 = vmul.f32 %v6919_v48, %v2558_v5  ;;  %v2604_v63 = vadd.f32 %v5535_v44, %v2594_v47  ;;  %v2595_v1 = vmul.f32 %v5534_v35, %v2585_v46  ;;  %6329 = vmatpush3.bf16.msra.mxu0 %v6699_v61 }
0x1062   : > { %6330 = vmatprep.subr.bf16.mxu0 %v6700_v62 }
0x1063   : > { %v2624_v55 = vpack.c.bf16 %v2604_v63, %v2603_v51  ;;  %v2596_v56 = vmul.f32 %v5534_v35, %v2586_v49  ;;  %v2605_v57 = vadd.f32 %v5535_v44, %v2595_v1 }
0x1065   : > { %6318 = vmatprep.mubr.bf16.mxu1 %v2624_v55  ;;  %v2606_v2 = vadd.f32 %v5535_v44, %v2596_v56  ;;  %6331 = vmatpush3.bf16.msra.mxu0 %v6700_v62  ;;  %v5589_v62 = vld [vmem:[%s8538_s14 + $0x1] ss:$0 sm:$0xff] }
0x1066   : > { %6332 = vmatprep.subr.bf16.mxu0 %v6701_v0 }
0x1067   : > { %v2625_v58 = vpack.c.bf16 %v2606_v2, %v2605_v57 }
0x1069   : > { %6319 = vmatmul.mubr.bf16.vlgmr.msra.gmra.mrb[28].mxu1 %v2625_v58  ;;  %6333 = vmatpush3.bf16.msra.mxu0 %v6701_v0 }
0x106a   : > { %3192 = vmatprep.mubr.bf16.mxu1 %v7052_v45  ;;  %6334 = vmatprep.subr.bf16.mxu0 %v6702_v30 }
0x106d   : > { %6335 = vmatpush3.bf16.msra.mxu0 %v6702_v30 }
0x106e   : > { %6336 = vmatprep.subr.bf16.mxu0 %v6703_v33 }
0x1071   : > { %6337 = vmatpush3.bf16.msra.mxu0 %v6703_v33 }
0x113c   : > { %v6320_v4 = vpop.f32.mrb[28].mxu1 }
0x113d   : > { %v2725_v39 = vadd.f32 %v6320_v4, %v5553_v36  ;;  %v2716_v13 = vpop.f32.mrb[29].mxu1 }
0x113e   : > { %v2717_v5 = vadd.f32 %v5553_v36, %v2716_v13  ;;  %v6321_v6 = vpop.f32.mrb[30].mxu1 }
0x113f   : > { %v2737_v10 = vmul.f32 0.044715, %v2725_v39  ;;  %v2728_v11 = vadd.f32 %v6321_v6, %v5553_v36  ;;  %v2719_v12 = vpop.f32.mrb[31].mxu1  ;;  %v2733_v48 = vmul.f32 0.5, %v2725_v39 }
0x1140   : > { %v2735_v14 = vmul.f32 0.044715, %v2717_v5  ;;  %v2720_v7 = vadd.f32 %v5553_v36, %v2719_v12  ;;  %v2731_v63 = vmul.f32 0.5, %v2717_v5 }
0x1141   : > { %v2741_v17 = vmul.f32 %v2737_v10, %v2725_v39  ;;  %v2738_v18 = vmul.f32 0.044715, %v2728_v11  ;;  %v2734_v49 = vmul.f32 0.5, %v2728_v11 }
0x1142   : > { %v2739_v19 = vmul.f32 %v2735_v14, %v2717_v5  ;;  %v2736_v23 = vmul.f32 0.044715, %v2720_v7  ;;  %v2732_v1 = vmul.f32 0.5, %v2720_v7 }
0x1143   : > { %v2745_v15 = vmul.f32 %v2741_v17, %v2725_v39  ;;  %v2742_v20 = vmul.f32 %v2738_v18, %v2728_v11  ;;  %v6710_v18 = vld [vmem:[%s8527_s3 + $0x188] ss:$12 sps:$4 sm:$0xff]  }
0x1144   : > { %v2743_v21 = vmul.f32 %v2739_v19, %v2717_v5  ;;  %v2740_v27 = vmul.f32 %v2736_v23, %v2720_v7  ;;  %6342 = vmatprep.subr.bf16.mxu0 %v6710_v18 }
0x1145   : > { %v2749_v8 = vadd.f32 %v2745_v15, %v2725_v39  ;;  %v2746_v26 = vmul.f32 %v2742_v20, %v2728_v11 }
0x1146   : > { %v2744_v28 = vmul.f32 %v2740_v27, %v2720_v7  ;;  %v2747_v29 = vadd.f32 %v2743_v21, %v2717_v5 }
0x1147   : > { %v2753_v31 = vmul.f32 0.7978846, %v2749_v8  ;;  %v2750_v16 = vadd.f32 %v2746_v26, %v2728_v11 }
0x1148   : > { %v2748_v32 = vadd.f32 %v2744_v28, %v2720_v7  ;;  %v2751_v35 = vmul.f32 0.7978846, %v2747_v29 }
0x1149   : > { %6920 = vtanh.f32 %v2753_v31  ;;  %v2754_v38 = vmul.f32 0.7978846, %v2750_v16 }
0x114a   : > { %v2752_v40 = vmul.f32 0.7978846, %v2748_v32  ;;  %6922 = vtanh.f32 %v2751_v35 }
0x114b   : > { %6924 = vtanh.f32 %v2754_v38 }
0x114c   : > { %6926 = vtanh.f32 %v2752_v40 }
0x1153   : > { %v6921_v41 = vpop.eup %6920 }
0x1154   : > { %v6923_v42 = vpop.eup %6922  ;;  %v2761_v43 = vadd.f32 1.0, %v6921_v41 }
0x1155   : > { %v6925_v44 = vpop.eup %6924  ;;  %v2759_v46 = vadd.f32 1.0, %v6923_v42 }
0x1156   : > { %v6927_v47 = vpop.eup %6926  ;;  %v2762_v51 = vadd.f32 1.0, %v6925_v44  ;;  %v2765_v56 = vmul.f32 %v2761_v43, %v2733_v48  ;;  %v6711_v48 = vld [vmem:[%s8527_s3 + $0x1b0] ss:$12 sps:$4 sm:$0xff]  }
0x1157   : > { %v2760_v55 = vadd.f32 1.0, %v6927_v47  ;;  %v2763_v2 = vmul.f32 %v2759_v46, %v2731_v63  ;;  %v6713_v46 = vld [vmem:[%s8527_s3 + $0x1b4] ss:$12 sps:$4 sm:$0xff]  }
0x1158   : > { %v2766_v57 = vmul.f32 %v2762_v51, %v2734_v49  ;;  %v6714_v47 = vld [vmem:[%s8527_s3 + $0x1a0] ss:$12 sps:$4 sm:$0xff]   ;;  %v6718_v51 = vld [vmem:[%s8527_s3 + $0x1b8] ss:$12 sps:$4 sm:$0xff]   ;;  %v6715_v63 = vld [vmem:[%s8527_s3 + $0x1c8] ss:$12 sps:$4 sm:$0xff]  }
0x1159   : > { %v2764_v58 = vmul.f32 %v2760_v55, %v2732_v1  ;;  %v6717_v49 = vld [vmem:[%s8527_s3 + $0x1cc] ss:$12 sps:$4 sm:$0xff]   ;;  %v6721_v1 = vld [vmem:[%s8527_s3 + $0x1e4] ss:$12 sps:$4 sm:$0xff]  }
0x115a   : > { %v2787_v59 = vpack.c.bf16 %v2766_v57, %v2765_v56  ;;  %v6722_v55 = vld [vmem:[%s8527_s3 + $0x1d0] ss:$12 sps:$4 sm:$0xff]   ;;  %v6719_v56 = vld [vmem:[%s8527_s3 + $0x1e0] ss:$12 sps:$4 sm:$0xff]  }
0x115b   : > { %v2786_v60 = vpack.c.bf16 %v2764_v58, %v2763_v2  ;;  %v6725_v57 = vld [vmem:[%s8527_s3 + $0x1fc] ss:$12 sps:$4 sm:$0xff]   ;;  %v6723_v58 = vld [vmem:[%s8527_s3 + $0x1f8] ss:$12 sps:$4 sm:$0xff]  }
0x115c   : > { %v6726_v2 = vld [vmem:[%s8527_s3 + $0x1e8] ss:$12 sps:$4 sm:$0xff]  }
0x115d   : > { %6338 = vmatprep.mubr.bf16.mxu0 %v2786_v60  ;;  %v6730_v60 = vld [vmem:[%s8527_s3 + $0x200] ss:$12 sps:$4 sm:$0xff]  }
0x115e   : > { %6339 = vmatmul.mubr.bf16.vlgmr.msra.gmra.mrb[36].mxu0 %v2787_v59  ;;  %v6729_v59 = vld [vmem:[%s8527_s3 + $0x214] ss:$12 sps:$4 sm:$0xff]  }
0x115f   : > { %6343 = vmatpush3.bf16.msra.mxu0 %v6710_v18 }
0x1160   : > { %6344 = vmatprep.subr.bf16.mxu0 %v6714_v47 }
0x1163   : > { %6345 = vmatpush3.bf16.msra.mxu0 %v6714_v47 }
0x1164   : > { %6346 = vmatprep.subr.bf16.mxu0 %v6718_v51 }
0x1167   : > { %6347 = vmatpush3.bf16.msra.mxu0 %v6718_v51 }
0x1168   : > { %6348 = vmatprep.subr.bf16.mxu0 %v6722_v55 }
0x116b   : > { %6349 = vmatpush3.bf16.msra.mxu0 %v6722_v55 }
0x116c   : > { %6350 = vmatprep.subr.bf16.mxu0 %v6726_v2 }
0x116f   : > { %6351 = vmatpush3.bf16.msra.mxu0 %v6726_v2 }
0x1170   : > { %6352 = vmatprep.subr.bf16.mxu0 %v6730_v60 }
0x1173   : > { %6353 = vmatpush3.bf16.msra.mxu0 %v6730_v60 }
0x1231   : > { %v6340_v61 = vpop.f32.mrb[36].mxu0 }
0x1232   : > { %v2878_v0 = vpop.f32.mrb[37].mxu0  ;;  %v2887_v30 = vadd.f32 %v6340_v61, %v5580_v3  ;;  %v6731_v61 = vld [vmem:[%s8527_s3 + $0x228] ss:$12 sps:$4 sm:$0xff]  }
0x1233   : > { %v2879_v33 = vadd.f32 %v5580_v3, %v2878_v0  ;;  %v6341_v36 = vpop.f32.mrb[38].mxu0  ;;  %v6734_v0 = vld [vmem:[%s8527_s3 + $0x218] ss:$12 sps:$4 sm:$0xff]  }
0x1234   : > { %v2881_v4 = vpop.f32.mrb[39].mxu0  ;;  %v2890_v13 = vadd.f32 %v6341_v36, %v5580_v3  ;;  %v2901_v6 = vmul.f32 %v5589_v62, %v2887_v30  ;;  %6354 = vmatprep.subr.bf16.mxu0 %v6734_v0  ;;  %v6735_v30 = vld [vmem:[%s8527_s3 + $0x230] ss:$12 sps:$4 sm:$0xff]  }
0x1235   : > { %v2899_v39 = vmul.f32 %v5589_v62, %v2879_v33  ;;  %v2882_v5 = vadd.f32 %v5580_v3, %v2881_v4  ;;  %v6727_v3 = vld [vmem:[%s8527_s3 + $0x210] ss:$12 sps:$4 sm:$0xff]   ;;  %6355 = vmatpush3.bf16.msra.mxu0 %v6734_v0 }
0x1236   : > { %v2902_v12 = vmul.f32 %v5589_v62, %v2890_v13  ;;  %v7844_v7 = vadd.f32 %v2901_v6, %v7752_v53  ;;  %v6709_v53 = vld [vmem:[%s8527_s3 + $0x19c] ss:$12 sps:$4 sm:$0xff]   ;;  %6356 = vmatprep.subr.bf16.mxu0 %v6735_v30 }
0x1237   : > { %v2900_v10 = vmul.f32 %v5589_v62, %v2882_v5  ;;  %v7836_v11 = vadd.f32 %v2899_v39, %v7744_v50  ;;  %v6704_v50 = vld [vmem:[%s8527_s3 + $0x180] ss:$12 sps:$4 sm:$0xff]  }
0x1238   : > { %v7848_v17 = vadd.f32 %v2902_v12, %v7756_v54  ;;  %v6707_v54 = vld [vmem:[%s8527_s3 + $0x198] ss:$12 sps:$4 sm:$0xff]  }
0x1239   : > { %2911 = vadd.xlane.f32.xlu0 %v7836_v11  ;;  %v7840_v14 = vadd.f32 %v2900_v10, %v7748_v52  ;;  %v6706_v52 = vld [vmem:[%s8527_s3 + $0x184] ss:$12 sps:$4 sm:$0xff]   ;;  %v6733_v62 = vld [vmem:[%s8527_s3 + $0x22c] ss:$12 sps:$4 sm:$0xff]   ;;  %6357 = vmatpush3.bf16.msra.mxu0 %v6735_v30 }
0x123a   : > { %3160 = vmatprep.subr.bf16.mxu1 %v6706_v52 }
0x123b   : > { %2913 = vadd.xlane.f32.xlu1 %v7840_v14  ;;  %3161 = vmatpush1.bf16.msra.mxu1 %v6704_v50 }
0x123c   : > { %3162 = vmatprep.subr.bf16.mxu1 %v6709_v53 }
0x123d   : > { %2915 = vadd.xlane.f32.xlu0 %v7844_v7 }
0x123f   : > { %2917 = vadd.xlane.f32.xlu1 %v7848_v17  ;;  %3163 = vmatpush1.bf16.msra.mxu1 %v6707_v54  ;;  %v5592_v54 = vld [vmem:[%s8525_s1 + $0x2] ss:$0 sm:$0xff] }
0x1240   : > { %3164 = vmatprep.subr.bf16.mxu1 %v6713_v46 }
0x1243   : > { %3165 = vmatpush1.bf16.msra.mxu1 %v6711_v48 }
0x1244   : > { %3166 = vmatprep.subr.bf16.mxu1 %v6717_v49 }
0x1247   : > { %3167 = vmatpush1.bf16.msra.mxu1 %v6715_v63 }
0x1248   : > { %3168 = vmatprep.subr.bf16.mxu1 %v6721_v1 }
0x124b   : > { %3169 = vmatpush1.bf16.msra.mxu1 %v6719_v56 }
0x124c   : > { %3170 = vmatprep.subr.bf16.mxu1 %v6725_v57 }
0x124f   : > { %3171 = vmatpush1.bf16.msra.mxu1 %v6723_v58 }
0x1250   : > { %3172 = vmatprep.subr.bf16.mxu1 %v6729_v59 }
0x1253   : > { %3173 = vmatpush1.bf16.msra.mxu1 %v6727_v3 }
0x1254   : > { %3174 = vmatprep.subr.bf16.mxu1 %v6733_v62 }
0x1257   : > { %3175 = vmatpush1.bf16.msra.mxu1 %v6731_v61 }
0x12c6   : > { %v2912_v19 = vpop.xlane.xlu0 %2911 }
0x12c7   : > { %v2919_v23 = vmul.f32 0.03125, %v2912_v19 }
0x12c8   : > { %v2914_v15 = vpop.xlane.xlu1 %2913 }
0x12c9   : > { %v2923_v20 = vsub.f32 %v7836_v11, %v2919_v23  ;;  %v2920_v21 = vmul.f32 0.03125, %v2914_v15 }
0x12ca   : > { %v2916_v27 = vpop.xlane.xlu0 %2915 }
0x12cb   : > { %v2924_v8 = vsub.f32 %v7840_v14, %v2920_v21  ;;  %v2921_v26 = vmul.f32 0.03125, %v2916_v27  ;;  %v7870_v28 = vsel %vm505_vm0, %v2923_v20, 0.0  ;;  %v5593_v27 = vld [vmem:[%s8526_s2 + $0x2] ss:$0 sm:$0xff] }
0x12cc   : > { %v2918_v29 = vpop.xlane.xlu1 %2917  ;;  %v2931_v31 = vmul.f32 %v7870_v28, %v7870_v28 }
0x12cd   : > { %v2925_v16 = vsub.f32 %v7844_v7, %v2921_v26  ;;  %v2922_v32 = vmul.f32 0.03125, %v2918_v29  ;;  %v7877_v35 = vsel %vm505_vm0, %v2924_v8, 0.0 }
0x12ce   : > { %2935 = vadd.xlane.f32.xlu0 %v2931_v31  ;;  %v2932_v38 = vmul.f32 %v7877_v35, %v7877_v35 }
0x12cf   : > { %v2926_v40 = vsub.f32 %v7848_v17, %v2922_v32  ;;  %v7884_v41 = vsel %vm505_vm0, %v2925_v16, 0.0 }
0x12d0   : > { %2937 = vadd.xlane.f32.xlu1 %v2932_v38  ;;  %v2933_v42 = vmul.f32 %v7884_v41, %v7884_v41 }
0x12d1   : > { %v7890_v43 = vsel %vm505_vm0, %v2926_v40, 0.0 }
0x12d2   : > { %2939 = vadd.xlane.f32.xlu0 %v2933_v42  ;;  %v2934_v44 = vmul.f32 %v7890_v43, %v7890_v43 }
0x12d4   : > { %2941 = vadd.xlane.f32.xlu1 %v2934_v44 }
0x135b   : > { %v2936_v33 = vpop.xlane.xlu0 %2935 }
0x135c   : > { %v2943_v36 = vmul.f32 0.03125, %v2936_v33 }
0x135d   : > { %v2938_v4 = vpop.xlane.xlu1 %2937 }
0x135e   : > { %v2947_v39 = vadd.f32 1e-06, %v2943_v36  ;;  %v2944_v13 = vmul.f32 0.03125, %v2938_v4 }
0x135f   : > { %v2940_v5 = vpop.xlane.xlu0 %2939 }
0x1360   : > { %6928 = vrsqrt.f32 %v2947_v39  ;;  %v2948_v6 = vadd.f32 1e-06, %v2944_v13  ;;  %v2945_v10 = vmul.f32 0.03125, %v2940_v5 }
0x1361   : > { %v2942_v12 = vpop.xlane.xlu1 %2941 }
0x1362   : > { %6930 = vrsqrt.f32 %v2948_v6  ;;  %v2949_v50 = vadd.f32 1e-06, %v2945_v10  ;;  %v2946_v52 = vmul.f32 0.03125, %v2942_v12 }
0x1364   : > { %6932 = vrsqrt.f32 %v2949_v50  ;;  %v2950_v53 = vadd.f32 1e-06, %v2946_v52 }
0x1366   : > { %6934 = vrsqrt.f32 %v2950_v53 }
0x136a   : > { %v6929_v18 = vpop.eup %6928 }
0x136b   : > { %v2955_v19 = vmul.f32 %v6929_v18, %v7870_v28 }
0x136c   : > { %v6931_v23 = vpop.eup %6930 }
0x136d   : > { %v2956_v15 = vmul.f32 %v6931_v23, %v7877_v35  ;;  %v2965_v20 = vmul.f32 %v5592_v54, %v2955_v19 }
0x136e   : > { %v6933_v21 = vpop.eup %6932 }
0x136f   : > { %v2957_v8 = vmul.f32 %v6933_v21, %v7884_v41  ;;  %v2966_v26 = vmul.f32 %v5592_v54, %v2956_v15  ;;  %v2975_v16 = vadd.f32 %v5593_v27, %v2965_v20  ;;  %v5626_v41 = vld [vmem:[%s8528_s4 + $0x6] sm:$0x7] }
0x1370   : > { %v6935_v29 = vpop.eup %6934  ;;  %v3020_v46 = vrot.slane %v5626_v41, %v7274_v24  ;;  %v3028_v49 = vrot.slane %v5626_v41, %v7276_v25 }
0x1371   : > { %v2958_v31 = vmul.f32 %v6935_v29, %v7890_v43  ;;  %v2976_v32 = vadd.f32 %v5593_v27, %v2966_v26  ;;  %v2967_v38 = vmul.f32 %v5592_v54, %v2957_v8  ;;  %v3024_v43 = vrot.slane %v5626_v41, %v7269_v22 }
0x1373   : > { %v3012_v40 = vpack.c.bf16 %v2976_v32, %v2975_v16  ;;  %v2968_v28 = vmul.f32 %v5592_v54, %v2958_v31  ;;  %v2977_v35 = vadd.f32 %v5593_v27, %v2967_v38 }
0x1375   : > { %3193 = vmatmul.mubr.bf16.vlgmr.msra.gmra.mrb[32].mxu1 %v3012_v40  ;;  %6358 = vmatprep.mubr.bf16.mxu0 %v3012_v40  ;;  %v2978_v42 = vadd.f32 %v5593_v27, %v2968_v28 }
0x1376   : > { %3202 = vmatprep.mubr.bf16.mxu1 %v7052_v45 }
0x1377   : > { %v3013_v44 = vpack.c.bf16 %v2978_v42, %v2977_v35 }
0x1379   : > { %6359 = vmatmul.mubr.bf16.vlgmr.msra.gmra.mrb[40].mxu0 %v3013_v44 }
0x137d   : > { %3203 = vmatmul.mubr.bf16.gmra.mrb[36].mxu1 %v3013_v44 }
0x1448   : > { %v3194_v47 = vpop.f32.mrb[32].mxu1 }
0x1449   : > { %v3196_v48 = vpop.f32.mrb[33].mxu1  ;;  %v3195_v1 = vadd.f32 %v3194_v47, %v3020_v46 }
0x144a   : > { %v3197_v51 = vadd.f32 %v3196_v48, %v3024_v43  ;;  %v3198_v63 = vpop.f32.mrb[34].mxu1 }
0x144b   : > { %v3199_v55 = vadd.f32 %v3198_v63, %v3020_v46  ;;  %v3200_v56 = vpop.f32.mrb[35].mxu1 }
0x144c   : > { %v3201_v57 = vadd.f32 %v3200_v56, %v3024_v43  ;;  %v6360_v2 = vpop.f32.mrb[40].mxu0  ;;  %v3262_v3 = vmul.f32 %v3197_v51, %v7285_v34  ;;  %v3375_v33 = vmul.f32 %v3197_v51, %v7287_v37 }
0x144d   : > { %v3266_v58 = vpack.c.bf16 %v3199_v55, %v3195_v1  ;;  %v3256_v59 = vadd.f32 %v6360_v2, %v3028_v49  ;;  %v3247_v60 = vpop.f32.mrb[41].mxu0 }
0x144e   : > { %v3263_v61 = vmul.f32 %v3201_v57, %v7285_v34  ;;  %v3376_v62 = vmul.f32 %v3201_v57, %v7287_v37  ;;  %v3248_v0 = vadd.f32 %v3247_v60, %v3028_v49  ;;  %v6361_v30 = vpop.f32.mrb[42].mxu0 }
0x144f   : > { %v3259_v36 = vadd.f32 %v6361_v30, %v3028_v49  ;;  %v3250_v4 = vpop.f32.mrb[43].mxu0  ;;  %6366 = vmatprep.mubr.bf16.mxu1 %v3266_v58  ;;  %v3369_v39 = vmul.f32 %v3256_v59, %v7285_v34  ;;  %v3480_v13 = vmul.f32 %v3256_v59, %v7287_v37 }
0x1450   : > { %v3251_v5 = vadd.f32 %v3250_v4, %v3028_v49  ;;  %v3204_v6 = vpop.f32.mrb[36].mxu1  ;;  %v3268_v10 = vpack.c.bf16 %v3263_v61, %v3262_v3  ;;  %v3367_v12 = vmul.f32 %v3248_v0, %v7285_v34  ;;  %v3379_v18 = vpack.c.bf16 %v3376_v62, %v3375_v33 }
0x1451   : > { %v3370_v50 = vmul.f32 %v3259_v36, %v7285_v34  ;;  %v3481_v52 = vmul.f32 %v3259_v36, %v7287_v37  ;;  %v3206_v53 = vpop.f32.mrb[37].mxu1  ;;  %v3478_v54 = vmul.f32 %v3248_v0, %v7287_v37  ;;  %v3205_v21 = vadd.f32 %v3204_v6, %v3020_v46 }
0x1452   : > { %v3368_v19 = vmul.f32 %v3251_v5, %v7285_v34  ;;  %v3479_v23 = vmul.f32 %v3251_v5, %v7287_v37  ;;  %v3207_v15 = vadd.f32 %v3206_v53, %v3024_v43  ;;  %v3208_v20 = vpop.f32.mrb[38].mxu1  ;;  %6362 = vmatprep.subr.bf16.mxu1 %v3268_v10 }
0x1453   : > { %v3209_v27 = vadd.f32 %v3208_v20, %v3020_v46  ;;  %v3210_v8 = vpop.f32.mrb[39].mxu1  ;;  %6363 = vmatpush3.bf16.xpose.msra.mxu1 %v3268_v10  ;;  %v3485_v26 = vpack.c.bf16 %v3481_v52, %v3480_v13  ;;  %v7980_v29 = vpack.c.bf16 %v3370_v50, %v3369_v39 }
0x1454   : > { %v3211_v31 = vadd.f32 %v3210_v8, %v3024_v43  ;;  %v3484_v16 = vpack.c.bf16 %v3479_v23, %v3478_v54  ;;  %v7982_v38 = vpack.c.bf16 %v3368_v19, %v3367_v12  ;;  %v3264_v40 = vmul.f32 %v3207_v15, %v7285_v34 }
0x1455   : > { %v3267_v32 = vpack.c.bf16 %v3209_v27, %v3205_v21  ;;  %v3377_v28 = vmul.f32 %v3207_v15, %v7287_v37 }
0x1456   : > { %v3265_v35 = vmul.f32 %v3211_v31, %v7285_v34  ;;  %v3378_v42 = vmul.f32 %v3211_v31, %v7287_v37  ;;  %6378 = vmatprep.subr.bf16.mxu0 %v3484_v16 }
0x1457   : > { %6379 = vmatpush3.bf16.msra.mxu0 %v3484_v16 }
0x1458   : > { %6380 = vmatprep.subr.bf16.mxu0 %v3485_v26  ;;  %v3269_v44 = vpack.c.bf16 %v3265_v35, %v3264_v40  ;;  %v3380_v41 = vpack.c.bf16 %v3378_v42, %v3377_v28 }
0x145a   : > { %6364 = vmatprep.subr.bf16.mxu1 %v3269_v44 }
0x145b   : > { %6365 = vmatpush3.bf16.xpose.msra.mxu1 %v3269_v44  ;;  %6381 = vmatpush3.bf16.msra.mxu0 %v3485_v26 }
0x145c   : > { %6370 = vmatprep.subr.bf16.mxu1 %v3379_v18  ;;  %6386 = vmatprep.subr.bf16.mxu0 %v7982_v38 }
0x1462   : > { %6367 = vmatmul.mubr.bf16.vlgmr.msra.gmra.mrb[40].mxu1 %v3267_v32 }
0x1463   : > { %6371 = vmatpush3.bf16.xpose.msra.mxu1 %v3379_v18  ;;  %6374 = vmatprep.mubr.bf16.mxu1 %v3266_v58 }
0x1464   : > { %6372 = vmatprep.subr.bf16.mxu1 %v3380_v41 }
0x146b   : > { %6373 = vmatpush3.bf16.xpose.msra.mxu1 %v3380_v41 }
0x1472   : > { %6375 = vmatmul.mubr.bf16.vlgmr.msra.gmra.mrb[44].mxu1 %v3267_v32 }
0x1535   : > { %v6368_v43 = vpop.f32.mrb[40].mxu1 }
0x1536   : > { %v3304_v46 = vpop.f32.mrb[41].mxu1  ;;  %v3321_v30 = vsel %vm506_vm4, %v6368_v43, -1e+30 }
0x1537   : > { %v6369_v47 = vpop.f32.mrb[42].mxu1  ;;  %v3319_v3 = vsel %vm506_vm4, %v3304_v46, -1e+30  ;;  %v3329_v4 = vsel %vm930_vm5, %v3321_v30, -inf }
0x1538   : > { %v3307_v48 = vpop.f32.mrb[43].mxu1  ;;  %v3323_v0 = vsel %vm930_vm5, %v3319_v3, -inf  ;;  %v3322_v36 = vsel %vm506_vm4, %v6369_v47, -1e+30 }
0x1539   : > { %v3320_v62 = vsel %vm506_vm4, %v3307_v48, -1e+30  ;;  %v3332_v39 = vsel %vm930_vm5, %v3322_v36, -inf }
0x153a   : > { %v3326_v33 = vsel %vm930_vm5, %v3320_v62, -inf }
0x1545   : > { %v6376_v49 = vpop.f32.mrb[44].mxu1 }
0x1546   : > { %v3415_v51 = vpop.f32.mrb[45].mxu1  ;;  %v3432_v57 = vsel %vm506_vm4, %v6376_v49, -1e+30 }
0x1547   : > { %v3430_v63 = vsel %vm506_vm4, %v3415_v51, -1e+30  ;;  %v6377_v1 = vpop.f32.mrb[46].mxu1  ;;  %v3440_v60 = vsel %vm930_vm5, %v3432_v57, -inf }
0x1548   : > { %v3418_v55 = vpop.f32.mrb[47].mxu1  ;;  %v3434_v56 = vsel %vm930_vm5, %v3430_v63, -inf  ;;  %v3433_v59 = vsel %vm506_vm4, %v6377_v1, -1e+30 }
0x1549   : > { %v3431_v2 = vsel %vm506_vm4, %v3418_v55, -1e+30  ;;  %3435 = vmax.xlane.f32.xlu0 %v3434_v56  ;;  %v3443_v61 = vsel %vm930_vm5, %v3433_v59, -inf }
0x154a   : > { %v3437_v58 = vsel %vm930_vm5, %v3431_v2, -inf }
0x154b   : > { %3438 = vmax.xlane.f32.xlu1 %v3437_v58 }
0x154d   : > { %3441 = vmax.xlane.f32.xlu0 %v3440_v60  ;;  %v6737_v60 = vld [vmem:[%s8529_s5 + $0x88] sm:$0xff]  }
0x154f   : > { %3444 = vmax.xlane.f32.xlu1 %v3443_v61  ;;  %v6739_v61 = vld [vmem:[%s8529_s5 + $0x98] sm:$0xff]  }
0x1551   : > { %3324 = vmax.xlane.f32.xlu0 %v3323_v0  ;;  %v6741_v0 = vld [vmem:[%s8529_s5 + $0xa8] sm:$0xff]  }
0x1553   : > { %3327 = vmax.xlane.f32.xlu1 %v3326_v33 }
0x1555   : > { %3330 = vmax.xlane.f32.xlu0 %v3329_v4 }
0x1557   : > { %3333 = vmax.xlane.f32.xlu1 %v3332_v39 }
0x15d6   : > { %v3436_v13 = vpop.xlane.xlu0 %3435 }
0x15d7   : > { %v3446_v5 = vsub.f32 %v3430_v63, %v3436_v13 }
0x15d8   : > { %v3439_v6 = vpop.xlane.xlu1 %3438 }
0x15d9   : > { %v3450_v10 = vmul.f32 1.442695, %v3446_v5  ;;  %v3447_v12 = vsub.f32 %v3431_v2, %v3439_v6 }
0x15da   : > { %v3442_v50 = vpop.xlane.xlu0 %3441 }
0x15db   : > { %6936 = vpow2.f32 %v3450_v10  ;;  %v3452_v52 = vmul.f32 1.442695, %v3447_v12  ;;  %v3448_v53 = vsub.f32 %v3432_v57, %v3442_v50 }
0x15dc   : > { %v3445_v18 = vpop.xlane.xlu1 %3444 }
0x15dd   : > { %6938 = vpow2.f32 %v3452_v52  ;;  %v3454_v54 = vmul.f32 1.442695, %v3448_v53  ;;  %v3449_v19 = vsub.f32 %v3433_v59, %v3445_v18  ;;  %v6736_v59 = vld [vmem:[%s8529_s5 + $0x80] sm:$0xff]  }
0x15de   : > { %v3325_v23 = vpop.xlane.xlu0 %3324  ;;  %6394 = vmatprep.subr.bf16.mxu1 %v6736_v59 }
0x15df   : > { %6940 = vpow2.f32 %v3454_v54  ;;  %v3456_v15 = vmul.f32 1.442695, %v3449_v19  ;;  %v3335_v20 = vsub.f32 %v3319_v3, %v3325_v23  ;;  %6395 = vmatpush3.bf16.msra.mxu1 %v6736_v59  ;;  %v6738_v3 = vld [vmem:[%s8529_s5 + $0x90] sm:$0xff]  }
0x15e0   : > { %v3328_v21 = vpop.xlane.xlu1 %3327  ;;  %6396 = vmatprep.subr.bf16.mxu1 %v6737_v60 }
0x15e1   : > { %6942 = vpow2.f32 %v3456_v15  ;;  %v3339_v27 = vmul.f32 1.442695, %v3335_v20  ;;  %v3336_v8 = vsub.f32 %v3320_v62, %v3328_v21  ;;  %v6740_v62 = vld [vmem:[%s8529_s5 + $0xa0] sm:$0xff]  }
0x15e2   : > { %v3331_v26 = vpop.xlane.xlu0 %3330 }
0x15e3   : > { %6944 = vpow2.f32 %v3339_v27  ;;  %v3341_v31 = vmul.f32 1.442695, %v3336_v8  ;;  %v3337_v16 = vsub.f32 %v3321_v30, %v3331_v26  ;;  %6397 = vmatpush3.bf16.msra.mxu1 %v6737_v60  ;;  %v6742_v30 = vld [vmem:[%s8529_s5 + $0xb0] sm:$0xff]  }
0x15e4   : > { %v3334_v32 = vpop.xlane.xlu1 %3333  ;;  %6398 = vmatprep.subr.bf16.mxu1 %v6738_v3 }
0x15e5   : > { %v8013_v40 = vpop.eup %6936  ;;  %6946 = vpow2.f32 %v3341_v31  ;;  %v3343_v28 = vmul.f32 1.442695, %v3337_v16  ;;  %v3338_v35 = vsub.f32 %v3322_v36, %v3334_v32 }
0x15e6   : > { %v3458_v42 = vsel %vm930_vm5, %v8013_v40, 0.0 }
0x15e7   : > { %v8017_v44 = vpop.eup %6938  ;;  %6948 = vpow2.f32 %v3343_v28  ;;  %v3345_v41 = vmul.f32 1.442695, %v3338_v35  ;;  %3459 = vadd.xlane.f32.xlu0 %v3458_v42  ;;  %6399 = vmatpush3.bf16.msra.mxu1 %v6738_v3 }
0x15e8   : > { %v3461_v43 = vsel %vm930_vm5, %v8017_v44, 0.0  ;;  %6400 = vmatprep.subr.bf16.mxu1 %v6739_v61 }
0x15e9   : > { %v8021_v46 = vpop.eup %6940  ;;  %6950 = vpow2.f32 %v3345_v41  ;;  %3462 = vadd.xlane.f32.xlu1 %v3461_v43 }
0x15ea   : > { %v3464_v47 = vsel %vm930_vm5, %v8021_v46, 0.0 }
0x15eb   : > { %v6943_v48 = vpop.eup %6942  ;;  %3465 = vadd.xlane.f32.xlu0 %v3464_v47  ;;  %6401 = vmatpush3.bf16.msra.mxu1 %v6739_v61 }
0x15ec   : > { %v3467_v49 = vsel %vm930_vm5, %v6943_v48, 0.0  ;;  %6402 = vmatprep.subr.bf16.mxu1 %v6740_v62 }
0x15ed   : > { %v8026_v51 = vpop.eup %6944  ;;  %3468 = vadd.xlane.f32.xlu1 %v3467_v49  ;;  %v5682_v49 = vld [vmem:[%s8531_s7 + $0x2] ss:$0 sm:$0xff] }
0x15ee   : > { %v3347_v63 = vsel %vm930_vm5, %v8026_v51, 0.0 }
0x15ef   : > { %v6947_v1 = vpop.eup %6946  ;;  %3348 = vadd.xlane.f32.xlu0 %v3347_v63  ;;  %6403 = vmatpush3.bf16.msra.mxu1 %v6740_v62 }
0x15f0   : > { %v3350_v55 = vsel %vm930_vm5, %v6947_v1, 0.0  ;;  %6404 = vmatprep.subr.bf16.mxu1 %v6741_v0 }
0x15f1   : > { %v8031_v56 = vpop.eup %6948  ;;  %3351 = vadd.xlane.f32.xlu1 %v3350_v55 }
0x15f2   : > { %v3353_v57 = vsel %vm930_vm5, %v8031_v56, 0.0 }
0x15f3   : > { %v8035_v2 = vpop.eup %6950  ;;  %3354 = vadd.xlane.f32.xlu0 %v3353_v57  ;;  %6405 = vmatpush3.bf16.msra.mxu1 %v6741_v0 }
0x15f4   : > { %v3356_v58 = vsel %vm930_vm5, %v8035_v2, 0.0  ;;  %6406 = vmatprep.subr.bf16.mxu1 %v6742_v30 }
0x15f5   : > { %3357 = vadd.xlane.f32.xlu1 %v3356_v58 }
0x15f7   : > { %6407 = vmatpush3.bf16.msra.mxu1 %v6742_v30 }
0x1674   : > { %v3460_v33 = vpop.xlane.xlu0 %3459 }
0x1675   : > { %6952 = vrcp.f32 %v3460_v33 }
0x1676   : > { %v3463_v36 = vpop.xlane.xlu1 %3462 }
0x1677   : > { %6954 = vrcp.f32 %v3463_v36 }
0x1678   : > { %v3466_v4 = vpop.xlane.xlu0 %3465 }
0x1679   : > { %6956 = vrcp.f32 %v3466_v4 }
0x167a   : > { %v3469_v39 = vpop.xlane.xlu1 %3468 }
0x167b   : > { %6958 = vrcp.f32 %v3469_v39 }
0x167c   : > { %v3349_v13 = vpop.xlane.xlu0 %3348 }
0x167d   : > { %6960 = vrcp.f32 %v3349_v13 }
0x167e   : > { %v3352_v5 = vpop.xlane.xlu1 %3351 }
0x167f   : > { %v6953_v6 = vpop.eup %6952  ;;  %6962 = vrcp.f32 %v3352_v5 }
0x1680   : > { %v3355_v12 = vpop.xlane.xlu0 %3354  ;;  %v3474_v52 = vmul.f32 %v6953_v6, %v8013_v40 }
0x1681   : > { %v6955_v10 = vpop.eup %6954 }
0x1682   : > { %v3358_v50 = vpop.xlane.xlu1 %3357  ;;  %v3475_v53 = vmul.f32 %v6955_v10, %v8017_v44 }
0x1683   : > { %v6957_v18 = vpop.eup %6956  ;;  %6964 = vrcp.f32 %v3358_v50 }
0x1684   : > { %v3482_v54 = vpack.c.bf16 %v3475_v53, %v3474_v52  ;;  %6966 = vrcp.f32 %v3355_v12  ;;  %v3476_v23 = vmul.f32 %v6957_v18, %v8021_v46 }
0x1685   : > { %v6959_v19 = vpop.eup %6958 }
0x1686   : > { %v3477_v15 = vmul.f32 %v6959_v19, %v6943_v48  ;;  %6382 = vmatprep.mubr.msk.bf16.mxu0 %vm930_vm5, %v3482_v54 }
0x1687   : > { %v6961_v20 = vpop.eup %6960 }
0x1688   : > { %v3483_v21 = vpack.c.bf16 %v3477_v15, %v3476_v23  ;;  %v3363_v8 = vmul.f32 %v6961_v20, %v8026_v51  ;;  %v6745_v20 = vld [vmem:[%s8534_s10 + $0x88] sm:$0xff]  }
0x1689   : > { %v6963_v27 = vpop.eup %6962 }
0x168a   : > { %6383 = vmatmul.mubr.msk.bf16.vlgmr.msra.gmra.mrb[44].mxu0 %vm930_vm5, %v3483_v21  ;;  %v3364_v26 = vmul.f32 %v6963_v27, %v6947_v1  ;;  %v6746_v21 = vld [vmem:[%s8534_s10 + $0x90] sm:$0xff]   ;;  %v6747_v27 = vld [vmem:[%s8534_s10 + $0x98] sm:$0xff]  }
0x168b   : > { %6387 = vmatpush3.bf16.msra.mxu0 %v7982_v38  ;;  %v6743_v38 = vld [vmem:[%s8529_s5 + $0xb8] sm:$0xff]  }
0x168c   : > { %6388 = vmatprep.subr.bf16.mxu0 %v7980_v29  ;;  %v3371_v31 = vpack.c.bf16 %v3364_v26, %v3363_v8  ;;  %6408 = vmatprep.subr.bf16.mxu1 %v6743_v38  ;;  %v6748_v8 = vld [vmem:[%s8534_s10 + $0xa0] sm:$0xff]   ;;  %v6749_v26 = vld [vmem:[%s8534_s10 + $0xa8] sm:$0xff]  }
0x168d   : > { %v6965_v16 = vpop.eup %6964  ;;  %6409 = vmatpush3.bf16.msra.mxu1 %v6743_v38 }
0x168e   : > { %6390 = vmatprep.mubr.msk.bf16.mxu0 %vm930_vm5, %v3371_v31  ;;  %v6967_v32 = vpop.eup %6966  ;;  %v3366_v40 = vmul.f32 %v6965_v16, %v8035_v2  ;;  %v6750_v31 = vld [vmem:[%s8534_s10 + $0xb0] sm:$0xff]   ;;  %v6751_v16 = vld [vmem:[%s8534_s10 + $0xb8] sm:$0xff]  }
0x168f   : > { %6389 = vmatpush3.bf16.msra.mxu0 %v7980_v29  ;;  %v3365_v28 = vmul.f32 %v6967_v32, %v8031_v56  ;;  %v5672_v29 = vld [vmem:[%s8530_s6 + $0x2] ss:$0 sm:$0xff] }
0x1691   : > { %v3372_v35 = vpack.c.bf16 %v3366_v40, %v3365_v28 }
0x1696   : > { %6391 = vmatmul.mubr.msk.bf16.vlgmr.msra.gmra.mrb[44].mxu0 %vm930_vm5, %v3372_v35 }
0x1769   : > { %v6392_v42 = vpop.f32.mrb[44].mxu0 }
0x176a   : > { %v3581_v44 = vpop.f32.mrb[45].mxu0 }
0x176b   : > { %v6393_v41 = vpop.f32.mrb[46].mxu0 }
0x176c   : > { %v3614_v43 = vpack.c.bf16 %v6393_v41, %v6392_v42  ;;  %v3584_v46 = vpop.f32.mrb[47].mxu0 }
0x176d   : > { %v3613_v47 = vpack.c.bf16 %v3584_v46, %v3581_v44 }
0x176f   : > { %6410 = vmatprep.mubr.bf16.mxu1 %v3613_v47 }
0x1770   : > { %6411 = vmatmul.mubr.bf16.vlgmr.msra.gmra.mrb[48].mxu1 %v3614_v43 }
0x1843   : > { %v6412_v48 = vpop.f32.mrb[48].mxu1 }
0x1844   : > { %v3705_v51 = vpop.f32.mrb[49].mxu1  ;;  %v3714_v63 = vadd.f32 %v6412_v48, %v5672_v29 }
0x1845   : > { %v3706_v1 = vadd.f32 %v5672_v29, %v3705_v51  ;;  %v6413_v55 = vpop.f32.mrb[50].mxu1 }
0x1846   : > { %v3708_v56 = vpop.f32.mrb[51].mxu1  ;;  %v3717_v2 = vadd.f32 %v6413_v55, %v5672_v29  ;;  %v3730_v59 = vmul.f32 %v5682_v49, %v3714_v63 }
0x1847   : > { %v3728_v57 = vmul.f32 %v5682_v49, %v3706_v1  ;;  %v3709_v58 = vadd.f32 %v5672_v29, %v3708_v56 }
0x1848   : > { %v3731_v61 = vmul.f32 %v5682_v49, %v3717_v2  ;;  %v8091_v0 = vadd.f32 %v3730_v59, %v7844_v7 }
0x1849   : > { %v3729_v60 = vmul.f32 %v5682_v49, %v3709_v58  ;;  %v8083_v3 = vadd.f32 %v3728_v57, %v7836_v11  ;;  %v6744_v11 = vld [vmem:[%s8534_s10 + $0x80] sm:$0xff]  }
0x184a   : > { %v8095_v30 = vadd.f32 %v3731_v61, %v7848_v17  ;;  %6414 = vmatprep.subr.bf16.mxu0 %v6744_v11  ;;  %v5685_v49 = vld [vmem:[%s8532_s8 + $0x2] ss:$0 sm:$0xff] }
0x184b   : > { %3740 = vadd.xlane.f32.xlu0 %v8083_v3  ;;  %v8087_v62 = vadd.f32 %v3729_v60, %v7840_v14  ;;  %6415 = vmatpush3.bf16.msra.mxu0 %v6744_v11  ;;  %v5686_v57 = vld [vmem:[%s8533_s9 + $0x2] ss:$0 sm:$0xff] }
0x184c   : > { %6416 = vmatprep.subr.bf16.mxu0 %v6745_v20 }
0x184d   : > { %3742 = vadd.xlane.f32.xlu1 %v8087_v62 }
0x184f   : > { %3744 = vadd.xlane.f32.xlu0 %v8091_v0  ;;  %6417 = vmatpush3.bf16.msra.mxu0 %v6745_v20 }
0x1850   : > { %6418 = vmatprep.subr.bf16.mxu0 %v6746_v21 }
0x1851   : > { %3746 = vadd.xlane.f32.xlu1 %v8095_v30 }
0x1853   : > { %6419 = vmatpush3.bf16.msra.mxu0 %v6746_v21 }
0x1854   : > { %6420 = vmatprep.subr.bf16.mxu0 %v6747_v27 }
0x1857   : > { %6421 = vmatpush3.bf16.msra.mxu0 %v6747_v27 }
0x1858   : > { %6422 = vmatprep.subr.bf16.mxu0 %v6748_v8 }
0x185b   : > { %6423 = vmatpush3.bf16.msra.mxu0 %v6748_v8 }
0x185c   : > { %6424 = vmatprep.subr.bf16.mxu0 %v6749_v26 }
0x185f   : > { %6425 = vmatpush3.bf16.msra.mxu0 %v6749_v26 }
0x1860   : > { %6426 = vmatprep.subr.bf16.mxu0 %v6750_v31 }
0x1863   : > { %6427 = vmatpush3.bf16.msra.mxu0 %v6750_v31 }
0x1864   : > { %6428 = vmatprep.subr.bf16.mxu0 %v6751_v16 }
0x1867   : > { %6429 = vmatpush3.bf16.msra.mxu0 %v6751_v16 }
0x18d8   : > { %v3741_v14 = vpop.xlane.xlu0 %3740 }
0x18d9   : > { %v3748_v33 = vmul.f32 0.03125, %v3741_v14 }
0x18da   : > { %v3743_v36 = vpop.xlane.xlu1 %3742 }
0x18db   : > { %v3752_v4 = vsub.f32 %v8083_v3, %v3748_v33  ;;  %v3749_v7 = vmul.f32 0.03125, %v3743_v36 }
0x18dc   : > { %v3745_v39 = vpop.xlane.xlu0 %3744 }
0x18dd   : > { %v3753_v13 = vsub.f32 %v8087_v62, %v3749_v7  ;;  %v3750_v5 = vmul.f32 0.03125, %v3745_v39  ;;  %v3756_v17 = vsel %vm505_vm0, %v3752_v4, 0.0 }
0x18de   : > { %v3747_v6 = vpop.xlane.xlu1 %3746  ;;  %v3760_v10 = vmul.f32 %v3756_v17, %v3756_v17 }
0x18df   : > { %v3754_v12 = vsub.f32 %v8091_v0, %v3750_v5  ;;  %v3751_v50 = vmul.f32 0.03125, %v3747_v6  ;;  %v3757_v52 = vsel %vm505_vm0, %v3753_v13, 0.0  ;;  %v6752_v13 = vld [vmem:[%s8536_s12 + $0x80] sm:$0xff]   ;;  %v6753_v5 = vld [vmem:[%s8536_s12 + $0x88] sm:$0xff]   ;;  %v6755_v6 = vld [vmem:[%s8536_s12 + $0x98] sm:$0xff]  }
0x18e0   : > { %3764 = vadd.xlane.f32.xlu0 %v3760_v10  ;;  %v3761_v53 = vmul.f32 %v3757_v52, %v3757_v52  ;;  %6434 = vmatprep.subr.bf16.mxu1 %v6752_v13  ;;  %v6756_v10 = vld [vmem:[%s8536_s12 + $0xa0] sm:$0xff]  }
0x18e1   : > { %v3755_v18 = vsub.f32 %v8095_v30, %v3751_v50  ;;  %v3758_v54 = vsel %vm505_vm0, %v3754_v12, 0.0  ;;  %6435 = vmatpush3.bf16.msra.mxu1 %v6752_v13  ;;  %v6757_v12 = vld [vmem:[%s8536_s12 + $0xa8] sm:$0xff]   ;;  %v6758_v50 = vld [vmem:[%s8536_s12 + $0xb0] sm:$0xff]  }
0x18e2   : > { %3766 = vadd.xlane.f32.xlu1 %v3761_v53  ;;  %v3762_v19 = vmul.f32 %v3758_v54, %v3758_v54  ;;  %6436 = vmatprep.subr.bf16.mxu1 %v6753_v5  ;;  %v5704_v53 = vld [vmem:[%s8535_s11 + $0x2] ss:$0 sm:$0xff] }
0x18e3   : > { %v3759_v23 = vsel %vm505_vm0, %v3755_v18, 0.0 }
0x18e4   : > { %3768 = vadd.xlane.f32.xlu0 %v3762_v19  ;;  %v3763_v15 = vmul.f32 %v3759_v23, %v3759_v23 }
0x18e5   : > { %6437 = vmatpush3.bf16.msra.mxu1 %v6753_v5 }
0x18e6   : > { %3770 = vadd.xlane.f32.xlu1 %v3763_v15 }
0x196d   : > { %v3765_v32 = vpop.xlane.xlu0 %3764 }
0x196e   : > { %v3772_v40 = vmul.f32 0.03125, %v3765_v32 }
0x196f   : > { %v3767_v28 = vpop.xlane.xlu1 %3766 }
0x1970   : > { %v3776_v35 = vadd.f32 1e-06, %v3772_v40  ;;  %v3773_v38 = vmul.f32 0.03125, %v3767_v28 }
0x1971   : > { %v3769_v42 = vpop.xlane.xlu0 %3768 }
0x1972   : > { %6968 = vrsqrt.f32 %v3776_v35  ;;  %v3777_v44 = vadd.f32 1e-06, %v3773_v38  ;;  %v3774_v41 = vmul.f32 0.03125, %v3769_v42 }
0x1973   : > { %v3771_v43 = vpop.xlane.xlu1 %3770 }
0x1974   : > { %6970 = vrsqrt.f32 %v3777_v44  ;;  %v3778_v46 = vadd.f32 1e-06, %v3774_v41  ;;  %v3775_v47 = vmul.f32 0.03125, %v3771_v43 }
0x1976   : > { %6972 = vrsqrt.f32 %v3778_v46  ;;  %v3779_v29 = vadd.f32 1e-06, %v3775_v47 }
0x1978   : > { %6974 = vrsqrt.f32 %v3779_v29 }
0x197c   : > { %v6969_v48 = vpop.eup %6968 }
0x197d   : > { %v3784_v51 = vmul.f32 %v6969_v48, %v3756_v17  ;;  %v6754_v17 = vld [vmem:[%s8536_s12 + $0x90] sm:$0xff]  }
0x197e   : > { %v6971_v63 = vpop.eup %6970  ;;  %6438 = vmatprep.subr.bf16.mxu1 %v6754_v17 }
0x197f   : > { %v3785_v1 = vmul.f32 %v6971_v63, %v3757_v52  ;;  %v3794_v55 = vmul.f32 %v5685_v49, %v3784_v51  ;;  %6439 = vmatpush3.bf16.msra.mxu1 %v6754_v17  ;;  %v6759_v52 = vld [vmem:[%s8536_s12 + $0xb8] sm:$0xff]   ;;  %v5731_v17 = vld [vmem:[%s8537_s13 + $0x2] ss:$0 sm:$0xff] }
0x1980   : > { %v6973_v56 = vpop.eup %6972  ;;  %6440 = vmatprep.subr.bf16.mxu1 %v6755_v6 }
0x1981   : > { %v3786_v2 = vmul.f32 %v6973_v56, %v3758_v54  ;;  %v3795_v58 = vmul.f32 %v5685_v49, %v3785_v1  ;;  %v3804_v61 = vadd.f32 %v5686_v57, %v3794_v55 }
0x1982   : > { %v6975_v59 = vpop.eup %6974 }
0x1983   : > { %v3787_v60 = vmul.f32 %v6975_v59, %v3759_v23  ;;  %v3805_v11 = vadd.f32 %v5686_v57, %v3795_v58  ;;  %v3796_v14 = vmul.f32 %v5685_v49, %v3786_v2  ;;  %6441 = vmatpush3.bf16.msra.mxu1 %v6755_v6 }
0x1984   : > { %6442 = vmatprep.subr.bf16.mxu1 %v6756_v10 }
0x1985   : > { %v3825_v33 = vpack.c.bf16 %v3805_v11, %v3804_v61  ;;  %v3797_v36 = vmul.f32 %v5685_v49, %v3787_v60  ;;  %v3806_v4 = vadd.f32 %v5686_v57, %v3796_v14 }
0x1987   : > { %6430 = vmatprep.mubr.bf16.mxu0 %v3825_v33  ;;  %v3807_v7 = vadd.f32 %v5686_v57, %v3797_v36  ;;  %6443 = vmatpush3.bf16.msra.mxu1 %v6756_v10  ;;  %v5740_v10 = vld [vmem:[%s8538_s14 + $0x2] ss:$0 sm:$0xff] }
0x1988   : > { %6444 = vmatprep.subr.bf16.mxu1 %v6757_v12 }
0x1989   : > { %v3826_v39 = vpack.c.bf16 %v3807_v7, %v3806_v4 }
0x198b   : > { %6431 = vmatmul.mubr.bf16.vlgmr.msra.gmra.mrb[48].mxu0 %v3826_v39  ;;  %6445 = vmatpush3.bf16.msra.mxu1 %v6757_v12 }
0x198c   : > { %4393 = vmatprep.mubr.bf16.mxu0 %v7052_v45  ;;  %6446 = vmatprep.subr.bf16.mxu1 %v6758_v50 }
0x198f   : > { %6447 = vmatpush3.bf16.msra.mxu1 %v6758_v50 }
0x1990   : > { %6448 = vmatprep.subr.bf16.mxu1 %v6759_v52 }
0x1993   : > { %6449 = vmatpush3.bf16.msra.mxu1 %v6759_v52 }
0x1a5e   : > { %v6432_v18 = vpop.f32.mrb[48].mxu0 }
0x1a5f   : > { %v3926_v54 = vadd.f32 %v6432_v18, %v5704_v53  ;;  %v3917_v19 = vpop.f32.mrb[49].mxu0 }
0x1a60   : > { %v3918_v23 = vadd.f32 %v5704_v53, %v3917_v19  ;;  %v6433_v15 = vpop.f32.mrb[50].mxu0 }
0x1a61   : > { %v3938_v20 = vmul.f32 0.044715, %v3926_v54  ;;  %v3929_v21 = vadd.f32 %v6433_v15, %v5704_v53  ;;  %v3920_v27 = vpop.f32.mrb[51].mxu0  ;;  %v3934_v59 = vmul.f32 0.5, %v3926_v54 }
0x1a62   : > { %v3936_v8 = vmul.f32 0.044715, %v3918_v23  ;;  %v3921_v26 = vadd.f32 %v5704_v53, %v3920_v27  ;;  %v3932_v11 = vmul.f32 0.5, %v3918_v23 }
0x1a63   : > { %v3942_v31 = vmul.f32 %v3938_v20, %v3926_v54  ;;  %v3939_v16 = vmul.f32 0.044715, %v3929_v21  ;;  %v3935_v60 = vmul.f32 0.5, %v3929_v21 }
0x1a64   : > { %v3940_v32 = vmul.f32 %v3936_v8, %v3918_v23  ;;  %v3937_v40 = vmul.f32 0.044715, %v3921_v26  ;;  %v3933_v14 = vmul.f32 0.5, %v3921_v26 }
0x1a65   : > { %v3946_v28 = vmul.f32 %v3942_v31, %v3926_v54  ;;  %v3943_v35 = vmul.f32 %v3939_v16, %v3929_v21  ;;  %v6766_v16 = vld [vmem:[%s8527_s3 + $0x248] ss:$12 sps:$4 sm:$0xff]  }
0x1a66   : > { %v3944_v38 = vmul.f32 %v3940_v32, %v3918_v23  ;;  %v3941_v42 = vmul.f32 %v3937_v40, %v3921_v26  ;;  %6454 = vmatprep.subr.bf16.mxu1 %v6766_v16 }
0x1a67   : > { %v3950_v44 = vadd.f32 %v3946_v28, %v3926_v54  ;;  %v3947_v41 = vmul.f32 %v3943_v35, %v3929_v21 }
0x1a68   : > { %v3945_v43 = vmul.f32 %v3941_v42, %v3921_v26  ;;  %v3948_v46 = vadd.f32 %v3944_v38, %v3918_v23 }
0x1a69   : > { %v3954_v47 = vmul.f32 0.7978846, %v3950_v44  ;;  %v3951_v29 = vadd.f32 %v3947_v41, %v3929_v21 }
0x1a6a   : > { %v3949_v48 = vadd.f32 %v3945_v43, %v3921_v26  ;;  %v3952_v49 = vmul.f32 0.7978846, %v3948_v46 }
0x1a6b   : > { %6976 = vtanh.f32 %v3954_v47  ;;  %v3955_v51 = vmul.f32 0.7978846, %v3951_v29 }
0x1a6c   : > { %v3953_v63 = vmul.f32 0.7978846, %v3949_v48  ;;  %6978 = vtanh.f32 %v3952_v49 }
0x1a6d   : > { %6980 = vtanh.f32 %v3955_v51 }
0x1a6e   : > { %6982 = vtanh.f32 %v3953_v63 }
0x1a75   : > { %v6977_v1 = vpop.eup %6976 }
0x1a76   : > { %v6979_v55 = vpop.eup %6978  ;;  %v3962_v56 = vadd.f32 1.0, %v6977_v1 }
0x1a77   : > { %v6981_v57 = vpop.eup %6980  ;;  %v3960_v2 = vadd.f32 1.0, %v6979_v55 }
0x1a78   : > { %v6983_v58 = vpop.eup %6982  ;;  %v3963_v61 = vadd.f32 1.0, %v6981_v57  ;;  %v3966_v36 = vmul.f32 %v3962_v56, %v3934_v59  ;;  %v6767_v59 = vld [vmem:[%s8527_s3 + $0x270] ss:$12 sps:$4 sm:$0xff]  }
0x1a79   : > { %v3961_v33 = vadd.f32 1.0, %v6983_v58  ;;  %v3964_v7 = vmul.f32 %v3960_v2, %v3932_v11  ;;  %v6769_v2 = vld [vmem:[%s8527_s3 + $0x274] ss:$12 sps:$4 sm:$0xff]  }
0x1a7a   : > { %v3967_v4 = vmul.f32 %v3963_v61, %v3935_v60  ;;  %v6770_v58 = vld [vmem:[%s8527_s3 + $0x260] ss:$12 sps:$4 sm:$0xff]   ;;  %v6774_v61 = vld [vmem:[%s8527_s3 + $0x278] ss:$12 sps:$4 sm:$0xff]   ;;  %v6771_v11 = vld [vmem:[%s8527_s3 + $0x288] ss:$12 sps:$4 sm:$0xff]  }
0x1a7b   : > { %v3965_v39 = vmul.f32 %v3961_v33, %v3933_v14  ;;  %v6773_v60 = vld [vmem:[%s8527_s3 + $0x28c] ss:$12 sps:$4 sm:$0xff]   ;;  %v6777_v14 = vld [vmem:[%s8527_s3 + $0x2a4] ss:$12 sps:$4 sm:$0xff]  }
0x1a7c   : > { %v3988_v13 = vpack.c.bf16 %v3967_v4, %v3966_v36  ;;  %v6778_v33 = vld [vmem:[%s8527_s3 + $0x290] ss:$12 sps:$4 sm:$0xff]   ;;  %v6775_v36 = vld [vmem:[%s8527_s3 + $0x2a0] ss:$12 sps:$4 sm:$0xff]  }
0x1a7d   : > { %v3987_v5 = vpack.c.bf16 %v3965_v39, %v3964_v7  ;;  %v6781_v4 = vld [vmem:[%s8527_s3 + $0x2bc] ss:$12 sps:$4 sm:$0xff]   ;;  %v6779_v39 = vld [vmem:[%s8527_s3 + $0x2b8] ss:$12 sps:$4 sm:$0xff]  }
0x1a7e   : > { %v6782_v7 = vld [vmem:[%s8527_s3 + $0x2a8] ss:$12 sps:$4 sm:$0xff]  }
0x1a7f   : > { %6450 = vmatprep.mubr.bf16.mxu1 %v3987_v5  ;;  %v6786_v5 = vld [vmem:[%s8527_s3 + $0x2c0] ss:$12 sps:$4 sm:$0xff]  }
0x1a80   : > { %6451 = vmatmul.mubr.bf16.vlgmr.msra.gmra.mrb[52].mxu1 %v3988_v13  ;;  %v6785_v13 = vld [vmem:[%s8527_s3 + $0x2d4] ss:$12 sps:$4 sm:$0xff]  }
0x1a81   : > { %6455 = vmatpush3.bf16.msra.mxu1 %v6766_v16 }
0x1a82   : > { %6456 = vmatprep.subr.bf16.mxu1 %v6770_v58 }
0x1a85   : > { %6457 = vmatpush3.bf16.msra.mxu1 %v6770_v58 }
0x1a86   : > { %6458 = vmatprep.subr.bf16.mxu1 %v6774_v61 }
0x1a89   : > { %6459 = vmatpush3.bf16.msra.mxu1 %v6774_v61 }
0x1a8a   : > { %6460 = vmatprep.subr.bf16.mxu1 %v6778_v33 }
0x1a8d   : > { %6461 = vmatpush3.bf16.msra.mxu1 %v6778_v33 }
0x1a8e   : > { %6462 = vmatprep.subr.bf16.mxu1 %v6782_v7 }
0x1a91   : > { %6463 = vmatpush3.bf16.msra.mxu1 %v6782_v7 }
0x1a92   : > { %6464 = vmatprep.subr.bf16.mxu1 %v6786_v5 }
0x1a95   : > { %6465 = vmatpush3.bf16.msra.mxu1 %v6786_v5 }
0x1b53   : > { %v6452_v6 = vpop.f32.mrb[52].mxu1 }
0x1b54   : > { %v4079_v12 = vpop.f32.mrb[53].mxu1  ;;  %v4088_v50 = vadd.f32 %v6452_v6, %v5731_v17  ;;  %v6787_v6 = vld [vmem:[%s8527_s3 + $0x2e8] ss:$12 sps:$4 sm:$0xff]  }
0x1b55   : > { %v4080_v52 = vadd.f32 %v5731_v17, %v4079_v12  ;;  %v6453_v53 = vpop.f32.mrb[54].mxu1  ;;  %v6790_v12 = vld [vmem:[%s8527_s3 + $0x2d8] ss:$12 sps:$4 sm:$0xff]  }
0x1b56   : > { %v4082_v18 = vpop.f32.mrb[55].mxu1  ;;  %v4091_v19 = vadd.f32 %v6453_v53, %v5731_v17  ;;  %v4102_v15 = vmul.f32 %v5740_v10, %v4088_v50  ;;  %6466 = vmatprep.subr.bf16.mxu1 %v6790_v12  ;;  %v6791_v50 = vld [vmem:[%s8527_s3 + $0x2f0] ss:$12 sps:$4 sm:$0xff]  }
0x1b57   : > { %v4100_v54 = vmul.f32 %v5740_v10, %v4080_v52  ;;  %v4083_v23 = vadd.f32 %v5731_v17, %v4082_v18  ;;  %v6783_v17 = vld [vmem:[%s8527_s3 + $0x2d0] ss:$12 sps:$4 sm:$0xff]   ;;  %6467 = vmatpush3.bf16.msra.mxu1 %v6790_v12 }
0x1b58   : > { %v4103_v27 = vmul.f32 %v5740_v10, %v4091_v19  ;;  %v8183_v26 = vadd.f32 %v4102_v15, %v8091_v0  ;;  %v6765_v0 = vld [vmem:[%s8527_s3 + $0x25c] ss:$12 sps:$4 sm:$0xff]   ;;  %6468 = vmatprep.subr.bf16.mxu1 %v6791_v50 }
0x1b59   : > { %v4101_v20 = vmul.f32 %v5740_v10, %v4083_v23  ;;  %v8175_v21 = vadd.f32 %v4100_v54, %v8083_v3  ;;  %v6760_v3 = vld [vmem:[%s8527_s3 + $0x240] ss:$12 sps:$4 sm:$0xff]  }
0x1b5a   : > { %v8187_v31 = vadd.f32 %v4103_v27, %v8095_v30  ;;  %v6763_v30 = vld [vmem:[%s8527_s3 + $0x258] ss:$12 sps:$4 sm:$0xff]  }
0x1b5b   : > { %4112 = vadd.xlane.f32.xlu0 %v8175_v21  ;;  %v8179_v8 = vadd.f32 %v4101_v20, %v8087_v62  ;;  %v6762_v62 = vld [vmem:[%s8527_s3 + $0x244] ss:$12 sps:$4 sm:$0xff]   ;;  %v6789_v10 = vld [vmem:[%s8527_s3 + $0x2ec] ss:$12 sps:$4 sm:$0xff]   ;;  %6469 = vmatpush3.bf16.msra.mxu1 %v6791_v50 }
0x1b5c   : > { %4361 = vmatprep.subr.bf16.mxu0 %v6762_v62 }
0x1b5d   : > { %4114 = vadd.xlane.f32.xlu1 %v8179_v8  ;;  %4362 = vmatpush1.bf16.msra.mxu0 %v6760_v3 }
0x1b5e   : > { %4363 = vmatprep.subr.bf16.mxu0 %v6765_v0 }
0x1b5f   : > { %4116 = vadd.xlane.f32.xlu0 %v8183_v26 }
0x1b61   : > { %4118 = vadd.xlane.f32.xlu1 %v8187_v31  ;;  %4364 = vmatpush1.bf16.msra.mxu0 %v6763_v30  ;;  %v5743_v30 = vld [vmem:[%s8525_s1 + $0x3] ss:$0 sm:$0xff] }
0x1b62   : > { %4365 = vmatprep.subr.bf16.mxu0 %v6769_v2 }
0x1b65   : > { %4366 = vmatpush1.bf16.msra.mxu0 %v6767_v59 }
0x1b66   : > { %4367 = vmatprep.subr.bf16.mxu0 %v6773_v60 }
0x1b69   : > { %4368 = vmatpush1.bf16.msra.mxu0 %v6771_v11 }
0x1b6a   : > { %4369 = vmatprep.subr.bf16.mxu0 %v6777_v14 }
0x1b6d   : > { %4370 = vmatpush1.bf16.msra.mxu0 %v6775_v36 }
0x1b6e   : > { %4371 = vmatprep.subr.bf16.mxu0 %v6781_v4 }
0x1b71   : > { %4372 = vmatpush1.bf16.msra.mxu0 %v6779_v39 }
0x1b72   : > { %4373 = vmatprep.subr.bf16.mxu0 %v6785_v13 }
0x1b75   : > { %4374 = vmatpush1.bf16.msra.mxu0 %v6783_v17 }
0x1b76   : > { %4375 = vmatprep.subr.bf16.mxu0 %v6789_v10 }
0x1b79   : > { %4376 = vmatpush1.bf16.msra.mxu0 %v6787_v6 }
0x1be8   : > { %v4113_v32 = vpop.xlane.xlu0 %4112 }
0x1be9   : > { %v4120_v40 = vmul.f32 0.03125, %v4113_v32 }
0x1bea   : > { %v4115_v28 = vpop.xlane.xlu1 %4114 }
0x1beb   : > { %v4124_v35 = vsub.f32 %v8175_v21, %v4120_v40  ;;  %v4121_v38 = vmul.f32 0.03125, %v4115_v28 }
0x1bec   : > { %v4117_v42 = vpop.xlane.xlu0 %4116 }
0x1bed   : > { %v8208_v44 = vsel %vm505_vm0, %v4124_v35, 0.0  ;;  %v4125_v41 = vsub.f32 %v8179_v8, %v4121_v38  ;;  %v4122_v43 = vmul.f32 0.03125, %v4117_v42  ;;  %v5744_v42 = vld [vmem:[%s8526_s2 + $0x3] ss:$0 sm:$0xff] }
0x1bee   : > { %v4119_v46 = vpop.xlane.xlu1 %4118  ;;  %v4132_v47 = vmul.f32 %v8208_v44, %v8208_v44 }
0x1bef   : > { %v8215_v29 = vsel %vm505_vm0, %v4125_v41, 0.0  ;;  %v4126_v48 = vsub.f32 %v8183_v26, %v4122_v43  ;;  %v4123_v49 = vmul.f32 0.03125, %v4119_v46 }
0x1bf0   : > { %4136 = vadd.xlane.f32.xlu0 %v4132_v47  ;;  %v4133_v51 = vmul.f32 %v8215_v29, %v8215_v29 }
0x1bf1   : > { %v8222_v63 = vsel %vm505_vm0, %v4126_v48, 0.0  ;;  %v4127_v1 = vsub.f32 %v8187_v31, %v4123_v49 }
0x1bf2   : > { %4138 = vadd.xlane.f32.xlu1 %v4133_v51  ;;  %v4134_v55 = vmul.f32 %v8222_v63, %v8222_v63 }
0x1bf3   : > { %v8229_v56 = vsel %vm505_vm0, %v4127_v1, 0.0 }
0x1bf4   : > { %4140 = vadd.xlane.f32.xlu0 %v4134_v55  ;;  %v4135_v57 = vmul.f32 %v8229_v56, %v8229_v56 }
0x1bf6   : > { %4142 = vadd.xlane.f32.xlu1 %v4135_v57 }
0x1c7d   : > { %v4137_v52 = vpop.xlane.xlu0 %4136 }
0x1c7e   : > { %v4144_v53 = vmul.f32 0.03125, %v4137_v52 }
0x1c7f   : > { %v4139_v18 = vpop.xlane.xlu1 %4138 }
0x1c80   : > { %v4148_v54 = vadd.f32 1e-06, %v4144_v53  ;;  %v4145_v19 = vmul.f32 0.03125, %v4139_v18 }
0x1c81   : > { %v4141_v23 = vpop.xlane.xlu0 %4140 }
0x1c82   : > { %6984 = vrsqrt.f32 %v4148_v54  ;;  %v4149_v15 = vadd.f32 1e-06, %v4145_v19  ;;  %v4146_v20 = vmul.f32 0.03125, %v4141_v23 }
0x1c83   : > { %v4143_v27 = vpop.xlane.xlu1 %4142 }
0x1c84   : > { %6986 = vrsqrt.f32 %v4149_v15  ;;  %v4150_v3 = vadd.f32 1e-06, %v4146_v20  ;;  %v4147_v62 = vmul.f32 0.03125, %v4143_v27 }
0x1c86   : > { %6988 = vrsqrt.f32 %v4150_v3  ;;  %v4151_v0 = vadd.f32 1e-06, %v4147_v62 }
0x1c88   : > { %6990 = vrsqrt.f32 %v4151_v0 }
0x1c8c   : > { %v6985_v16 = vpop.eup %6984 }
0x1c8d   : > { %v4156_v32 = vmul.f32 %v6985_v16, %v8208_v44 }
0x1c8e   : > { %v6987_v40 = vpop.eup %6986 }
0x1c8f   : > { %v4157_v28 = vmul.f32 %v6987_v40, %v8215_v29  ;;  %v4166_v35 = vmul.f32 %v5743_v30, %v4156_v32 }
0x1c90   : > { %v6989_v38 = vpop.eup %6988 }
0x1c91   : > { %v4158_v41 = vmul.f32 %v6989_v38, %v8222_v63  ;;  %v4167_v43 = vmul.f32 %v5743_v30, %v4157_v28  ;;  %v4176_v48 = vadd.f32 %v5744_v42, %v4166_v35  ;;  %v5777_v63 = vld [vmem:[%s8528_s4 + $0x9] sm:$0x7] }
0x1c92   : > { %v6991_v46 = vpop.eup %6990  ;;  %v4221_v2 = vrot.slane %v5777_v63, %v7274_v24  ;;  %v4229_v60 = vrot.slane %v5777_v63, %v7276_v25 }
0x1c93   : > { %v4159_v47 = vmul.f32 %v6991_v46, %v8229_v56  ;;  %v4177_v49 = vadd.f32 %v5744_v42, %v4167_v43  ;;  %v4168_v51 = vmul.f32 %v5743_v30, %v4158_v41  ;;  %v4225_v56 = vrot.slane %v5777_v63, %v7269_v22 }
0x1c95   : > { %v4213_v1 = vpack.c.bf16 %v4177_v49, %v4176_v48  ;;  %v4169_v44 = vmul.f32 %v5743_v30, %v4159_v47  ;;  %v4178_v29 = vadd.f32 %v5744_v42, %v4168_v51 }
0x1c97   : > { %4394 = vmatmul.mubr.bf16.vlgmr.msra.gmra.mrb[52].mxu0 %v4213_v1  ;;  %6470 = vmatprep.mubr.bf16.mxu1 %v4213_v1  ;;  %v4179_v55 = vadd.f32 %v5744_v42, %v4169_v44 }
0x1c98   : > { %4403 = vmatprep.mubr.bf16.mxu0 %v7052_v45 }
0x1c99   : > { %v4214_v57 = vpack.c.bf16 %v4179_v55, %v4178_v29 }
0x1c9b   : > { %6471 = vmatmul.mubr.bf16.vlgmr.msra.gmra.mrb[56].mxu1 %v4214_v57 }
0x1c9f   : > { %4404 = vmatmul.mubr.bf16.gmra.mrb[56].mxu0 %v4214_v57 }
0x1d6a   : > { %v4395_v58 = vpop.f32.mrb[52].mxu0 }
0x1d6b   : > { %v4397_v59 = vpop.f32.mrb[53].mxu0  ;;  %v4396_v14 = vadd.f32 %v4395_v58, %v4221_v2 }
0x1d6c   : > { %v4398_v61 = vadd.f32 %v4397_v59, %v4225_v56  ;;  %v4399_v11 = vpop.f32.mrb[54].mxu0 }
0x1d6d   : > { %v4400_v33 = vadd.f32 %v4399_v11, %v4221_v2  ;;  %v4401_v45 = vpop.f32.mrb[55].mxu0 }
0x1d6e   : > { %v4402_v36 = vadd.f32 %v4401_v45, %v4225_v56  ;;  %v6472_v4 = vpop.f32.mrb[56].mxu1  ;;  %v4463_v5 = vmul.f32 %v4398_v61, %v7285_v34  ;;  %v4576_v25 = vmul.f32 %v4398_v61, %v7287_v37 }
0x1d6f   : > { %v4467_v7 = vpack.c.bf16 %v4400_v33, %v4396_v14  ;;  %v4457_v39 = vadd.f32 %v6472_v4, %v4229_v60  ;;  %v4448_v13 = vpop.f32.mrb[57].mxu1 }
0x1d70   : > { %v4464_v22 = vmul.f32 %v4402_v36, %v7285_v34  ;;  %v4577_v24 = vmul.f32 %v4402_v36, %v7287_v37  ;;  %v4449_v17 = vadd.f32 %v4448_v13, %v4229_v60  ;;  %v6473_v6 = vpop.f32.mrb[58].mxu1 }
0x1d71   : > { %v4460_v10 = vadd.f32 %v6473_v6, %v4229_v60  ;;  %v4451_v12 = vpop.f32.mrb[59].mxu1  ;;  %6478 = vmatprep.mubr.bf16.mxu0 %v4467_v7  ;;  %v4570_v50 = vmul.f32 %v4457_v39, %v7285_v34  ;;  %v4681_v52 = vmul.f32 %v4457_v39, %v7287_v37 }
0x1d72   : > { %v4452_v53 = vadd.f32 %v4451_v12, %v4229_v60  ;;  %v4405_v18 = vpop.f32.mrb[56].mxu0  ;;  %v4469_v54 = vpack.c.bf16 %v4464_v22, %v4463_v5  ;;  %v4568_v19 = vmul.f32 %v4449_v17, %v7285_v34  ;;  %v4580_v27 = vpack.c.bf16 %v4577_v24, %v4576_v25 }
0x1d73   : > { %v4571_v23 = vmul.f32 %v4460_v10, %v7285_v34  ;;  %v4682_v15 = vmul.f32 %v4460_v10, %v7287_v37  ;;  %v4407_v20 = vpop.f32.mrb[57].mxu0  ;;  %v4679_v3 = vmul.f32 %v4449_v17, %v7287_v37  ;;  %v4406_v32 = vadd.f32 %v4405_v18, %v4221_v2 }
0x1d74   : > { %v4569_v62 = vmul.f32 %v4452_v53, %v7285_v34  ;;  %v4680_v0 = vmul.f32 %v4452_v53, %v7287_v37  ;;  %v4408_v16 = vadd.f32 %v4407_v20, %v4225_v56  ;;  %v4409_v30 = vpop.f32.mrb[58].mxu0  ;;  %6474 = vmatprep.subr.bf16.mxu0 %v4469_v54 }
0x1d75   : > { %v4410_v40 = vadd.f32 %v4409_v30, %v4221_v2  ;;  %v4411_v28 = vpop.f32.mrb[59].mxu0  ;;  %6475 = vmatpush3.bf16.xpose.msra.mxu0 %v4469_v54  ;;  %v4686_v35 = vpack.c.bf16 %v4682_v15, %v4681_v52  ;;  %v8319_v38 = vpack.c.bf16 %v4571_v23, %v4570_v50 }
0x1d76   : > { %v4412_v42 = vadd.f32 %v4411_v28, %v4225_v56  ;;  %v4685_v41 = vpack.c.bf16 %v4680_v0, %v4679_v3  ;;  %v8321_v46 = vpack.c.bf16 %v4569_v62, %v4568_v19  ;;  %v4465_v47 = vmul.f32 %v4408_v16, %v7285_v34 }
0x1d77   : > { %v4468_v43 = vpack.c.bf16 %v4410_v40, %v4406_v32  ;;  %v4578_v48 = vmul.f32 %v4408_v16, %v7287_v37 }
0x1d78   : > { %v4466_v49 = vmul.f32 %v4412_v42, %v7285_v34  ;;  %v4579_v51 = vmul.f32 %v4412_v42, %v7287_v37  ;;  %6490 = vmatprep.subr.bf16.mxu1 %v4685_v41 }
0x1d79   : > { %6491 = vmatpush3.bf16.msra.mxu1 %v4685_v41 }
0x1d7a   : > { %6492 = vmatprep.subr.bf16.mxu1 %v4686_v35  ;;  %v4470_v1 = vpack.c.bf16 %v4466_v49, %v4465_v47  ;;  %v4581_v44 = vpack.c.bf16 %v4579_v51, %v4578_v48 }
0x1d7c   : > { %6476 = vmatprep.subr.bf16.mxu0 %v4470_v1 }
0x1d7d   : > { %6477 = vmatpush3.bf16.xpose.msra.mxu0 %v4470_v1  ;;  %6493 = vmatpush3.bf16.msra.mxu1 %v4686_v35 }
0x1d7e   : > { %6482 = vmatprep.subr.bf16.mxu0 %v4580_v27  ;;  %6498 = vmatprep.subr.bf16.mxu1 %v8321_v46 }
0x1d84   : > { %6479 = vmatmul.mubr.bf16.vlgmr.msra.gmra.mrb[60].mxu0 %v4468_v43 }
0x1d85   : > { %6483 = vmatpush3.bf16.xpose.msra.mxu0 %v4580_v27  ;;  %6486 = vmatprep.mubr.bf16.mxu0 %v4467_v7 }
0x1d86   : > { %6484 = vmatprep.subr.bf16.mxu0 %v4581_v44 }
0x1d8d   : > { %6485 = vmatpush3.bf16.xpose.msra.mxu0 %v4581_v44 }
0x1d94   : > { %6487 = vmatmul.mubr.bf16.vlgmr.msra.gmra.mrb[64].mxu0 %v4468_v43 }
0x1e57   : > { %v6480_v34 = vpop.f32.mrb[60].mxu0 }
0x1e58   : > { %v4505_v29 = vpop.f32.mrb[61].mxu0  ;;  %v4522_v39 = vsel %vm506_vm4, %v6480_v34, -1e+30 }
0x1e59   : > { %v6481_v37 = vpop.f32.mrb[62].mxu0  ;;  %v4520_v45 = vsel %vm506_vm4, %v4505_v29, -1e+30  ;;  %v4530_v22 = vsel %vm930_vm5, %v4522_v39, -inf }
0x1e5a   : > { %v4508_v55 = vpop.f32.mrb[63].mxu0  ;;  %v4524_v7 = vsel %vm930_vm5, %v4520_v45, -inf  ;;  %v4523_v5 = vsel %vm506_vm4, %v6481_v37, -1e+30 }
0x1e5b   : > { %v4521_v4 = vsel %vm506_vm4, %v4508_v55, -1e+30  ;;  %v4533_v24 = vsel %vm930_vm5, %v4523_v5, -inf }
0x1e5c   : > { %v4527_v13 = vsel %vm930_vm5, %v4521_v4, -inf }
0x1e67   : > { %v6488_v57 = vpop.f32.mrb[64].mxu0 }
0x1e68   : > { %v4616_v63 = vpop.f32.mrb[65].mxu0  ;;  %v4633_v60 = vsel %vm506_vm4, %v6488_v57, -1e+30 }
0x1e69   : > { %v4631_v56 = vsel %vm506_vm4, %v4616_v63, -1e+30  ;;  %v6489_v2 = vpop.f32.mrb[66].mxu0  ;;  %v4641_v33 = vsel %vm930_vm5, %v4633_v60, -inf }
0x1e6a   : > { %v4635_v58 = vsel %vm930_vm5, %v4631_v56, -inf  ;;  %v4619_v59 = vpop.f32.mrb[67].mxu0  ;;  %v4634_v14 = vsel %vm506_vm4, %v6489_v2, -1e+30  ;;  %v6792_v2 = vld [vmem:[%s8529_s5 + $0xc0] sm:$0xff]  }
0x1e6b   : > { %v4632_v61 = vsel %vm506_vm4, %v4619_v59, -1e+30  ;;  %4636 = vmax.xlane.f32.xlu0 %v4635_v58  ;;  %v4644_v36 = vsel %vm930_vm5, %v4634_v14, -inf  ;;  %v6793_v58 = vld [vmem:[%s8529_s5 + $0xc8] sm:$0xff]   ;;  %6506 = vmatprep.subr.bf16.mxu0 %v6792_v2  ;;  %v6794_v59 = vld [vmem:[%s8529_s5 + $0xd0] sm:$0xff]  }
0x1e6c   : > { %v4638_v11 = vsel %vm930_vm5, %v4632_v61, -inf  ;;  %6507 = vmatpush3.bf16.msra.mxu0 %v6792_v2 }
0x1e6d   : > { %4639 = vmax.xlane.f32.xlu1 %v4638_v11  ;;  %6508 = vmatprep.subr.bf16.mxu0 %v6793_v58  ;;  %v6797_v11 = vld [vmem:[%s8529_s5 + $0xe8] sm:$0xff]  }
0x1e6f   : > { %4642 = vmax.xlane.f32.xlu0 %v4641_v33 }
0x1e70   : > { %6509 = vmatpush3.bf16.msra.mxu0 %v6793_v58 }
0x1e71   : > { %4645 = vmax.xlane.f32.xlu1 %v4644_v36  ;;  %6510 = vmatprep.subr.bf16.mxu0 %v6794_v59 }
0x1e73   : > { %4525 = vmax.xlane.f32.xlu0 %v4524_v7 }
0x1e74   : > { %6511 = vmatpush3.bf16.msra.mxu0 %v6794_v59 }
0x1e75   : > { %4528 = vmax.xlane.f32.xlu1 %v4527_v13 }
0x1e77   : > { %4531 = vmax.xlane.f32.xlu0 %v4530_v22 }
0x1e79   : > { %4534 = vmax.xlane.f32.xlu1 %v4533_v24 }
0x1ef8   : > { %v4637_v17 = vpop.xlane.xlu0 %4636 }
0x1ef9   : > { %v4647_v6 = vsub.f32 %v4631_v56, %v4637_v17 }
0x1efa   : > { %v4640_v25 = vpop.xlane.xlu1 %4639 }
0x1efb   : > { %v4651_v10 = vmul.f32 1.442695, %v4647_v6  ;;  %v4648_v12 = vsub.f32 %v4632_v61, %v4640_v25  ;;  %v6796_v61 = vld [vmem:[%s8529_s5 + $0xe0] sm:$0xff]  }
0x1efc   : > { %v4643_v50 = vpop.xlane.xlu0 %4642 }
0x1efd   : > { %6992 = vpow2.f32 %v4651_v10  ;;  %v4653_v52 = vmul.f32 1.442695, %v4648_v12  ;;  %v4649_v53 = vsub.f32 %v4633_v60, %v4643_v50  ;;  %v6795_v60 = vld [vmem:[%s8529_s5 + $0xd8] sm:$0xff]  }
0x1efe   : > { %v4646_v18 = vpop.xlane.xlu1 %4645  ;;  %6512 = vmatprep.subr.bf16.mxu0 %v6795_v60 }
0x1eff   : > { %6994 = vpow2.f32 %v4653_v52  ;;  %v4655_v54 = vmul.f32 1.442695, %v4649_v53  ;;  %v4650_v19 = vsub.f32 %v4634_v14, %v4646_v18  ;;  %6513 = vmatpush3.bf16.msra.mxu0 %v6795_v60  ;;  %v6798_v14 = vld [vmem:[%s8529_s5 + $0xf0] sm:$0xff]  }
0x1f00   : > { %v4526_v23 = vpop.xlane.xlu0 %4525  ;;  %6514 = vmatprep.subr.bf16.mxu0 %v6796_v61 }
0x1f01   : > { %6996 = vpow2.f32 %v4655_v54  ;;  %v4657_v15 = vmul.f32 1.442695, %v4650_v19  ;;  %v4536_v20 = vsub.f32 %v4520_v45, %v4526_v23 }
0x1f02   : > { %v4529_v27 = vpop.xlane.xlu1 %4528 }
0x1f03   : > { %6998 = vpow2.f32 %v4657_v15  ;;  %v4540_v3 = vmul.f32 1.442695, %v4536_v20  ;;  %v4537_v62 = vsub.f32 %v4521_v4, %v4529_v27  ;;  %6515 = vmatpush3.bf16.msra.mxu0 %v6796_v61 }
0x1f04   : > { %v4532_v0 = vpop.xlane.xlu0 %4531  ;;  %6516 = vmatprep.subr.bf16.mxu0 %v6797_v11 }
0x1f05   : > { %7000 = vpow2.f32 %v4540_v3  ;;  %v4542_v16 = vmul.f32 1.442695, %v4537_v62  ;;  %v4538_v30 = vsub.f32 %v4522_v39, %v4532_v0 }
0x1f06   : > { %v4535_v32 = vpop.xlane.xlu1 %4534 }
0x1f07   : > { %v8352_v40 = vpop.eup %6992  ;;  %7002 = vpow2.f32 %v4542_v16  ;;  %v4544_v28 = vmul.f32 1.442695, %v4538_v30  ;;  %v4539_v35 = vsub.f32 %v4523_v5, %v4535_v32  ;;  %6517 = vmatpush3.bf16.msra.mxu0 %v6797_v11 }
0x1f08   : > { %v4659_v42 = vsel %vm930_vm5, %v8352_v40, 0.0  ;;  %6518 = vmatprep.subr.bf16.mxu0 %v6798_v14 }
0x1f09   : > { %v8356_v41 = vpop.eup %6994  ;;  %7004 = vpow2.f32 %v4544_v28  ;;  %v4546_v43 = vmul.f32 1.442695, %v4539_v35  ;;  %4660 = vadd.xlane.f32.xlu0 %v4659_v42 }
0x1f0a   : > { %v4662_v47 = vsel %vm930_vm5, %v8356_v41, 0.0 }
0x1f0b   : > { %v8360_v48 = vpop.eup %6996  ;;  %7006 = vpow2.f32 %v4546_v43  ;;  %4663 = vadd.xlane.f32.xlu1 %v4662_v47  ;;  %6519 = vmatpush3.bf16.msra.mxu0 %v6798_v14 }
0x1f0c   : > { %v4665_v49 = vsel %vm930_vm5, %v8360_v48, 0.0 }
0x1f0d   : > { %v6999_v51 = vpop.eup %6998  ;;  %4666 = vadd.xlane.f32.xlu0 %v4665_v49 }
0x1f0e   : > { %v4668_v1 = vsel %vm930_vm5, %v6999_v51, 0.0 }
0x1f0f   : > { %v8365_v44 = vpop.eup %7000  ;;  %4669 = vadd.xlane.f32.xlu1 %v4668_v1 }
0x1f10   : > { %v4548_v34 = vsel %vm930_vm5, %v8365_v44, 0.0 }
0x1f11   : > { %v7003_v29 = vpop.eup %7002  ;;  %4549 = vadd.xlane.f32.xlu0 %v4548_v34 }
0x1f12   : > { %v4551_v37 = vsel %vm930_vm5, %v7003_v29, 0.0 }
0x1f13   : > { %v8370_v55 = vpop.eup %7004  ;;  %4552 = vadd.xlane.f32.xlu1 %v4551_v37 }
0x1f14   : > { %v4554_v57 = vsel %vm930_vm5, %v8370_v55, 0.0 }
0x1f15   : > { %v8374_v63 = vpop.eup %7006  ;;  %4555 = vadd.xlane.f32.xlu0 %v4554_v57 }
0x1f16   : > { %v4557_v56 = vsel %vm930_vm5, %v8374_v63, 0.0 }
0x1f17   : > { %4558 = vadd.xlane.f32.xlu1 %v4557_v56 }
0x1f96   : > { %v4661_v33 = vpop.xlane.xlu0 %4660 }
0x1f97   : > { %7008 = vrcp.f32 %v4661_v33 }
0x1f98   : > { %v4664_v45 = vpop.xlane.xlu1 %4663 }
0x1f99   : > { %7010 = vrcp.f32 %v4664_v45 }
0x1f9a   : > { %v4667_v36 = vpop.xlane.xlu0 %4666 }
0x1f9b   : > { %7012 = vrcp.f32 %v4667_v36 }
0x1f9c   : > { %v4670_v4 = vpop.xlane.xlu1 %4669 }
0x1f9d   : > { %7014 = vrcp.f32 %v4670_v4 }
0x1f9e   : > { %v4550_v7 = vpop.xlane.xlu0 %4549 }
0x1f9f   : > { %7016 = vrcp.f32 %v4550_v7 }
0x1fa0   : > { %v4553_v39 = vpop.xlane.xlu1 %4552 }
0x1fa1   : > { %v7009_v13 = vpop.eup %7008  ;;  %7018 = vrcp.f32 %v4553_v39 }
0x1fa2   : > { %v4556_v22 = vpop.xlane.xlu0 %4555  ;;  %v4675_v17 = vmul.f32 %v7009_v13, %v8352_v40 }
0x1fa3   : > { %v7011_v5 = vpop.eup %7010 }
0x1fa4   : > { %v4559_v24 = vpop.xlane.xlu1 %4558  ;;  %v4676_v6 = vmul.f32 %v7011_v5, %v8356_v41  ;;  %v5833_v41 = vld [vmem:[%s8531_s7 + $0x3] ss:$0 sm:$0xff] }
0x1fa5   : > { %v7013_v25 = vpop.eup %7012  ;;  %7020 = vrcp.f32 %v4559_v24 }
0x1fa6   : > { %v4683_v10 = vpack.c.bf16 %v4676_v6, %v4675_v17  ;;  %7022 = vrcp.f32 %v4556_v22  ;;  %v4677_v50 = vmul.f32 %v7013_v25, %v8360_v48  ;;  %v6801_v6 = vld [vmem:[%s8534_s10 + $0xc8] sm:$0xff]   ;;  %v6802_v25 = vld [vmem:[%s8534_s10 + $0xd0] sm:$0xff]  }
0x1fa7   : > { %v7015_v12 = vpop.eup %7014 }
0x1fa8   : > { %v4678_v52 = vmul.f32 %v7015_v12, %v6999_v51  ;;  %6494 = vmatprep.mubr.msk.bf16.mxu1 %vm930_vm5, %v4683_v10  ;;  %v6804_v10 = vld [vmem:[%s8534_s10 + $0xe0] sm:$0xff]   ;;  %v6805_v12 = vld [vmem:[%s8534_s10 + $0xe8] sm:$0xff]  }
0x1fa9   : > { %v7017_v53 = vpop.eup %7016 }
0x1faa   : > { %v4684_v18 = vpack.c.bf16 %v4678_v52, %v4677_v50  ;;  %v4564_v19 = vmul.f32 %v7017_v53, %v8365_v44  ;;  %v6806_v50 = vld [vmem:[%s8534_s10 + $0xf0] sm:$0xff]   ;;  %v6807_v52 = vld [vmem:[%s8534_s10 + $0xf8] sm:$0xff]  }
0x1fab   : > { %v7019_v54 = vpop.eup %7018 }
0x1fac   : > { %6495 = vmatmul.mubr.msk.bf16.vlgmr.msra.gmra.mrb[60].mxu1 %vm930_vm5, %v4684_v18  ;;  %v4565_v23 = vmul.f32 %v7019_v54, %v7003_v29 }
0x1fad   : > { %6499 = vmatpush3.bf16.msra.mxu1 %v8321_v46  ;;  %v6799_v46 = vld [vmem:[%s8529_s5 + $0xf8] sm:$0xff]  }
0x1fae   : > { %6500 = vmatprep.subr.bf16.mxu1 %v8319_v38  ;;  %v4572_v15 = vpack.c.bf16 %v4565_v23, %v4564_v19  ;;  %6520 = vmatprep.subr.bf16.mxu0 %v6799_v46 }
0x1faf   : > { %v7021_v20 = vpop.eup %7020  ;;  %6521 = vmatpush3.bf16.msra.mxu0 %v6799_v46 }
0x1fb0   : > { %6502 = vmatprep.mubr.msk.bf16.mxu1 %vm930_vm5, %v4572_v15  ;;  %v7023_v27 = vpop.eup %7022  ;;  %v4567_v3 = vmul.f32 %v7021_v20, %v8374_v63 }
0x1fb1   : > { %6501 = vmatpush3.bf16.msra.mxu1 %v8319_v38  ;;  %v4566_v62 = vmul.f32 %v7023_v27, %v8370_v55  ;;  %v5823_v38 = vld [vmem:[%s8530_s6 + $0x3] ss:$0 sm:$0xff] }
0x1fb3   : > { %v4573_v0 = vpack.c.bf16 %v4567_v3, %v4566_v62 }
0x1fb8   : > { %6503 = vmatmul.mubr.msk.bf16.vlgmr.msra.gmra.mrb[60].mxu1 %vm930_vm5, %v4573_v0 }
0x208b   : > { %v6504_v16 = vpop.f32.mrb[60].mxu1 }
0x208c   : > { %v4782_v30 = vpop.f32.mrb[61].mxu1 }
0x208d   : > { %v6505_v32 = vpop.f32.mrb[62].mxu1 }
0x208e   : > { %v4815_v40 = vpack.c.bf16 %v6505_v32, %v6504_v16  ;;  %v4785_v28 = vpop.f32.mrb[63].mxu1 }
0x208f   : > { %v4814_v35 = vpack.c.bf16 %v4785_v28, %v4782_v30  ;;  %v5836_v30 = vld [vmem:[%s8532_s8 + $0x3] ss:$0 sm:$0xff] }
0x2091   : > { %6522 = vmatprep.mubr.bf16.mxu0 %v4814_v35 }
0x2092   : > { %6523 = vmatmul.mubr.bf16.vlgmr.msra.gmra.mrb[68].mxu0 %v4815_v40 }
0x2165   : > { %v6524_v42 = vpop.f32.mrb[68].mxu0 }
0x2166   : > { %v4906_v43 = vpop.f32.mrb[69].mxu0  ;;  %v4915_v47 = vadd.f32 %v6524_v42, %v5823_v38  ;;  %v5837_v42 = vld [vmem:[%s8533_s9 + $0x3] ss:$0 sm:$0xff] }
0x2167   : > { %v4907_v48 = vadd.f32 %v5823_v38, %v4906_v43  ;;  %v6525_v49 = vpop.f32.mrb[70].mxu0 }
0x2168   : > { %v4909_v51 = vpop.f32.mrb[71].mxu0  ;;  %v4918_v44 = vadd.f32 %v6525_v49, %v5823_v38  ;;  %v4931_v29 = vmul.f32 %v5833_v41, %v4915_v47 }
0x2169   : > { %v4929_v1 = vmul.f32 %v5833_v41, %v4907_v48  ;;  %v4910_v34 = vadd.f32 %v5823_v38, %v4909_v51 }
0x216a   : > { %v4932_v57 = vmul.f32 %v5833_v41, %v4918_v44  ;;  %v8430_v56 = vadd.f32 %v4931_v29, %v8183_v26 }
0x216b   : > { %v4930_v37 = vmul.f32 %v5833_v41, %v4910_v34  ;;  %v8422_v55 = vadd.f32 %v4929_v1, %v8175_v21  ;;  %v6800_v21 = vld [vmem:[%s8534_s10 + $0xc0] sm:$0xff]  }
0x216c   : > { %v8434_v2 = vadd.f32 %v4932_v57, %v8187_v31  ;;  %6526 = vmatprep.subr.bf16.mxu1 %v6800_v21 }
0x216d   : > { %4941 = vadd.xlane.f32.xlu0 %v8422_v55  ;;  %v8426_v63 = vadd.f32 %v4930_v37, %v8179_v8  ;;  %6527 = vmatpush3.bf16.msra.mxu1 %v6800_v21  ;;  %v6808_v21 = vld [vmem:[%s8536_s12 + $0xc0] sm:$0xff]  }
0x216e   : > { %6528 = vmatprep.subr.bf16.mxu1 %v6801_v6  ;;  %6546 = vmatprep.subr.bf16.mxu0 %v6808_v21 }
0x216f   : > { %4943 = vadd.xlane.f32.xlu1 %v8426_v63  ;;  %6547 = vmatpush3.bf16.msra.mxu0 %v6808_v21 }
0x2171   : > { %4945 = vadd.xlane.f32.xlu0 %v8430_v56  ;;  %6529 = vmatpush3.bf16.msra.mxu1 %v6801_v6 }
0x2172   : > { %6530 = vmatprep.subr.bf16.mxu1 %v6802_v25 }
0x2173   : > { %4947 = vadd.xlane.f32.xlu1 %v8434_v2 }
0x2175   : > { %6531 = vmatpush3.bf16.msra.mxu1 %v6802_v25 }
0x2176   : > { %6532 = vmatprep.subr.bf16.mxu1 %v6803_v9 }
0x2179   : > { %6533 = vmatpush3.bf16.msra.mxu1 %v6803_v9 }
0x217a   : > { %6534 = vmatprep.subr.bf16.mxu1 %v6804_v10 }
0x217d   : > { %6535 = vmatpush3.bf16.msra.mxu1 %v6804_v10 }
0x217e   : > { %6536 = vmatprep.subr.bf16.mxu1 %v6805_v12 }
0x2181   : > { %6537 = vmatpush3.bf16.msra.mxu1 %v6805_v12 }
0x2182   : > { %6538 = vmatprep.subr.bf16.mxu1 %v6806_v50 }
0x2185   : > { %6539 = vmatpush3.bf16.msra.mxu1 %v6806_v50 }
0x2186   : > { %6540 = vmatprep.subr.bf16.mxu1 %v6807_v52 }
0x2189   : > { %6541 = vmatpush3.bf16.msra.mxu1 %v6807_v52 }
0x21fa   : > { %v4942_v8 = vpop.xlane.xlu0 %4941 }
0x21fb   : > { %v4949_v58 = vmul.f32 0.03125, %v4942_v8  ;;  %v6809_v8 = vld [vmem:[%s8536_s12 + $0xc8] sm:$0xff]  }
0x21fc   : > { %v4944_v59 = vpop.xlane.xlu1 %4943  ;;  %6548 = vmatprep.subr.bf16.mxu0 %v6809_v8 }
0x21fd   : > { %v4953_v60 = vsub.f32 %v8422_v55, %v4949_v58  ;;  %v4950_v26 = vmul.f32 0.03125, %v4944_v59  ;;  %6549 = vmatpush3.bf16.msra.mxu0 %v6809_v8  ;;  %v6810_v58 = vld [vmem:[%s8536_s12 + $0xd0] sm:$0xff]   ;;  %v6811_v59 = vld [vmem:[%s8536_s12 + $0xd8] sm:$0xff]  }
0x21fe   : > { %v4946_v61 = vpop.xlane.xlu0 %4945  ;;  %6550 = vmatprep.subr.bf16.mxu0 %v6810_v58 }
0x21ff   : > { %v4957_v11 = vsel %vm505_vm0, %v4953_v60, 0.0  ;;  %v4954_v31 = vsub.f32 %v8426_v63, %v4950_v26  ;;  %v4951_v14 = vmul.f32 0.03125, %v4946_v61  ;;  %v6812_v60 = vld [vmem:[%s8536_s12 + $0xe0] sm:$0xff]   ;;  %v6813_v26 = vld [vmem:[%s8536_s12 + $0xe8] sm:$0xff]   ;;  %v6814_v61 = vld [vmem:[%s8536_s12 + $0xf0] sm:$0xff]  }
0x2200   : > { %v4948_v33 = vpop.xlane.xlu1 %4947  ;;  %v4961_v45 = vmul.f32 %v4957_v11, %v4957_v11 }
0x2201   : > { %v4958_v36 = vsel %vm505_vm0, %v4954_v31, 0.0  ;;  %v4955_v4 = vsub.f32 %v8430_v56, %v4951_v14  ;;  %v4952_v7 = vmul.f32 0.03125, %v4948_v33  ;;  %6551 = vmatpush3.bf16.msra.mxu0 %v6810_v58  ;;  %v5855_v31 = vld [vmem:[%s8535_s11 + $0x3] ss:$0 sm:$0xff] }
0x2202   : > { %4965 = vadd.xlane.f32.xlu0 %v4961_v45  ;;  %v4962_v39 = vmul.f32 %v4958_v36, %v4958_v36  ;;  %6552 = vmatprep.subr.bf16.mxu0 %v6811_v59 }
0x2203   : > { %v4959_v13 = vsel %vm505_vm0, %v4955_v4, 0.0  ;;  %v4956_v5 = vsub.f32 %v8434_v2, %v4952_v7 }
0x2204   : > { %4967 = vadd.xlane.f32.xlu1 %v4962_v39  ;;  %v4963_v22 = vmul.f32 %v4959_v13, %v4959_v13 }
0x2205   : > { %v4960_v24 = vsel %vm505_vm0, %v4956_v5, 0.0  ;;  %6553 = vmatpush3.bf16.msra.mxu0 %v6811_v59 }
0x2206   : > { %4969 = vadd.xlane.f32.xlu0 %v4963_v22  ;;  %v4964_v17 = vmul.f32 %v4960_v24, %v4960_v24  ;;  %6554 = vmatprep.subr.bf16.mxu0 %v6812_v60 }
0x2208   : > { %4971 = vadd.xlane.f32.xlu1 %v4964_v17 }
0x2209   : > { %6555 = vmatpush3.bf16.msra.mxu0 %v6812_v60 }
0x220a   : > { %6556 = vmatprep.subr.bf16.mxu0 %v6813_v26 }
0x220d   : > { %6557 = vmatpush3.bf16.msra.mxu0 %v6813_v26 }
0x220e   : > { %6558 = vmatprep.subr.bf16.mxu0 %v6814_v61 }
0x2211   : > { %6559 = vmatpush3.bf16.msra.mxu0 %v6814_v61 }
0x228f   : > { %v4966_v53 = vpop.xlane.xlu0 %4965 }
0x2290   : > { %v4973_v18 = vmul.f32 0.03125, %v4966_v53 }
0x2291   : > { %v4968_v54 = vpop.xlane.xlu1 %4967 }
0x2292   : > { %v4977_v19 = vadd.f32 1e-06, %v4973_v18  ;;  %v4974_v23 = vmul.f32 0.03125, %v4968_v54 }
0x2293   : > { %v4970_v15 = vpop.xlane.xlu0 %4969 }
0x2294   : > { %7024 = vrsqrt.f32 %v4977_v19  ;;  %v4978_v20 = vadd.f32 1e-06, %v4974_v23  ;;  %v4975_v27 = vmul.f32 0.03125, %v4970_v15 }
0x2295   : > { %v4972_v3 = vpop.xlane.xlu1 %4971 }
0x2296   : > { %7026 = vrsqrt.f32 %v4978_v20  ;;  %v4979_v62 = vadd.f32 1e-06, %v4975_v27  ;;  %v4976_v0 = vmul.f32 0.03125, %v4972_v3 }
0x2298   : > { %7028 = vrsqrt.f32 %v4979_v62  ;;  %v4980_v46 = vadd.f32 1e-06, %v4976_v0 }
0x229a   : > { %7030 = vrsqrt.f32 %v4980_v46 }
0x229e   : > { %v7025_v16 = vpop.eup %7024 }
0x229f   : > { %v4985_v32 = vmul.f32 %v7025_v16, %v4957_v11  ;;  %v6815_v11 = vld [vmem:[%s8536_s12 + $0xf8] sm:$0xff]  }
0x22a0   : > { %v7027_v40 = vpop.eup %7026  ;;  %6560 = vmatprep.subr.bf16.mxu0 %v6815_v11 }
0x22a1   : > { %v4986_v28 = vmul.f32 %v7027_v40, %v4958_v36  ;;  %v4995_v35 = vmul.f32 %v5836_v30, %v4985_v32  ;;  %6561 = vmatpush3.bf16.msra.mxu0 %v6815_v11 }
0x22a2   : > { %v7029_v38 = vpop.eup %7028 }
0x22a3   : > { %v4987_v41 = vmul.f32 %v7029_v38, %v4959_v13  ;;  %v4996_v43 = vmul.f32 %v5836_v30, %v4986_v28  ;;  %v5005_v49 = vadd.f32 %v5837_v42, %v4995_v35 }
0x22a4   : > { %v7031_v47 = vpop.eup %7030 }
0x22a5   : > { %v4988_v48 = vmul.f32 %v7031_v47, %v4960_v24  ;;  %v5006_v51 = vadd.f32 %v5837_v42, %v4996_v43  ;;  %v4997_v1 = vmul.f32 %v5836_v30, %v4987_v41 }
0x22a7   : > { %v5026_v44 = vpack.c.bf16 %v5006_v51, %v5005_v49  ;;  %v4998_v34 = vmul.f32 %v5836_v30, %v4988_v48  ;;  %v5007_v29 = vadd.f32 %v5837_v42, %v4997_v1 }
0x22a9   : > { %6542 = vmatprep.mubr.bf16.mxu1 %v5026_v44  ;;  %v5008_v37 = vadd.f32 %v5837_v42, %v4998_v34  ;;  %v5882_v44 = vld [vmem:[%s8537_s13 + $0x3] ss:$0 sm:$0xff] }
0x22ab   : > { %v5027_v57 = vpack.c.bf16 %v5008_v37, %v5007_v29  ;;  %v5891_v29 = vld [vmem:[%s8538_s14 + $0x3] ss:$0 sm:$0xff] }
0x22ad   : > { %6543 = vmatmul.mubr.bf16.vlgmr.msra.gmra.mrb[64].mxu1 %v5027_v57 }
0x2380   : > { %v6544_v14 = vpop.f32.mrb[64].mxu1 }
0x2381   : > { %v5127_v33 = vadd.f32 %v6544_v14, %v5855_v31  ;;  %v5118_v45 = vpop.f32.mrb[65].mxu1 }
0x2382   : > { %v5119_v36 = vadd.f32 %v5855_v31, %v5118_v45  ;;  %v6545_v4 = vpop.f32.mrb[66].mxu1 }
0x2383   : > { %v5139_v7 = vmul.f32 0.044715, %v5127_v33  ;;  %v5130_v39 = vadd.f32 %v6545_v4, %v5855_v31  ;;  %v5121_v13 = vpop.f32.mrb[67].mxu1  ;;  %v5135_v40 = vmul.f32 0.5, %v5127_v33 }
0x2384   : > { %v5137_v5 = vmul.f32 0.044715, %v5119_v36  ;;  %v5122_v22 = vadd.f32 %v5855_v31, %v5121_v13  ;;  %v5133_v38 = vmul.f32 0.5, %v5119_v36 }
0x2385   : > { %v5143_v24 = vmul.f32 %v5139_v7, %v5127_v33  ;;  %v5140_v17 = vmul.f32 0.044715, %v5130_v39  ;;  %v5136_v28 = vmul.f32 0.5, %v5130_v39 }
0x2386   : > { %v5141_v6 = vmul.f32 %v5137_v5, %v5119_v36  ;;  %v5138_v25 = vmul.f32 0.044715, %v5122_v22  ;;  %v5134_v42 = vmul.f32 0.5, %v5122_v22 }
0x2387   : > { %v5147_v9 = vmul.f32 %v5143_v24, %v5127_v33  ;;  %v5144_v10 = vmul.f32 %v5140_v17, %v5130_v39 }
0x2388   : > { %v5145_v12 = vmul.f32 %v5141_v6, %v5119_v36  ;;  %v5142_v50 = vmul.f32 %v5138_v25, %v5122_v22 }
0x2389   : > { %v5151_v52 = vadd.f32 %v5147_v9, %v5127_v33  ;;  %v5148_v53 = vmul.f32 %v5144_v10, %v5130_v39 }
0x238a   : > { %v5146_v18 = vmul.f32 %v5142_v50, %v5122_v22  ;;  %v5149_v54 = vadd.f32 %v5145_v12, %v5119_v36 }
0x238b   : > { %v5155_v19 = vmul.f32 0.7978846, %v5151_v52  ;;  %v5152_v23 = vadd.f32 %v5148_v53, %v5130_v39 }
0x238c   : > { %v5150_v15 = vadd.f32 %v5146_v18, %v5122_v22  ;;  %v5153_v20 = vmul.f32 0.7978846, %v5149_v54 }
0x238d   : > { %7032 = vtanh.f32 %v5155_v19  ;;  %v5156_v27 = vmul.f32 0.7978846, %v5152_v23 }
0x238e   : > { %v5154_v3 = vmul.f32 0.7978846, %v5150_v15  ;;  %7034 = vtanh.f32 %v5153_v20 }
0x238f   : > { %7036 = vtanh.f32 %v5156_v27 }
0x2390   : > { %7038 = vtanh.f32 %v5154_v3 }
0x2397   : > { %v7033_v62 = vpop.eup %7032 }
0x2398   : > { %v7035_v0 = vpop.eup %7034  ;;  %v5163_v46 = vadd.f32 1.0, %v7033_v62 }
0x2399   : > { %v7037_v16 = vpop.eup %7036  ;;  %v5161_v30 = vadd.f32 1.0, %v7035_v0 }
0x239a   : > { %v7039_v32 = vpop.eup %7038  ;;  %v5164_v35 = vadd.f32 1.0, %v7037_v16  ;;  %v5167_v43 = vmul.f32 %v5163_v46, %v5135_v40 }
0x239b   : > { %v5162_v41 = vadd.f32 1.0, %v7039_v32  ;;  %v5165_v48 = vmul.f32 %v5161_v30, %v5133_v38 }
0x239c   : > { %v5168_v47 = vmul.f32 %v5164_v35, %v5136_v28 }
0x239d   : > { %v5166_v49 = vmul.f32 %v5162_v41, %v5134_v42 }
0x239e   : > { %v5189_v51 = vpack.c.bf16 %v5168_v47, %v5167_v43 }
0x239f   : > { %v5188_v1 = vpack.c.bf16 %v5166_v49, %v5165_v48 }
0x23a1   : > { %6562 = vmatprep.mubr.bf16.mxu0 %v5188_v1 }
0x23a2   : > { %6563 = vmatmul.mubr.bf16.vlgmr.msra.gmra.mrb[72].mxu0 %v5189_v51 }
0x2475   : > { %v6564_v34 = vpop.f32.mrb[72].mxu0 }
0x2476   : > { %v5289_v37 = vadd.f32 %v6564_v34, %v5882_v44  ;;  %v5280_v57 = vpop.f32.mrb[73].mxu0 }
0x2477   : > { %v5281_v21 = vadd.f32 %v5882_v44, %v5280_v57  ;;  %v6565_v8 = vpop.f32.mrb[74].mxu0 }
0x2478   : > { %v5292_v58 = vadd.f32 %v6565_v8, %v5882_v44  ;;  %v5283_v59 = vpop.f32.mrb[75].mxu0  ;;  %v5303_v61 = vmul.f32 %v5891_v29, %v5289_v37 }
0x2479   : > { %v5301_v60 = vmul.f32 %v5891_v29, %v5281_v21  ;;  %v5284_v26 = vadd.f32 %v5882_v44, %v5283_v59 }
0x247a   : > { %v5304_v31 = vmul.f32 %v5891_v29, %v5292_v58  ;;  %v5307_v45 = vadd.f32 %v5303_v61, %v8430_v56 }
0x247b   : > { %v5305_v11 = vadd.f32 %v5301_v60, %v8422_v55  ;;  %v5302_v14 = vmul.f32 %v5891_v29, %v5284_v26 }
0x247c   : > { %v5308_v36 = vadd.f32 %v5304_v31, %v8434_v2  ;;  %5311 = vst [vmem:[%s496_s29 + $0x10] sm:$0xff] %v5307_v45 }
0x247d   : > { %5309 = vst [vmem:[%s496_s29] sm:$0xff] %v5305_v11  ;;  %v5306_v33 = vadd.f32 %v5302_v14, %v8426_v63 }
0x247e   : > { %5312 = vst [vmem:[%s496_s29 + $0x18] sm:$0xff] %v5308_v36 }
0x247f   : > { %5310 = vst [vmem:[%s496_s29 + $0x8] sm:$0xff] %v5306_v33 }
0x2480 PF: > { %s25_s18 = sadd.s32 1, %s7050_s18  }
0x2481   : > { %p22_p4 = scmp.ge.s32.totalorder %s25_s18, 4  }
0x2483   :  { %24 = sbr.rel (!%p22_p4) target bundleno = 1 (0x1), region = 152 }

</bundles_post_ra>
